<compile_context>
chip_gen: v7x
topology: tpu7x:2x2x1
jax: 0.10.0
libtpu: 0.0.40
codegen_flags: <defaults>
</compile_context>

<pallas_src>
import jax
import jax.numpy as jnp
from jax import lax
from jax.experimental import pallas as pl
from jax.experimental.pallas import tpu as pltpu

NEG_SLOPE = 0.01   # torch.nn.LeakyReLU default
GROUPS = 32        # fixed cardinality in the reference module


def _leaky_relu(v):
    return jnp.where(v > 0, v, NEG_SLOPE * v)


def _resnext_kernel(x_ref, wf_ref, bf_ref, wm_ref, bm_ref, we_ref, be_ref,
                    ws1_ref, bs1_ref, ws2_ref, bs2_ref, o_ref, ypad_ref):
    """One batch element per grid step; all compute in f32.

    x_ref  : (1, H, W, C)        NHWC input block
    wf_ref : (C, C//2)           First_conv (1x1) as (in, out) matrix
    bf_ref : (1, C//2)
    wm_ref : (3, 3, C//2, C//2)  Middle_conv (grouped 3x3) as dense block-diag HWIO
    bm_ref : (1, C//2)
    we_ref : (C//2, C)           End_conv (1x1) as (in, out) matrix
    be_ref : (1, C)
    ws1_ref: (C, C//16)          SE squeeze FC (in, out)
    bs1_ref: (1, C//16)
    ws2_ref: (C//16, C)          SE excite FC (in, out)
    bs2_ref: (1, C)
    o_ref  : (1, H, W, C)
    ypad_ref: VMEM (H+2, W+2, C//2) zero-bordered scratch for the 3x3 conv
    """
    Hp2, Wp2, half = ypad_ref.shape
    H, W = Hp2 - 2, Wp2 - 2
    C = x_ref.shape[-1]

    # Channels-last 2-D view; reshape is layout-trivial (C is the lane dim).
    x2 = x_ref[0].reshape(H * W, C).astype(jnp.float32)

    # ---- First_conv (1x1) + LeakyReLU : one (H*W, C) @ (C, half) matmul ----
    y1 = _leaky_relu(
        jnp.dot(x2, wf_ref[...], preferred_element_type=jnp.float32) + bf_ref[...])

    # ---- Middle_conv (3x3, groups folded into a dense block-diagonal weight) ----
    # Re-zero only the 1-pixel border each step (cheap, and correct regardless of
    # how the parallel batch axis is split across TensorCores); the interior is
    # fully rewritten below, so no full-scratch memset / re-pad pass is needed.
    ypad_ref[0:1, :, :] = jnp.zeros((1, Wp2, half), jnp.float32)
    ypad_ref[H + 1:H + 2, :, :] = jnp.zeros((1, Wp2, half), jnp.float32)
    ypad_ref[:, 0:1, :] = jnp.zeros((Hp2, 1, half), jnp.float32)
    ypad_ref[:, W + 1:W + 2, :] = jnp.zeros((Hp2, 1, half), jnp.float32)
    ypad_ref[1:H + 1, 1:W + 1, :] = y1.reshape(H, W, half)
    yp = ypad_ref[...]                                   # (H+2, W+2, half)

    # 9 shifted (H*W, half) @ (half, half) matmuls; accumulator initialised with
    # the (0,0) tap + bias instead of a zero broadcast + separate bias add.
    acc = (jnp.dot(yp[0:H, 0:W, :].reshape(H * W, half), wm_ref[0, 0],
                   preferred_element_type=jnp.float32) + bm_ref[...])
    for kh in range(3):
        row = yp[kh:kh + H, :, :]                        # shared by the 3 kw taps
        for kw in range(3):
            if kh == 0 and kw == 0:
                continue
            acc = acc + jnp.dot(row[:, kw:kw + W, :].reshape(H * W, half),
                                wm_ref[kh, kw],
                                preferred_element_type=jnp.float32)
    y2 = _leaky_relu(acc)                                # (H*W, half)

    # ---- End_conv (1x1) + LeakyReLU ----
    y3 = _leaky_relu(
        jnp.dot(y2, we_ref[...], preferred_element_type=jnp.float32) + be_ref[...])

    # ---- SE channel attention: squeeze -> FC/ReLU -> FC/sigmoid -> scale ----
    s = jnp.mean(y3, axis=0, keepdims=True)              # (1, C)
    z = jnp.maximum(
        jnp.dot(s, ws1_ref[...], preferred_element_type=jnp.float32) + bs1_ref[...],
        0.0)                                             # (1, C//16)
    glin = jnp.dot(z, ws2_ref[...], preferred_element_type=jnp.float32) + bs2_ref[...]
    gate = 1.0 / (1.0 + jnp.exp(-glin))                  # sigmoid on the EUP
    y4 = y3 * gate                                       # broadcast over rows

    # ---- residual add; lane-dense store (C = 128 in the demo -> unmasked vst) ----
    o_ref[0] = (y4 + x2).reshape(H, W, C).astype(o_ref.dtype)


def resnext_forward(x_nchw, params):
    """Forward pass of ResNeXt(ch, kernel=3, inverse=False).

    x_nchw : (B, C, H, W) float32 with C a multiple of 64 (groups=32 on C//2).
    params : dict of PyTorch-layout weights (see __main__).
    Returns (B, C, H, W) float32.
    """
    B, C, H, W = x_nchw.shape
    half = C // 2
    hid = params["ws1"].shape[0]

    # ---- weight prep (plain XLA, traced once under jit) ----
    wf = jnp.transpose(params["wf"][:, :, 0, 0]).astype(jnp.float32)     # (C, half)
    we = jnp.transpose(params["we"][:, :, 0, 0]).astype(jnp.float32)     # (half, C)

    # Grouped OIHW (half, half//G, 3, 3) -> dense block-diagonal HWIO (3,3,half,half)
    # so the grouped conv runs as ordinary matmuls on the MXU.
    G = GROUPS
    out_pg = half // G
    in_pg = params["wm"].shape[1]
    blocks = jnp.transpose(params["wm"].reshape(G, out_pg, in_pg, 3, 3),
                           (3, 4, 0, 2, 1))                              # (3,3,G,in_pg,out_pg)
    wm = jnp.einsum("hwgio,gk->hwgiko", blocks, jnp.eye(G, dtype=blocks.dtype))
    wm = wm.reshape(3, 3, G * in_pg, G * out_pg).astype(jnp.float32)

    bf = params["bf"].reshape(1, half).astype(jnp.float32)
    bm = params["bm"].reshape(1, half).astype(jnp.float32)
    be = params["be"].reshape(1, C).astype(jnp.float32)
    ws1 = jnp.transpose(params["ws1"]).astype(jnp.float32)               # (C, hid)
    bs1 = params["bs1"].reshape(1, hid).astype(jnp.float32)
    ws2 = jnp.transpose(params["ws2"]).astype(jnp.float32)               # (hid, C)
    bs2 = params["bs2"].reshape(1, C).astype(jnp.float32)

    # NCHW -> NHWC (kept in the wrapper only to preserve the PyTorch interface;
    # there is no wrapper-side zero-pad any more — padding lives in kernel VMEM).
    x = jnp.transpose(x_nchw, (0, 2, 3, 1)).astype(jnp.float32)

    rep2 = lambda b: (0, 0)            # resident weights/biases: constant index map
    rep4 = lambda b: (0, 0, 0, 0)

    # NOTE: per-step VMEM is ~2 MiB (whole 16x16 image per block), far inside even
    # v7x's 64 MiB; for large H*W*C add an H-tile grid axis with a 2-row halo.
    out_nhwc = pl.pallas_call(
        _resnext_kernel,
        out_shape=jax.ShapeDtypeStruct((B, H, W, C), jnp.float32),
        grid_spec=pltpu.PrefetchScalarGridSpec(
            num_scalar_prefetch=0,
            grid=(B,),
            in_specs=[
                pl.BlockSpec((1, H, W, C), lambda b: (b, 0, 0, 0)),
                pl.BlockSpec((C, half), rep2),
                pl.BlockSpec((1, half), rep2),
                pl.BlockSpec((3, 3, half, half), rep4),
                pl.BlockSpec((1, half), rep2),
                pl.BlockSpec((half, C), rep2),
                pl.BlockSpec((1, C), rep2),
                pl.BlockSpec((C, hid), rep2),
                pl.BlockSpec((1, hid), rep2),
                pl.BlockSpec((hid, C), rep2),
                pl.BlockSpec((1, C), rep2),
            ],
            out_specs=pl.BlockSpec((1, H, W, C), lambda b: (b, 0, 0, 0)),
            scratch_shapes=[pltpu.VMEM((H + 2, W + 2, half), jnp.float32)],
        ),
        compiler_params=pltpu.CompilerParams(
            dimension_semantics=("parallel",)),
    )(x, wf, bf, wm, bm, we, be, ws1, bs1, ws2, bs2)

    return jnp.transpose(out_nhwc, (0, 3, 1, 2))


def _reference(x_nchw, params):
    """Pure-JAX/XLA reference mirroring the PyTorch module directly
    (independent of the kernel's weight transforms)."""
    def conv(x, w, b, groups=1, pad=0):
        y = lax.conv_general_dilated(
            x, w, window_strides=(1, 1), padding=[(pad, pad), (pad, pad)],
            dimension_numbers=("NCHW", "OIHW", "NCHW"),
            feature_group_count=groups)
        return y + b.reshape(1, -1, 1, 1)

    short = x_nchw
    y = _leaky_relu(conv(x_nchw, params["wf"], params["bf"]))
    y = _leaky_relu(conv(y, params["wm"], params["bm"], groups=GROUPS, pad=1))
    y = _leaky_relu(conv(y, params["we"], params["be"]))
    s = jnp.mean(y, axis=(2, 3))                                    # (B, C)
    s = jnp.maximum(s @ params["ws1"].T + params["bs1"], 0.0)
    g = jax.nn.sigmoid(s @ params["ws2"].T + params["bs2"])
    y = y * g[:, :, None, None]
    return y + short


if __name__ == "__main__":
    # groups=32 on ch//2 channels forces ch % 64 == 0; ch=128 is the smallest
    # size that also keeps the channel axis fully lane-dense (128 lanes).
    B, C, H, W = 2, 128, 16, 16
    half, hid = C // 2, C // 16

    key = jax.random.PRNGKey(0)
    ks = jax.random.split(key, 11)

    def u(k, shape, fan_in):
        bound = 1.0 / float(fan_in) ** 0.5
        return jax.random.uniform(k, shape, minval=-bound, maxval=bound,
                                  dtype=jnp.float32)

    x = jax.random.normal(ks[0], (B, C, H, W), dtype=jnp.float32)
    params = {
        # PyTorch layouts: Conv2d weight (out, in/groups, kH, kW); Linear (out, in)
        "wf": u(ks[1], (half, C, 1, 1), C),
        "bf": u(ks[2], (half,), C),
        "wm": u(ks[3], (half, half // GROUPS, 3, 3), (half // GROUPS) * 9),
        "bm": u(ks[4], (half,), (half // GROUPS) * 9),
        "we": u(ks[5], (C, half, 1, 1), half),
        "be": u(ks[6], (C,), half),
        "ws1": u(ks[7], (hid, C), C),
        "bs1": u(ks[8], (hid,), C),
        "ws2": u(ks[9], (C, hid), hid),
        "bs2": u(ks[10], (C,), hid),
    }

    out = jax.jit(resnext_forward)(x, params)
    out = jax.block_until_ready(out)

    ref = _reference(x, params)
    err = float(jnp.max(jnp.abs(out - ref)))
    assert out.shape == (B, C, H, W)
    assert err < 2e-3, f"max abs err {err}"

    print("KERNEL_OK")
</pallas_src>

<mosaic_0001>
module attributes {stable_mosaic.version = 11 : i64} {
  func.func @_resnext_kernel(%arg0: i32, %arg1: memref<1x16x16x128xf32, #tpu.memory_space<vmem>>, %arg2: memref<128x64xf32, #tpu.memory_space<vmem>>, %arg3: memref<1x64xf32, #tpu.memory_space<vmem>>, %arg4: memref<3x3x64x64xf32, #tpu.memory_space<vmem>>, %arg5: memref<1x64xf32, #tpu.memory_space<vmem>>, %arg6: memref<64x128xf32, #tpu.memory_space<vmem>>, %arg7: memref<1x128xf32, #tpu.memory_space<vmem>>, %arg8: memref<128x8xf32, #tpu.memory_space<vmem>>, %arg9: memref<1x8xf32, #tpu.memory_space<vmem>>, %arg10: memref<8x128xf32, #tpu.memory_space<vmem>>, %arg11: memref<1x128xf32, #tpu.memory_space<vmem>>, %arg12: memref<1x16x16x128xf32, #tpu.memory_space<vmem>>, %arg13: memref<18x18x64xf32, #tpu.memory_space<vmem>>) attributes {dimension_semantics = [#tpu.dimension_semantics<parallel>], iteration_bounds = array<i64: 2>, scalar_prefetch = 0 : i64, scratch_operands = 1 : i64, tpu.core_type = #tpu.core_type<tc>, window_params = [{transform_indices = @transform_0, window_bounds = array<i64: 1, 16, 16, 128>}, {pipeline_mode = #tpu.pipeline_mode<synchronous>, transform_indices = @transform_1, window_bounds = array<i64: 128, 64>}, {pipeline_mode = #tpu.pipeline_mode<synchronous>, transform_indices = @transform_2, window_bounds = array<i64: 1, 64>}, {pipeline_mode = #tpu.pipeline_mode<synchronous>, transform_indices = @transform_3, window_bounds = array<i64: 3, 3, 64, 64>}, {pipeline_mode = #tpu.pipeline_mode<synchronous>, transform_indices = @transform_4, window_bounds = array<i64: 1, 64>}, {pipeline_mode = #tpu.pipeline_mode<synchronous>, transform_indices = @transform_5, window_bounds = array<i64: 64, 128>}, {pipeline_mode = #tpu.pipeline_mode<synchronous>, transform_indices = @transform_6, window_bounds = array<i64: 1, 128>}, {pipeline_mode = #tpu.pipeline_mode<synchronous>, transform_indices = @transform_7, window_bounds = array<i64: 128, 8>}, {pipeline_mode = #tpu.pipeline_mode<synchronous>, transform_indices = @transform_8, window_bounds = array<i64: 1, 8>}, {pipeline_mode = #tpu.pipeline_mode<synchronous>, transform_indices = @transform_9, window_bounds = array<i64: 8, 128>}, {pipeline_mode = #tpu.pipeline_mode<synchronous>, transform_indices = @transform_10, window_bounds = array<i64: 1, 128>}, {transform_indices = @transform_11, window_bounds = array<i64: 1, 16, 16, 128>}]} {
    %c0 = arith.constant 0 : index
    %c0_0 = arith.constant 0 : index
    %c0_1 = arith.constant 0 : index
    %c0_2 = arith.constant 0 : index
    %0 = vector.load %arg1[%c0, %c0_0, %c0_1, %c0_2] : memref<1x16x16x128xf32, #tpu.memory_space<vmem>>, vector<1x16x16x128xf32>
    %1 = vector.shape_cast %0 : vector<1x16x16x128xf32> to vector<16x16x128xf32>
    %2 = vector.shape_cast %1 : vector<16x16x128xf32> to vector<256x128xf32>
    %c0_3 = arith.constant 0 : index
    %c0_4 = arith.constant 0 : index
    %3 = vector.load %arg2[%c0_3, %c0_4] : memref<128x64xf32, #tpu.memory_space<vmem>>, vector<128x64xf32>
    %cst = arith.constant dense<0.000000e+00> : vector<256x64xf32>
    %4 = tpu.matmul %2, %3, %cst {dimension_numbers = #tpu.dot_dimension_numbers<[1], [0], [0], [1], [0, 0, 1, 1], [], []>} : vector<256x128xf32>, vector<128x64xf32>, vector<256x64xf32> -> vector<256x64xf32>
    %c0_5 = arith.constant 0 : index
    %c0_6 = arith.constant 0 : index
    %5 = vector.load %arg3[%c0_5, %c0_6] : memref<1x64xf32, #tpu.memory_space<vmem>>, vector<1x64xf32>
    %6 = vector.broadcast %5 : vector<1x64xf32> to vector<256x64xf32>
    %7 = arith.addf %4, %6 : vector<256x64xf32>
    %cst_7 = arith.constant 0.000000e+00 : f32
    %8 = vector.broadcast %cst_7 : f32 to vector<256x64xf32>
    %9 = arith.cmpf ogt, %7, %8 : vector<256x64xf32>
    %cst_8 = arith.constant 0.00999999977 : f32
    %10 = vector.broadcast %cst_8 : f32 to vector<256x64xf32>
    %11 = arith.mulf %10, %7 : vector<256x64xf32>
    %12 = arith.select %9, %7, %11 : vector<256x64xi1>, vector<256x64xf32>
    %cst_9 = arith.constant 0.000000e+00 : f32
    %13 = vector.broadcast %cst_9 : f32 to vector<1x18x64xf32>
    %c0_10 = arith.constant 0 : index
    %c0_11 = arith.constant 0 : index
    %c0_12 = arith.constant 0 : index
    %14 = vector.load %arg13[%c0_10, %c0_11, %c0_12] : memref<18x18x64xf32, #tpu.memory_space<vmem>>, vector<1x18x64xf32>
    tpu.vector_store %arg13[%c0_10, %c0_11, %c0_12], %13 {strides = array<i32>} : memref<18x18x64xf32, #tpu.memory_space<vmem>>, vector<1x18x64xf32>,
    %cst_13 = arith.constant 0.000000e+00 : f32
    %15 = vector.broadcast %cst_13 : f32 to vector<1x18x64xf32>
    %c17 = arith.constant 17 : index
    %c0_14 = arith.constant 0 : index
    %c0_15 = arith.constant 0 : index
    %16 = vector.load %arg13[%c17, %c0_14, %c0_15] : memref<18x18x64xf32, #tpu.memory_space<vmem>>, vector<1x18x64xf32>
    tpu.vector_store %arg13[%c17, %c0_14, %c0_15], %15 {strides = array<i32>} : memref<18x18x64xf32, #tpu.memory_space<vmem>>, vector<1x18x64xf32>,
    %cst_16 = arith.constant 0.000000e+00 : f32
    %17 = vector.broadcast %cst_16 : f32 to vector<18x1x64xf32>
    %c0_17 = arith.constant 0 : index
    %c0_18 = arith.constant 0 : index
    %c0_19 = arith.constant 0 : index
    %18 = vector.load %arg13[%c0_17, %c0_18, %c0_19] : memref<18x18x64xf32, #tpu.memory_space<vmem>>, vector<18x1x64xf32>
    tpu.vector_store %arg13[%c0_17, %c0_18, %c0_19], %17 {strides = array<i32>} : memref<18x18x64xf32, #tpu.memory_space<vmem>>, vector<18x1x64xf32>,
    %cst_20 = arith.constant 0.000000e+00 : f32
    %19 = vector.broadcast %cst_20 : f32 to vector<18x1x64xf32>
    %c0_21 = arith.constant 0 : index
    %c17_22 = arith.constant 17 : index
    %c0_23 = arith.constant 0 : index
    %20 = vector.load %arg13[%c0_21, %c17_22, %c0_23] : memref<18x18x64xf32, #tpu.memory_space<vmem>>, vector<18x1x64xf32>
    tpu.vector_store %arg13[%c0_21, %c17_22, %c0_23], %19 {strides = array<i32>} : memref<18x18x64xf32, #tpu.memory_space<vmem>>, vector<18x1x64xf32>,
    %21 = vector.shape_cast %12 : vector<256x64xf32> to vector<16x16x64xf32>
    %c1 = arith.constant 1 : index
    %c1_24 = arith.constant 1 : index
    %c0_25 = arith.constant 0 : index
    %22 = vector.load %arg13[%c1, %c1_24, %c0_25] : memref<18x18x64xf32, #tpu.memory_space<vmem>>, vector<16x16x64xf32>
    tpu.vector_store %arg13[%c1, %c1_24, %c0_25], %21 {strides = array<i32>} : memref<18x18x64xf32, #tpu.memory_space<vmem>>, vector<16x16x64xf32>,
    %c0_26 = arith.constant 0 : index
    %c0_27 = arith.constant 0 : index
    %c0_28 = arith.constant 0 : index
    %23 = vector.load %arg13[%c0_26, %c0_27, %c0_28] : memref<18x18x64xf32, #tpu.memory_space<vmem>>, vector<18x18x64xf32>
    %24 = vector.extract_strided_slice %23 {offsets = [0, 0, 0], sizes = [16, 16, 64], strides = [1, 1, 1]} : vector<18x18x64xf32> to vector<16x16x64xf32>
    %25 = vector.shape_cast %24 : vector<16x16x64xf32> to vector<256x64xf32>
    %c0_29 = arith.constant 0 : index
    %c0_30 = arith.constant 0 : index
    %c0_31 = arith.constant 0 : index
    %c0_32 = arith.constant 0 : index
    %26 = vector.load %arg4[%c0_29, %c0_30, %c0_31, %c0_32] : memref<3x3x64x64xf32, #tpu.memory_space<vmem>>, vector<1x1x64x64xf32>
    %27 = vector.shape_cast %26 : vector<1x1x64x64xf32> to vector<64x64xf32>
    %cst_33 = arith.constant dense<0.000000e+00> : vector<256x64xf32>
    %28 = tpu.matmul %25, %27, %cst_33 {dimension_numbers = #tpu.dot_dimension_numbers<[1], [0], [0], [1], [0, 0, 1, 1], [], []>} : vector<256x64xf32>, vector<64x64xf32>, vector<256x64xf32> -> vector<256x64xf32>
    %c0_34 = arith.constant 0 : index
    %c0_35 = arith.constant 0 : index
    %29 = vector.load %arg5[%c0_34, %c0_35] : memref<1x64xf32, #tpu.memory_space<vmem>>, vector<1x64xf32>
    %30 = vector.broadcast %29 : vector<1x64xf32> to vector<256x64xf32>
    %31 = arith.addf %28, %30 : vector<256x64xf32>
    %32 = vector.extract_strided_slice %23 {offsets = [0, 0, 0], sizes = [16, 18, 64], strides = [1, 1, 1]} : vector<18x18x64xf32> to vector<16x18x64xf32>
    %33 = vector.extract_strided_slice %32 {offsets = [0, 1, 0], sizes = [16, 16, 64], strides = [1, 1, 1]} : vector<16x18x64xf32> to vector<16x16x64xf32>
    %34 = vector.shape_cast %33 : vector<16x16x64xf32> to vector<256x64xf32>
    %c0_36 = arith.constant 0 : index
    %c1_37 = arith.constant 1 : index
    %c0_38 = arith.constant 0 : index
    %c0_39 = arith.constant 0 : index
    %35 = vector.load %arg4[%c0_36, %c1_37, %c0_38, %c0_39] : memref<3x3x64x64xf32, #tpu.memory_space<vmem>>, vector<1x1x64x64xf32>
    %36 = vector.shape_cast %35 : vector<1x1x64x64xf32> to vector<64x64xf32>
    %cst_40 = arith.constant dense<0.000000e+00> : vector<256x64xf32>
    %37 = tpu.matmul %34, %36, %cst_40 {dimension_numbers = #tpu.dot_dimension_numbers<[1], [0], [0], [1], [0, 0, 1, 1], [], []>} : vector<256x64xf32>, vector<64x64xf32>, vector<256x64xf32> -> vector<256x64xf32>
    %38 = arith.addf %31, %37 : vector<256x64xf32>
    %39 = vector.extract_strided_slice %32 {offsets = [0, 2, 0], sizes = [16, 16, 64], strides = [1, 1, 1]} : vector<16x18x64xf32> to vector<16x16x64xf32>
    %40 = vector.shape_cast %39 : vector<16x16x64xf32> to vector<256x64xf32>
    %c0_41 = arith.constant 0 : index
    %c2 = arith.constant 2 : index
    %c0_42 = arith.constant 0 : index
    %c0_43 = arith.constant 0 : index
    %41 = vector.load %arg4[%c0_41, %c2, %c0_42, %c0_43] : memref<3x3x64x64xf32, #tpu.memory_space<vmem>>, vector<1x1x64x64xf32>
    %42 = vector.shape_cast %41 : vector<1x1x64x64xf32> to vector<64x64xf32>
    %cst_44 = arith.constant dense<0.000000e+00> : vector<256x64xf32>
    %43 = tpu.matmul %40, %42, %cst_44 {dimension_numbers = #tpu.dot_dimension_numbers<[1], [0], [0], [1], [0, 0, 1, 1], [], []>} : vector<256x64xf32>, vector<64x64xf32>, vector<256x64xf32> -> vector<256x64xf32>
    %44 = arith.addf %38, %43 : vector<256x64xf32>
    %45 = vector.extract_strided_slice %23 {offsets = [1, 0, 0], sizes = [16, 18, 64], strides = [1, 1, 1]} : vector<18x18x64xf32> to vector<16x18x64xf32>
    %46 = vector.extract_strided_slice %45 {offsets = [0, 0, 0], sizes = [16, 16, 64], strides = [1, 1, 1]} : vector<16x18x64xf32> to vector<16x16x64xf32>
    %47 = vector.shape_cast %46 : vector<16x16x64xf32> to vector<256x64xf32>
    %c1_45 = arith.constant 1 : index
    %c0_46 = arith.constant 0 : index
    %c0_47 = arith.constant 0 : index
    %c0_48 = arith.constant 0 : index
    %48 = vector.load %arg4[%c1_45, %c0_46, %c0_47, %c0_48] : memref<3x3x64x64xf32, #tpu.memory_space<vmem>>, vector<1x1x64x64xf32>
    %49 = vector.shape_cast %48 : vector<1x1x64x64xf32> to vector<64x64xf32>
    %cst_49 = arith.constant dense<0.000000e+00> : vector<256x64xf32>
    %50 = tpu.matmul %47, %49, %cst_49 {dimension_numbers = #tpu.dot_dimension_numbers<[1], [0], [0], [1], [0, 0, 1, 1], [], []>} : vector<256x64xf32>, vector<64x64xf32>, vector<256x64xf32> -> vector<256x64xf32>
    %51 = arith.addf %44, %50 : vector<256x64xf32>
    %52 = vector.extract_strided_slice %45 {offsets = [0, 1, 0], sizes = [16, 16, 64], strides = [1, 1, 1]} : vector<16x18x64xf32> to vector<16x16x64xf32>
    %53 = vector.shape_cast %52 : vector<16x16x64xf32> to vector<256x64xf32>
    %c1_50 = arith.constant 1 : index
    %c1_51 = arith.constant 1 : index
    %c0_52 = arith.constant 0 : index
    %c0_53 = arith.constant 0 : index
    %54 = vector.load %arg4[%c1_50, %c1_51, %c0_52, %c0_53] : memref<3x3x64x64xf32, #tpu.memory_space<vmem>>, vector<1x1x64x64xf32>
    %55 = vector.shape_cast %54 : vector<1x1x64x64xf32> to vector<64x64xf32>
    %cst_54 = arith.constant dense<0.000000e+00> : vector<256x64xf32>
    %56 = tpu.matmul %53, %55, %cst_54 {dimension_numbers = #tpu.dot_dimension_numbers<[1], [0], [0], [1], [0, 0, 1, 1], [], []>} : vector<256x64xf32>, vector<64x64xf32>, vector<256x64xf32> -> vector<256x64xf32>
    %57 = arith.addf %51, %56 : vector<256x64xf32>
    %58 = vector.extract_strided_slice %45 {offsets = [0, 2, 0], sizes = [16, 16, 64], strides = [1, 1, 1]} : vector<16x18x64xf32> to vector<16x16x64xf32>
    %59 = vector.shape_cast %58 : vector<16x16x64xf32> to vector<256x64xf32>
    %c1_55 = arith.constant 1 : index
    %c2_56 = arith.constant 2 : index
    %c0_57 = arith.constant 0 : index
    %c0_58 = arith.constant 0 : index
    %60 = vector.load %arg4[%c1_55, %c2_56, %c0_57, %c0_58] : memref<3x3x64x64xf32, #tpu.memory_space<vmem>>, vector<1x1x64x64xf32>
    %61 = vector.shape_cast %60 : vector<1x1x64x64xf32> to vector<64x64xf32>
    %cst_59 = arith.constant dense<0.000000e+00> : vector<256x64xf32>
    %62 = tpu.matmul %59, %61, %cst_59 {dimension_numbers = #tpu.dot_dimension_numbers<[1], [0], [0], [1], [0, 0, 1, 1], [], []>} : vector<256x64xf32>, vector<64x64xf32>, vector<256x64xf32> -> vector<256x64xf32>
    %63 = arith.addf %57, %62 : vector<256x64xf32>
    %64 = vector.extract_strided_slice %23 {offsets = [2, 0, 0], sizes = [16, 18, 64], strides = [1, 1, 1]} : vector<18x18x64xf32> to vector<16x18x64xf32>
    %65 = vector.extract_strided_slice %64 {offsets = [0, 0, 0], sizes = [16, 16, 64], strides = [1, 1, 1]} : vector<16x18x64xf32> to vector<16x16x64xf32>
    %66 = vector.shape_cast %65 : vector<16x16x64xf32> to vector<256x64xf32>
    %c2_60 = arith.constant 2 : index
    %c0_61 = arith.constant 0 : index
    %c0_62 = arith.constant 0 : index
    %c0_63 = arith.constant 0 : index
    %67 = vector.load %arg4[%c2_60, %c0_61, %c0_62, %c0_63] : memref<3x3x64x64xf32, #tpu.memory_space<vmem>>, vector<1x1x64x64xf32>
    %68 = vector.shape_cast %67 : vector<1x1x64x64xf32> to vector<64x64xf32>
    %cst_64 = arith.constant dense<0.000000e+00> : vector<256x64xf32>
    %69 = tpu.matmul %66, %68, %cst_64 {dimension_numbers = #tpu.dot_dimension_numbers<[1], [0], [0], [1], [0, 0, 1, 1], [], []>} : vector<256x64xf32>, vector<64x64xf32>, vector<256x64xf32> -> vector<256x64xf32>
    %70 = arith.addf %63, %69 : vector<256x64xf32>
    %71 = vector.extract_strided_slice %64 {offsets = [0, 1, 0], sizes = [16, 16, 64], strides = [1, 1, 1]} : vector<16x18x64xf32> to vector<16x16x64xf32>
    %72 = vector.shape_cast %71 : vector<16x16x64xf32> to vector<256x64xf32>
    %c2_65 = arith.constant 2 : index
    %c1_66 = arith.constant 1 : index
    %c0_67 = arith.constant 0 : index
    %c0_68 = arith.constant 0 : index
    %73 = vector.load %arg4[%c2_65, %c1_66, %c0_67, %c0_68] : memref<3x3x64x64xf32, #tpu.memory_space<vmem>>, vector<1x1x64x64xf32>
    %74 = vector.shape_cast %73 : vector<1x1x64x64xf32> to vector<64x64xf32>
    %cst_69 = arith.constant dense<0.000000e+00> : vector<256x64xf32>
    %75 = tpu.matmul %72, %74, %cst_69 {dimension_numbers = #tpu.dot_dimension_numbers<[1], [0], [0], [1], [0, 0, 1, 1], [], []>} : vector<256x64xf32>, vector<64x64xf32>, vector<256x64xf32> -> vector<256x64xf32>
    %76 = arith.addf %70, %75 : vector<256x64xf32>
    %77 = vector.extract_strided_slice %64 {offsets = [0, 2, 0], sizes = [16, 16, 64], strides = [1, 1, 1]} : vector<16x18x64xf32> to vector<16x16x64xf32>
    %78 = vector.shape_cast %77 : vector<16x16x64xf32> to vector<256x64xf32>
    %c2_70 = arith.constant 2 : index
    %c2_71 = arith.constant 2 : index
    %c0_72 = arith.constant 0 : index
    %c0_73 = arith.constant 0 : index
    %79 = vector.load %arg4[%c2_70, %c2_71, %c0_72, %c0_73] : memref<3x3x64x64xf32, #tpu.memory_space<vmem>>, vector<1x1x64x64xf32>
    %80 = vector.shape_cast %79 : vector<1x1x64x64xf32> to vector<64x64xf32>
    %cst_74 = arith.constant dense<0.000000e+00> : vector<256x64xf32>
    %81 = tpu.matmul %78, %80, %cst_74 {dimension_numbers = #tpu.dot_dimension_numbers<[1], [0], [0], [1], [0, 0, 1, 1], [], []>} : vector<256x64xf32>, vector<64x64xf32>, vector<256x64xf32> -> vector<256x64xf32>
    %82 = arith.addf %76, %81 : vector<256x64xf32>
    %cst_75 = arith.constant 0.000000e+00 : f32
    %83 = vector.broadcast %cst_75 : f32 to vector<256x64xf32>
    %84 = arith.cmpf ogt, %82, %83 : vector<256x64xf32>
    %cst_76 = arith.constant 0.00999999977 : f32
    %85 = vector.broadcast %cst_76 : f32 to vector<256x64xf32>
    %86 = arith.mulf %85, %82 : vector<256x64xf32>
    %87 = arith.select %84, %82, %86 : vector<256x64xi1>, vector<256x64xf32>
    %c0_77 = arith.constant 0 : index
    %c0_78 = arith.constant 0 : index
    %88 = vector.load %arg6[%c0_77, %c0_78] : memref<64x128xf32, #tpu.memory_space<vmem>>, vector<64x128xf32>
    %cst_79 = arith.constant dense<0.000000e+00> : vector<256x128xf32>
    %89 = tpu.matmul %87, %88, %cst_79 {dimension_numbers = #tpu.dot_dimension_numbers<[1], [0], [0], [1], [0, 0, 1, 1], [], []>} : vector<256x64xf32>, vector<64x128xf32>, vector<256x128xf32> -> vector<256x128xf32>
    %c0_80 = arith.constant 0 : index
    %c0_81 = arith.constant 0 : index
    %90 = vector.load %arg7[%c0_80, %c0_81] : memref<1x128xf32, #tpu.memory_space<vmem>>, vector<1x128xf32>
    %91 = vector.broadcast %90 : vector<1x128xf32> to vector<256x128xf32>
    %92 = arith.addf %89, %91 : vector<256x128xf32>
    %cst_82 = arith.constant 0.000000e+00 : f32
    %93 = vector.broadcast %cst_82 : f32 to vector<256x128xf32>
    %94 = arith.cmpf ogt, %92, %93 : vector<256x128xf32>
    %cst_83 = arith.constant 0.00999999977 : f32
    %95 = vector.broadcast %cst_83 : f32 to vector<256x128xf32>
    %96 = arith.mulf %95, %92 : vector<256x128xf32>
    %97 = arith.select %94, %92, %96 : vector<256x128xi1>, vector<256x128xf32>
    %cst_84 = arith.constant dense<0.000000e+00> : vector<128xf32>
    %98 = vector.multi_reduction <add>, %97, %cst_84 [0] : vector<256x128xf32> to vector<128xf32>
    %99 = vector.shape_cast %98 : vector<128xf32> to vector<1x128xf32>
    %cst_85 = arith.constant 2.560000e+02 : f32
    %100 = vector.broadcast %cst_85 : f32 to vector<1x128xf32>
    %101 = arith.divf %99, %100 : vector<1x128xf32>
    %c0_86 = arith.constant 0 : index
    %c0_87 = arith.constant 0 : index
    %102 = vector.load %arg8[%c0_86, %c0_87] : memref<128x8xf32, #tpu.memory_space<vmem>>, vector<128x8xf32>
    %cst_88 = arith.constant dense<0.000000e+00> : vector<1x8xf32>
    %103 = tpu.matmul %101, %102, %cst_88 {dimension_numbers = #tpu.dot_dimension_numbers<[1], [0], [0], [1], [0, 0, 1, 1], [], []>} : vector<1x128xf32>, vector<128x8xf32>, vector<1x8xf32> -> vector<1x8xf32>
    %c0_89 = arith.constant 0 : index
    %c0_90 = arith.constant 0 : index
    %104 = vector.load %arg9[%c0_89, %c0_90] : memref<1x8xf32, #tpu.memory_space<vmem>>, vector<1x8xf32>
    %105 = arith.addf %103, %104 : vector<1x8xf32>
    %cst_91 = arith.constant 0.000000e+00 : f32
    %106 = vector.broadcast %cst_91 : f32 to vector<1x8xf32>
    %107 = arith.maximumf %105, %106 : vector<1x8xf32>
    %c0_92 = arith.constant 0 : index
    %c0_93 = arith.constant 0 : index
    %108 = vector.load %arg10[%c0_92, %c0_93] : memref<8x128xf32, #tpu.memory_space<vmem>>, vector<8x128xf32>
    %cst_94 = arith.constant dense<0.000000e+00> : vector<1x128xf32>
    %109 = tpu.matmul %107, %108, %cst_94 {dimension_numbers = #tpu.dot_dimension_numbers<[1], [0], [0], [1], [0, 0, 1, 1], [], []>} : vector<1x8xf32>, vector<8x128xf32>, vector<1x128xf32> -> vector<1x128xf32>
    %c0_95 = arith.constant 0 : index
    %c0_96 = arith.constant 0 : index
    %110 = vector.load %arg11[%c0_95, %c0_96] : memref<1x128xf32, #tpu.memory_space<vmem>>, vector<1x128xf32>
    %111 = arith.addf %109, %110 : vector<1x128xf32>
    %cst_97 = arith.constant 0.000000e+00 : f32
    %112 = vector.broadcast %cst_97 : f32 to vector<1x128xf32>
    %113 = arith.subf %112, %111 : vector<1x128xf32>
    %114 = math.exp %113 : vector<1x128xf32>
    %cst_98 = arith.constant 1.000000e+00 : f32
    %115 = vector.broadcast %cst_98 : f32 to vector<1x128xf32>
    %116 = arith.addf %115, %114 : vector<1x128xf32>
    %cst_99 = arith.constant 1.000000e+00 : f32
    %117 = vector.broadcast %cst_99 : f32 to vector<1x128xf32>
    %118 = arith.divf %117, %116 : vector<1x128xf32>
    %119 = vector.broadcast %118 : vector<1x128xf32> to vector<256x128xf32>
    %120 = arith.mulf %97, %119 : vector<256x128xf32>
    %121 = arith.addf %120, %2 : vector<256x128xf32>
    %122 = vector.shape_cast %121 : vector<256x128xf32> to vector<16x16x128xf32>
    %c0_100 = arith.constant 0 : index
    %c0_101 = arith.constant 0 : index
    %c0_102 = arith.constant 0 : index
    %c0_103 = arith.constant 0 : index
    %123 = vector.load %arg12[%c0_100, %c0_101, %c0_102, %c0_103] : memref<1x16x16x128xf32, #tpu.memory_space<vmem>>, vector<1x16x16x128xf32>
    %124 = vector.shape_cast %123 : vector<1x16x16x128xf32> to vector<16x16x128xf32>
    %125 = vector.shape_cast %122 : vector<16x16x128xf32> to vector<1x16x16x128xf32>
    tpu.vector_store %arg12[%c0_100, %c0_101, %c0_102, %c0_103], %125 {strides = array<i32>} : memref<1x16x16x128xf32, #tpu.memory_space<vmem>>, vector<1x16x16x128xf32>,
    return
  }
  func.func @transform_0(%arg0: i32) -> (i32, i32, i32, i32) {
    %c0_i32 = arith.constant 0 : i32
    %c0_i32_0 = arith.constant 0 : i32
    %c0_i32_1 = arith.constant 0 : i32
    %c0_i32_2 = arith.constant 0 : i32
    return %arg0, %c0_i32, %c0_i32_0, %c0_i32_1 : i32, i32, i32, i32
  }
  func.func @transform_1(%arg0: i32) -> (i32, i32) {
    %c0_i32 = arith.constant 0 : i32
    %c0_i32_0 = arith.constant 0 : i32
    %c0_i32_1 = arith.constant 0 : i32
    return %c0_i32, %c0_i32_0 : i32, i32
  }
  func.func @transform_2(%arg0: i32) -> (i32, i32) {
    %c0_i32 = arith.constant 0 : i32
    %c0_i32_0 = arith.constant 0 : i32
    %c0_i32_1 = arith.constant 0 : i32
    return %c0_i32, %c0_i32_0 : i32, i32
  }
  func.func @transform_3(%arg0: i32) -> (i32, i32, i32, i32) {
    %c0_i32 = arith.constant 0 : i32
    %c0_i32_0 = arith.constant 0 : i32
    %c0_i32_1 = arith.constant 0 : i32
    %c0_i32_2 = arith.constant 0 : i32
    %c0_i32_3 = arith.constant 0 : i32
    return %c0_i32, %c0_i32_0, %c0_i32_1, %c0_i32_2 : i32, i32, i32, i32
  }
  func.func @transform_4(%arg0: i32) -> (i32, i32) {
    %c0_i32 = arith.constant 0 : i32
    %c0_i32_0 = arith.constant 0 : i32
    %c0_i32_1 = arith.constant 0 : i32
    return %c0_i32, %c0_i32_0 : i32, i32
  }
  func.func @transform_5(%arg0: i32) -> (i32, i32) {
    %c0_i32 = arith.constant 0 : i32
    %c0_i32_0 = arith.constant 0 : i32
    %c0_i32_1 = arith.constant 0 : i32
    return %c0_i32, %c0_i32_0 : i32, i32
  }
  func.func @transform_6(%arg0: i32) -> (i32, i32) {
    %c0_i32 = arith.constant 0 : i32
    %c0_i32_0 = arith.constant 0 : i32
    %c0_i32_1 = arith.constant 0 : i32
    return %c0_i32, %c0_i32_0 : i32, i32
  }
  func.func @transform_7(%arg0: i32) -> (i32, i32) {
    %c0_i32 = arith.constant 0 : i32
    %c0_i32_0 = arith.constant 0 : i32
    %c0_i32_1 = arith.constant 0 : i32
    return %c0_i32, %c0_i32_0 : i32, i32
  }
  func.func @transform_8(%arg0: i32) -> (i32, i32) {
    %c0_i32 = arith.constant 0 : i32
    %c0_i32_0 = arith.constant 0 : i32
    %c0_i32_1 = arith.constant 0 : i32
    return %c0_i32, %c0_i32_0 : i32, i32
  }
  func.func @transform_9(%arg0: i32) -> (i32, i32) {
    %c0_i32 = arith.constant 0 : i32
    %c0_i32_0 = arith.constant 0 : i32
    %c0_i32_1 = arith.constant 0 : i32
    return %c0_i32, %c0_i32_0 : i32, i32
  }
  func.func @transform_10(%arg0: i32) -> (i32, i32) {
    %c0_i32 = arith.constant 0 : i32
    %c0_i32_0 = arith.constant 0 : i32
    %c0_i32_1 = arith.constant 0 : i32
    return %c0_i32, %c0_i32_0 : i32, i32
  }
  func.func @transform_11(%arg0: i32) -> (i32, i32, i32, i32) {
    %c0_i32 = arith.constant 0 : i32
    %c0_i32_0 = arith.constant 0 : i32
    %c0_i32_1 = arith.constant 0 : i32
    %c0_i32_2 = arith.constant 0 : i32
    return %arg0, %c0_i32, %c0_i32_0, %c0_i32_1 : i32, i32, i32, i32
  }
}

</mosaic_0001>

<bundles_post_ra>
// kernel: resnext_forward.1
= control target key start
LH: loop header
LB: loop body
LE: loop exit
PB: predicated region body
PF: predicated region fallthrough
CT: control target
= control target key end

     0   :  { %16 = vsyncpa [#allocation4], 0  ;;  %s9033_s0 = inlined_call_operand.vmem [shape: f32[2,16,16,128], index: 0, kind: input, shape index: {}]   ;;  %s9034_s1 = inlined_call_operand.vmem [shape: f32[128,64], index: 1, kind: input, shape index: {}]   ;;  %s9035_s2 = inlined_call_operand.vmem [shape: f32[1,64], index: 2, kind: input, shape index: {}]   ;;  %s9036_s3 = inlined_call_operand.vmem [shape: f32[3,3,64,64], index: 3, kind: input, shape index: {}]   ;;  %s9037_s4 = inlined_call_operand.vmem [shape: f32[1,64], index: 4, kind: input, shape index: {}]   ;;  %s9038_s5 = inlined_call_operand.vmem [shape: f32[64,128], index: 5, kind: input, shape index: {}]   ;;  %s9039_s6 = inlined_call_operand.vmem [shape: f32[1,128], index: 6, kind: input, shape index: {}]   ;;  %s9040_s7 = inlined_call_operand.vmem [shape: f32[128,8], index: 7, kind: input, shape index: {}]   ;;  %s9041_s8 = inlined_call_operand.vmem [shape: f32[1,8], index: 8, kind: input, shape index: {}]   ;;  %s9042_s9 = inlined_call_operand.vmem [shape: f32[8,128], index: 9, kind: input, shape index: {}]   ;;  %s9043_s10 = inlined_call_operand.vmem [shape: f32[1,128], index: 10, kind: input, shape index: {}]   ;;  %s9044_s11 = inlined_call_operand.hbm [shape: f32[2,16,16,128], index: 11, kind: output, shape index: {}]  }
   0x1   :  { %18 = vsyncpa [#allocation4 + $0x1], 0  ;;  %s7000_s17 = smov 0   ;;  %s7002_s18 = smov 0  }
   0x2   :  { %s7004_s19 = smov 0   ;;  %s7006_s20 = smov 0  }
   0x3 LB: > { %s7021_s21 = sadd.s32 4294967295, %s6932_s20   ;;  %s4627_s22 = sadd.s32 4294967294, %s6932_s20   ;;  %s6932_s20 = sphi %s7006_s20, %s9148_s20   ;;  %s6928_s19 = sphi %s7004_s19, %s9147_s19   ;;  %s6924_s18 = sphi %s7002_s18, %s9146_s18   ;;  %s6920_s17 = sphi %s7000_s17, %s9145_s17  }
   0x4   : > { %s7025_s23 = sadd.s32 1, %s6932_s20   ;;  %s267_s24 = sadd.s32 1, %s6928_s19 }
   0x5   : > { %s264_s25 = ssub.s32 %s6932_s20, %s7025_s23  ;;  %p277_p0 = scmp.ne.s32.totalorder %s6928_s19, %s6924_s18 }
   0x6   : > { %p265_p1 = scmp.eq.s32.totalorder %s264_s25, 0  ;;  %p278_p2 = scmp.eq.s32.totalorder %s7021_s21, 1 }
   0x7   : > { %p283_p3 = scmp.ne.s32.totalorder %s6924_s18, %s6920_s17  ;;  %p284_p4 = scmp.eq.s32.totalorder %s4627_s22, 1 }
   0x8   : > { %s7036_s26 = scalar_select %p265_p1, %s6928_s19, %s267_s24  }
   0x9   : > { %p7038_p5 = por %p278_p2, %p277_p0  ;;  %p7042_p6 = por %p284_p4, %p283_p3 }
   0xa   : > { %9080 = sst [smem:[#allocation6_spill]] %s7036_s26  ;;  %p4630_p7 = scmp.ge.s32.totalorder %s6932_s20, 1 }
   0xb   : > { %p340_p8 = scmp.lt.s32.totalorder %s6932_s20, 3 }
   0xd   : > { %p341_p9 = pnand %p4630_p7, %p340_p8 }
   0xf   : > { %344 = sbr.rel (%p341_p9) target bundleno = 1620 (0x654), region = 64 }
  0x16   : > { %v417_v0 = vld [vmem:[%s9034_s1] sm:$0xff]  ;;  %v418_v1 = vld [vmem:[%s9034_s1 + $0x8] sm:$0xff]  ;;  %v419_v2 = vld [vmem:[%s9034_s1 + $0x10] sm:$0xff]  ;;  %p380_p10 = scmp.lt.s32.totalorder %s7021_s21, 1  ;;  %vm761_vm0 = vcmask 523264   ;;  %vm770_vm1 = vcmask 516096  }
  0x17   : > { %v6256_v3 = vpack.c.bf16 %v418_v1, %v417_v0  ;;  %v420_v4 = vld [vmem:[%s9034_s1 + $0x18] sm:$0xff]  ;;  %v421_v6 = vld [vmem:[%s9034_s1 + $0x20] sm:$0xff]  ;;  %v422_v7 = vld [vmem:[%s9034_s1 + $0x28] sm:$0xff]  ;;  %v9045_v1 = vmov 0.0   ;;  %vm764_vm2 = vcmask 517120   ;;  %s377_s29 = sand.u32 1, %s6924_s18  }
  0x18   : > { %v6260_v5 = vpack.c.bf16 %v420_v4, %v419_v2  ;;  %s381_s12 = scalar_select %p380_p10, %s7021_s21, 1  ;;  %v6264_v8 = vpack.c.bf16 %v422_v7, %v421_v6  ;;  %v423_v9 = vld [vmem:[%s9034_s1 + $0x30] sm:$0xff]  ;;  %v424_v10 = vld [vmem:[%s9034_s1 + $0x38] sm:$0xff]  ;;  %v425_v13 = vld [vmem:[%s9034_s1 + $0x40] sm:$0xff]  ;;  %762 = vst.msk [vmem:[#allocation2] sm:$0xff] %vm761_vm0, %v9045_v1 }
  0x19   : > { %6257 = vmatprep.subr.bf16.mxu0 %v6256_v3  ;;  %v6268_v12 = vpack.c.bf16 %v424_v10, %v423_v9  ;;  %v426_v14 = vld [vmem:[%s9034_s1 + $0x48] sm:$0xff]  ;;  %v427_v16 = vld [vmem:[%s9034_s1 + $0x50] sm:$0xff]  ;;  %v428_v17 = vld [vmem:[%s9034_s1 + $0x58] sm:$0xff]  ;;  %763 = vst.msk [vmem:[#allocation2 + $0x8] sm:$0xff] %vm761_vm0, %v9045_v1  ;;  %s8853_s30 = sshll.u32 %s377_s29, 8  ;;  %s6937_s24 = smov [#allocation3]  }
  0x1a   : > { %6259 = vmatpush3.bf16.msra.mxu0 %v6256_v3  ;;  %s5027_s13 = sshll.u32 %s381_s12, 8  ;;  %v6272_v15 = vpack.c.bf16 %v426_v14, %v425_v13  ;;  %v6276_v18 = vpack.c.bf16 %v428_v17, %v427_v16  ;;  %v429_v19 = vld [vmem:[%s9034_s1 + $0x60] sm:$0xff]  ;;  %v430_v20 = vld [vmem:[%s9034_s1 + $0x68] sm:$0xff]  ;;  %v431_v22 = vld [vmem:[%s9034_s1 + $0x70] sm:$0xff]  ;;  %767 = vst.msk [vmem:[#allocation2 + $0x198] sm:$0xff] %vm761_vm0, %v9045_v1  ;;  %s8910_s12 = scalar_lea.vmem [#allocation3], %s8853_s30 }
  0x1b   : > { %6261 = vmatprep.subr.bf16.mxu0 %v6260_v5  ;;  %s7071_s16 = scalar_lea.vmem %s9033_s0, %s5027_s13  ;;  %v6280_v21 = vpack.c.bf16 %v430_v20, %v429_v19  ;;  %v432_v23 = vld [vmem:[%s9034_s1 + $0x78] sm:$0xff]  ;;  %v894_v25 = vld [vmem:[%s9036_s3] sm:$0xff]  ;;  %v895_v26 = vld [vmem:[%s9036_s3 + $0x8] sm:$0xff]  ;;  %768 = vst.msk [vmem:[#allocation2 + $0x1a0] sm:$0xff] %vm761_vm0, %v9045_v1  ;;  %s5028_s13 = sshll.u32 %s7021_s21, 12 }
  0x1c   : > { %v385_v11 = vld [vmem:[%s7071_s16] sm:$0xff]  ;;  %v6284_v24 = vpack.c.bf16 %v432_v23, %v431_v22  ;;  %v6288_v27 = vpack.c.bf16 %v895_v26, %v894_v25  ;;  %v386_v28 = vld [vmem:[%s7071_s16 + $0x8] sm:$0xff]  ;;  %v387_v29 = vld [vmem:[%s7071_s16 + $0x10] sm:$0xff]  ;;  %771 = vst.msk [vmem:[#allocation2] sm:$0x1] %vm770_vm1, %v9045_v1  ;;  %s4565_s26 = sshll.u32 %s8910_s12, 4  ;;  %s8964_s22 = scalar_lea.hbm %s9044_s11, %s5028_s13  ;;  %s8968_s26 = int_to_ptr.vmem [resolvable:$true] %s4565_s26 }
  0x1d   : > { %5528 = vmatprep.mubr.f32.mxu0 %v385_v11  ;;  %v388_v30 = vld [vmem:[%s7071_s16 + $0x18] sm:$0xff]  ;;  %v389_v31 = vld [vmem:[%s7071_s16 + $0x20] sm:$0xff]  ;;  %v390_v32 = vld [vmem:[%s7071_s16 + $0x28] sm:$0xff]  ;;  %772 = vst.msk [vmem:[#allocation2 + $0x18] sm:$0x1] %vm770_vm1, %v9045_v1  ;;  %s8992_s21 = scalar_lea.sflag [#allocation4], %s377_s29 }
  0x1e   : > { %6263 = vmatpush3.bf16.msra.mxu0 %v6260_v5  ;;  %v391_v33 = vld [vmem:[%s7071_s16 + $0x30] sm:$0xff]  ;;  %v392_v34 = vld [vmem:[%s7071_s16 + $0x38] sm:$0xff]  ;;  %v393_v35 = vld [vmem:[%s7071_s16 + $0x40] sm:$0xff]  ;;  %773 = vst.msk [vmem:[#allocation2 + $0x30] sm:$0x1] %vm770_vm1, %v9045_v1  ;;  %s6874_s25 = sshll.u32 %s6937_s24, 4  ;;  %s6875_s25 = int_to_ptr.vmem [resolvable:$false] %s6874_s25 }
  0x1f   : > { %6265 = vmatprep.subr.bf16.mxu0 %v6264_v8  ;;  %v394_v36 = vld [vmem:[%s7071_s16 + $0x48] sm:$0xff]  ;;  %v395_v37 = vld [vmem:[%s7071_s16 + $0x50] sm:$0xff]  ;;  %v396_v38 = vld [vmem:[%s7071_s16 + $0x58] sm:$0xff]  ;;  %774 = vst.msk [vmem:[#allocation2 + $0x48] sm:$0x1] %vm770_vm1, %v9045_v1  ;;  %s6876_s30 = scalar_lea.vmem %s6875_s25, 8192  ;;  %p6877_p0 = scmp.lt.s32.totalorder %s8968_s26, %s6875_s25 }
  0x20   : > { %v397_v39 = vld [vmem:[%s7071_s16 + $0x60] sm:$0xff]  ;;  %v398_v40 = vld [vmem:[%s7071_s16 + $0x68] sm:$0xff]  ;;  %v399_v41 = vld [vmem:[%s7071_s16 + $0x70] sm:$0xff]  ;;  %775 = vst.msk [vmem:[#allocation2 + $0x60] sm:$0x1] %vm770_vm1, %v9045_v1 }
  0x21   : > { %v400_v42 = vld [vmem:[%s7071_s16 + $0x78] sm:$0xff]  ;;  %v401_v43 = vld [vmem:[%s7071_s16 + $0x80] sm:$0xff]  ;;  %v402_v44 = vld [vmem:[%s7071_s16 + $0x88] sm:$0xff]  ;;  %776 = vst.msk [vmem:[#allocation2 + $0x78] sm:$0x1] %vm770_vm1, %v9045_v1 }
  0x22   : > { %6267 = vmatpush3.bf16.msra.mxu0 %v6264_v8  ;;  %v403_v45 = vld [vmem:[%s7071_s16 + $0x90] sm:$0xff]  ;;  %v404_v46 = vld [vmem:[%s7071_s16 + $0x98] sm:$0xff]  ;;  %v405_v47 = vld [vmem:[%s7071_s16 + $0xa0] sm:$0xff]  ;;  %777 = vst.msk [vmem:[#allocation2 + $0x90] sm:$0x1] %vm770_vm1, %v9045_v1 }
  0x23   : > { %6269 = vmatprep.subr.bf16.mxu0 %v6268_v12  ;;  %v406_v48 = vld [vmem:[%s7071_s16 + $0xa8] sm:$0xff]  ;;  %v407_v49 = vld [vmem:[%s7071_s16 + $0xb0] sm:$0xff]  ;;  %v408_v50 = vld [vmem:[%s7071_s16 + $0xb8] sm:$0xff]  ;;  %778 = vst.msk [vmem:[#allocation2 + $0xa8] sm:$0x1] %vm770_vm1, %v9045_v1 }
  0x24   : > { %v409_v51 = vld [vmem:[%s7071_s16 + $0xc0] sm:$0xff]  ;;  %v410_v52 = vld [vmem:[%s7071_s16 + $0xc8] sm:$0xff]  ;;  %v411_v53 = vld [vmem:[%s7071_s16 + $0xd0] sm:$0xff]  ;;  %779 = vst.msk [vmem:[#allocation2 + $0xc0] sm:$0x1] %vm770_vm1, %v9045_v1 }
  0x25   : > { %v412_v54 = vld [vmem:[%s7071_s16 + $0xd8] sm:$0xff]  ;;  %v413_v55 = vld [vmem:[%s7071_s16 + $0xe0] sm:$0xff]  ;;  %v414_v56 = vld [vmem:[%s7071_s16 + $0xe8] sm:$0xff]  ;;  %780 = vst.msk [vmem:[#allocation2 + $0xd8] sm:$0x1] %vm770_vm1, %v9045_v1 }
  0x26   : > { %6271 = vmatpush3.bf16.msra.mxu0 %v6268_v12  ;;  %v415_v57 = vld [vmem:[%s7071_s16 + $0xf0] sm:$0xff]  ;;  %v416_v58 = vld [vmem:[%s7071_s16 + $0xf8] sm:$0xff]  ;;  %v898_v62 = vld [vmem:[%s9036_s3 + $0x20] sm:$0xff]  ;;  %781 = vst.msk [vmem:[#allocation2 + $0xf0] sm:$0x1] %vm770_vm1, %v9045_v1 }
  0x27   : > { %6273 = vmatprep.subr.bf16.mxu0 %v6272_v15  ;;  %v896_v59 = vld [vmem:[%s9036_s3 + $0x10] sm:$0xff]  ;;  %v897_v60 = vld [vmem:[%s9036_s3 + $0x18] sm:$0xff]  ;;  %v899_v63 = vld [vmem:[%s9036_s3 + $0x28] sm:$0xff]  ;;  %782 = vst.msk [vmem:[#allocation2 + $0x108] sm:$0x1] %vm770_vm1, %v9045_v1 }
  0x28   : > { %v6292_v61 = vpack.c.bf16 %v897_v60, %v896_v59  ;;  %v6296_v0 = vpack.c.bf16 %v899_v63, %v898_v62  ;;  %783 = vst.msk [vmem:[#allocation2 + $0x120] sm:$0x1] %vm770_vm1, %v9045_v1  ;;  %784 = vst.msk [vmem:[#allocation2 + $0x138] sm:$0x1] %vm770_vm1, %v9045_v1  ;;  %v900_v2 = vld [vmem:[%s9036_s3 + $0x30] sm:$0xff]  ;;  %v901_v3 = vld [vmem:[%s9036_s3 + $0x38] sm:$0xff] }
  0x29   : > { %785 = vst.msk [vmem:[#allocation2 + $0x150] sm:$0x1] %vm770_vm1, %v9045_v1  ;;  %786 = vst.msk [vmem:[#allocation2 + $0x168] sm:$0x1] %vm770_vm1, %v9045_v1  ;;  %v6300_v4 = vpack.c.bf16 %v901_v3, %v900_v2  ;;  %v7235_v5 = vld [vmem:[#allocation2] sm:$0xff]  ;;  %v7239_v6 = vld [vmem:[#allocation2 + $0x8] sm:$0xff] }
  0x2a   : > { %6275 = vmatpush3.bf16.msra.mxu0 %v6272_v15  ;;  %787 = vst.msk [vmem:[#allocation2 + $0x180] sm:$0x1] %vm770_vm1, %v9045_v1  ;;  %790 = vst.msk [vmem:[#allocation2 + $0x29] sm:$0x1] %vm770_vm1, %v9045_v1  ;;  %v4748_v7 = vld [vmem:[%s9036_s3 + $0xc0] sm:$0xff]  ;;  %v4749_v8 = vld [vmem:[%s9036_s3 + $0xc8] sm:$0xff] }
  0x2b   : > { %6277 = vmatprep.subr.bf16.mxu0 %v6276_v18  ;;  %791 = vst.msk [vmem:[#allocation2 + $0x41] sm:$0x1] %vm770_vm1, %v9045_v1  ;;  %792 = vst.msk [vmem:[#allocation2 + $0x59] sm:$0x1] %vm770_vm1, %v9045_v1  ;;  %v7249_v9 = vpack.c.bf16 %v4749_v8, %v4748_v7  ;;  %v4750_v10 = vld [vmem:[%s9036_s3 + $0xd0] sm:$0xff]  ;;  %v4751_v11 = vld [vmem:[%s9036_s3 + $0xd8] sm:$0xff] }
  0x2c   : > { %793 = vst.msk [vmem:[#allocation2 + $0x71] sm:$0x1] %vm770_vm1, %v9045_v1  ;;  %794 = vst.msk [vmem:[#allocation2 + $0x89] sm:$0x1] %vm770_vm1, %v9045_v1  ;;  %v7259_v12 = vpack.c.bf16 %v4751_v11, %v4750_v10  ;;  %v4752_v13 = vld [vmem:[%s9036_s3 + $0xe0] sm:$0xff]  ;;  %v4753_v14 = vld [vmem:[%s9036_s3 + $0xe8] sm:$0xff] }
  0x2d   : > { %795 = vst.msk [vmem:[#allocation2 + $0xa1] sm:$0x1] %vm770_vm1, %v9045_v1  ;;  %796 = vst.msk [vmem:[#allocation2 + $0xb9] sm:$0x1] %vm770_vm1, %v9045_v1  ;;  %6472 = vmatprep.subr.bf16.mxu1 %v7249_v9  ;;  %v7269_v15 = vpack.c.bf16 %v4753_v14, %v4752_v13  ;;  %v4754_v16 = vld [vmem:[%s9036_s3 + $0xf0] sm:$0xff]  ;;  %v4755_v17 = vld [vmem:[%s9036_s3 + $0xf8] sm:$0xff] }
  0x2e   : > { %6279 = vmatpush3.bf16.msra.mxu0 %v6276_v18  ;;  %797 = vst.msk [vmem:[#allocation2 + $0xd1] sm:$0x1] %vm770_vm1, %v9045_v1  ;;  %798 = vst.msk [vmem:[#allocation2 + $0xe9] sm:$0x1] %vm770_vm1, %v9045_v1  ;;  %6476 = vmatpush3.bf16.msra.mxu1 %v7249_v9  ;;  %v7279_v18 = vpack.c.bf16 %v4755_v17, %v4754_v16  ;;  %v4788_v19 = vld [vmem:[%s9036_s3 + $0x100] sm:$0xff]  ;;  %v4789_v20 = vld [vmem:[%s9036_s3 + $0x108] sm:$0xff] }
  0x2f   : > { %6281 = vmatprep.subr.bf16.mxu0 %v6280_v21  ;;  %799 = vst.msk [vmem:[#allocation2 + $0x101] sm:$0x1] %vm770_vm1, %v9045_v1  ;;  %800 = vst.msk [vmem:[#allocation2 + $0x119] sm:$0x1] %vm770_vm1, %v9045_v1  ;;  %6473 = vmatprep.subr.bf16.mxu1 %v7259_v12  ;;  %v4668_v22 = vld [vmem:[%s9036_s3 + $0x40] sm:$0xff]  ;;  %v4669_v23 = vld [vmem:[%s9036_s3 + $0x48] sm:$0xff] }
  0x30   : > { %801 = vst.msk [vmem:[#allocation2 + $0x131] sm:$0x1] %vm770_vm1, %v9045_v1  ;;  %802 = vst.msk [vmem:[#allocation2 + $0x149] sm:$0x1] %vm770_vm1, %v9045_v1  ;;  %v4670_v25 = vld [vmem:[%s9036_s3 + $0x50] sm:$0xff]  ;;  %v4671_v26 = vld [vmem:[%s9036_s3 + $0x58] sm:$0xff] }
  0x31   : > { %803 = vst.msk [vmem:[#allocation2 + $0x161] sm:$0x1] %vm770_vm1, %v9045_v1  ;;  %804 = vst.msk [vmem:[#allocation2 + $0x179] sm:$0x1] %vm770_vm1, %v9045_v1 }
  0x32   : > { %6283 = vmatpush3.bf16.msra.mxu0 %v6280_v21  ;;  %805 = vst.msk [vmem:[#allocation2 + $0x191] sm:$0x1] %vm770_vm1, %v9045_v1  ;;  %788 = vst.msk [vmem:[#allocation2 + $0x198] sm:$0x1] %vm770_vm1, %v9045_v1  ;;  %6477 = vmatpush3.bf16.msra.mxu1 %v7259_v12  ;;  %v7289_v21 = vpack.c.bf16 %v4789_v20, %v4788_v19 }
  0x33   : > { %6285 = vmatprep.subr.bf16.mxu0 %v6284_v24  ;;  %6474 = vmatprep.subr.bf16.mxu1 %v7269_v15  ;;  %765 = vst.msk [vmem:[#allocation2 + $0x10] sm:$0x3] %vm764_vm2, %v9045_v1  ;;  %769 = vst.msk [vmem:[#allocation2 + $0x1a8] sm:$0x3] %vm764_vm2, %v9045_v1 }
  0x34   : > { %789 = vst.msk [vmem:[#allocation2 + $0x11] sm:$0x1] %vm770_vm1, %v9045_v1  ;;  %806 = vst.msk [vmem:[#allocation2 + $0x1a9] sm:$0x1] %vm770_vm1, %v9045_v1 }
  0x36   : > { %6287 = vmatpush3.bf16.msra.mxu0 %v6284_v24  ;;  %6478 = vmatpush3.bf16.msra.mxu1 %v7269_v15  ;;  %v6304_v24 = vpack.c.bf16 %v4669_v23, %v4668_v22 }
  0x37   : > { %6289 = vmatprep.subr.bf16.mxu0 %v6288_v27  ;;  %6475 = vmatprep.subr.bf16.mxu1 %v7279_v18 }
  0x39   : > { %5529 = vmatmul.mubr.f32.vlgmr.msra.gmra.mrb[0].mxu0 %v386_v28  ;;  %v4672_v28 = vld [vmem:[%s9036_s3 + $0x60] sm:$0xff] }
  0x3a   : > { %5531 = vmatprep.mubr.f32.mxu0 %v387_v29  ;;  %6291 = vmatpush3.bf16.msra.mxu0 %v6288_v27  ;;  %v6308_v27 = vpack.c.bf16 %v4671_v26, %v4670_v25  ;;  %v4673_v29 = vld [vmem:[%s9036_s3 + $0x68] sm:$0xff] }
  0x3b   : > { %6293 = vmatprep.subr.bf16.mxu0 %v6292_v61  ;;  %6479 = vmatpush3.bf16.msra.mxu1 %v7279_v18 }
  0x3c   : > { %6353 = vmatprep.subr.bf16.mxu1 %v7289_v21 }
  0x3d   : > { %5532 = vmatmul.mubr.f32.gmra.mrb[2].mxu0 %v388_v30  ;;  %v6312_v30 = vpack.c.bf16 %v4673_v29, %v4672_v28 }
  0x3e   : > { %5534 = vmatprep.mubr.f32.mxu0 %v389_v31  ;;  %6295 = vmatpush3.bf16.msra.mxu0 %v6292_v61  ;;  %v4674_v31 = vld [vmem:[%s9036_s3 + $0x70] sm:$0xff] }
  0x3f   : > { %6297 = vmatprep.subr.bf16.mxu0 %v6296_v0 }
  0x41   : > { %5535 = vmatmul.mubr.f32.gmra.mrb[4].mxu0 %v390_v32  ;;  %v4675_v32 = vld [vmem:[%s9036_s3 + $0x78] sm:$0xff] }
  0x42   : > { %5537 = vmatprep.mubr.f32.mxu0 %v391_v33  ;;  %6299 = vmatpush3.bf16.msra.mxu0 %v6296_v0  ;;  %v6316_v33 = vpack.c.bf16 %v4675_v32, %v4674_v31 }
  0x43   : > { %6301 = vmatprep.subr.bf16.mxu0 %v6300_v4 }
  0x45   : > { %5538 = vmatmul.mubr.f32.gmra.mrb[6].mxu0 %v392_v34  ;;  %v4708_v34 = vld [vmem:[%s9036_s3 + $0x80] sm:$0xff] }
  0x46   : > { %5540 = vmatprep.mubr.f32.mxu0 %v393_v35  ;;  %6303 = vmatpush3.bf16.msra.mxu0 %v6300_v4  ;;  %v4709_v35 = vld [vmem:[%s9036_s3 + $0x88] sm:$0xff] }
  0x47   : > { %6305 = vmatprep.subr.bf16.mxu0 %v6304_v24 }
  0x49   : > { %5541 = vmatmul.mubr.f32.gmra.mrb[8].mxu0 %v394_v36  ;;  %v7328_v36 = vpack.c.bf16 %v4709_v35, %v4708_v34 }
  0x4a   : > { %5543 = vmatprep.mubr.f32.mxu0 %v395_v37  ;;  %v7333_v37 = vld [vmem:[%s9035_s2] ss:$0 sm:$0xff] }
  0x4d   : > { %5544 = vmatmul.mubr.f32.gmra.mrb[10].mxu0 %v396_v38 }
  0x4e   : > { %5546 = vmatprep.mubr.f32.mxu0 %v397_v39 }
  0x51   : > { %5547 = vmatmul.mubr.f32.gmra.mrb[12].mxu0 %v398_v40 }
  0x52   : > { %5549 = vmatprep.mubr.f32.mxu0 %v399_v41 }
  0x55   : > { %5550 = vmatmul.mubr.f32.gmra.mrb[14].mxu0 %v400_v42 }
  0x56   : > { %5552 = vmatprep.mubr.f32.mxu0 %v401_v43 }
  0x59   : > { %5553 = vmatmul.mubr.f32.gmra.mrb[16].mxu0 %v402_v44 }
  0x5a   : > { %5555 = vmatprep.mubr.f32.mxu0 %v403_v45 }
  0x5d   : > { %5556 = vmatmul.mubr.f32.gmra.mrb[18].mxu0 %v404_v46 }
  0x5e   : > { %5558 = vmatprep.mubr.f32.mxu0 %v405_v47 }
  0x61   : > { %5559 = vmatmul.mubr.f32.gmra.mrb[20].mxu0 %v406_v48 }
  0x62   : > { %5561 = vmatprep.mubr.f32.mxu0 %v407_v49 }
  0x65   : > { %5562 = vmatmul.mubr.f32.gmra.mrb[22].mxu0 %v408_v50 }
  0x66   : > { %5564 = vmatprep.mubr.f32.mxu0 %v409_v51 }
  0x69   : > { %5565 = vmatmul.mubr.f32.gmra.mrb[24].mxu0 %v410_v52 }
  0x6a   : > { %5567 = vmatprep.mubr.f32.mxu0 %v411_v53 }
  0x6d   : > { %5568 = vmatmul.mubr.f32.gmra.mrb[26].mxu0 %v412_v54 }
  0x6e   : > { %5570 = vmatprep.mubr.f32.mxu0 %v413_v55 }
  0x71   : > { %5571 = vmatmul.mubr.f32.gmra.mrb[28].mxu0 %v414_v56 }
  0x72   : > { %5573 = vmatprep.mubr.f32.mxu0 %v415_v57 }
  0x75   : > { %5574 = vmatmul.mubr.f32.gmra.mrb[30].mxu0 %v416_v58 }
  0x76   : > { %5592 = vmatprep.mubr.msk.f32.mxu0 %vm761_vm0, %v7235_v5 }
  0x79   : > { %5593 = vmatmul.mubr.msk.f32.vlgmr.msra.gmra.mrb[32].mxu0 %vm761_vm0, %v7239_v6 }
  0x7a   : > { %6307 = vmatpush3.bf16.msra.mxu0 %v6304_v24 }
  0x7b   : > { %6309 = vmatprep.subr.bf16.mxu0 %v6308_v27 }
  0x7e   : > { %6311 = vmatpush3.bf16.msra.mxu0 %v6308_v27 }
  0x7f   : > { %6313 = vmatprep.subr.bf16.mxu0 %v6312_v30 }
  0x82   : > { %6315 = vmatpush3.bf16.msra.mxu0 %v6312_v30 }
  0x83   : > { %6317 = vmatprep.subr.bf16.mxu0 %v6316_v33 }
  0x86   : > { %6319 = vmatpush3.bf16.msra.mxu0 %v6316_v33 }
  0x87   : > { %6321 = vmatprep.subr.bf16.mxu0 %v7328_v36 }
 0x10c   : > { %v5530_v38 = vpop.f32.mrb[0].mxu0 }
 0x10d   : > { %v512_v39 = vadd.f32 %v5530_v38, %v7333_v37  ;;  %v506_v40 = vpop.f32.mrb[1].mxu0 }
 0x10e   : > { %v507_v41 = vadd.f32 %v7333_v37, %v506_v40 }
 0x10f   : > { %vm666_vm3 = vcmp.gt.f32.partialorder %v512_v39, 0.0  ;;  %v698_v42 = vmul.f32 0.01, %v512_v39 }
 0x110   : > { %vm665_vm4 = vcmp.gt.f32.partialorder %v507_v41, 0.0  ;;  %v697_v43 = vmul.f32 0.01, %v507_v41  ;;  %v5533_v44 = vpop.f32.mrb[2].mxu0 }
 0x111   : > { %v730_v45 = vsel %vm666_vm3, %v512_v39, %v698_v42  ;;  %v522_v46 = vadd.f32 %v5533_v44, %v7333_v37  ;;  %v516_v47 = vpop.f32.mrb[3].mxu0 }
 0x112   : > { %809 = vst.msk [vmem:[#allocation2 + $0x21] sm:$0xff] %vm761_vm0, %v730_v45  ;;  %v729_v48 = vsel %vm665_vm4, %v507_v41, %v697_v43  ;;  %v517_v49 = vadd.f32 %v7333_v37, %v516_v47 }
 0x113   : > { %808 = vst.msk [vmem:[#allocation2 + $0x19] sm:$0xff] %vm761_vm0, %v729_v48  ;;  %vm668_vm5 = vcmp.gt.f32.partialorder %v522_v46, 0.0  ;;  %v700_v50 = vmul.f32 0.01, %v522_v46 }
 0x114   : > { %vm667_vm6 = vcmp.gt.f32.partialorder %v517_v49, 0.0  ;;  %v699_v51 = vmul.f32 0.01, %v517_v49  ;;  %v5536_v52 = vpop.f32.mrb[4].mxu0 }
 0x115   : > { %v732_v53 = vsel %vm668_vm5, %v522_v46, %v700_v50  ;;  %v532_v54 = vadd.f32 %v5536_v52, %v7333_v37  ;;  %v526_v55 = vpop.f32.mrb[5].mxu0 }
 0x116   : > { %811 = vst.msk [vmem:[#allocation2 + $0x39] sm:$0xff] %vm761_vm0, %v732_v53  ;;  %v731_v56 = vsel %vm667_vm6, %v517_v49, %v699_v51  ;;  %v527_v57 = vadd.f32 %v7333_v37, %v526_v55  ;;  %v4790_v55 = vld [vmem:[%s9036_s3 + $0x110] sm:$0xff] }
 0x117   : > { %810 = vst.msk [vmem:[#allocation2 + $0x31] sm:$0xff] %vm761_vm0, %v731_v56  ;;  %vm670_vm7 = vcmp.gt.f32.partialorder %v532_v54, 0.0  ;;  %v702_v58 = vmul.f32 0.01, %v532_v54  ;;  %v4791_v56 = vld [vmem:[%s9036_s3 + $0x118] sm:$0xff] }
 0x118   : > { %vm669_vm8 = vcmp.gt.f32.partialorder %v527_v57, 0.0  ;;  %v701_v59 = vmul.f32 0.01, %v527_v57  ;;  %v5539_v60 = vpop.f32.mrb[6].mxu0 }
 0x119   : > { %v734_v61 = vsel %vm670_vm7, %v532_v54, %v702_v58  ;;  %v542_v62 = vadd.f32 %v5539_v60, %v7333_v37  ;;  %v536_v63 = vpop.f32.mrb[7].mxu0 }
 0x11a   : > { %813 = vst.msk [vmem:[#allocation2 + $0x51] sm:$0xff] %vm761_vm0, %v734_v61  ;;  %v733_v0 = vsel %vm669_vm8, %v527_v57, %v701_v59  ;;  %v537_v2 = vadd.f32 %v7333_v37, %v536_v63  ;;  %v7349_v3 = vld [vmem:[#allocation2 + $0x18] sm:$0xff]  ;;  %v7351_v4 = vld [vmem:[#allocation2 + $0x20] sm:$0xff] }
 0x11b   : > { %812 = vst.msk [vmem:[#allocation2 + $0x49] sm:$0xff] %vm761_vm0, %v733_v0  ;;  %vm672_vm9 = vcmp.gt.f32.partialorder %v542_v62, 0.0  ;;  %v704_v7 = vmul.f32 0.01, %v542_v62  ;;  %5595 = vmatprep.mubr.msk.f32.mxu0 %vm761_vm0, %v7349_v3 }
 0x11c   : > { %vm671_vm10 = vcmp.gt.f32.partialorder %v537_v2, 0.0  ;;  %v703_v8 = vmul.f32 0.01, %v537_v2  ;;  %v5542_v10 = vpop.f32.mrb[8].mxu0  ;;  %5596 = vmatmul.mubr.msk.f32.gmra.mrb[34].mxu0 %vm761_vm0, %v7351_v4 }
 0x11d   : > { %v736_v11 = vsel %vm672_vm9, %v542_v62, %v704_v7  ;;  %v552_v13 = vadd.f32 %v5542_v10, %v7333_v37  ;;  %v546_v14 = vpop.f32.mrb[9].mxu0  ;;  %v6356_v7 = vpack.c.bf16 %v4791_v56, %v4790_v55  ;;  %v4792_v10 = vld [vmem:[%s9036_s3 + $0x120] sm:$0xff] }
 0x11e   : > { %815 = vst.msk [vmem:[#allocation2 + $0x69] sm:$0xff] %vm761_vm0, %v736_v11  ;;  %v735_v16 = vsel %vm671_vm10, %v537_v2, %v703_v8  ;;  %v547_v17 = vadd.f32 %v7333_v37, %v546_v14  ;;  %v7361_v19 = vld [vmem:[#allocation2 + $0x30] sm:$0xff]  ;;  %v7363_v20 = vld [vmem:[#allocation2 + $0x38] sm:$0xff]  ;;  %v4793_v11 = vld [vmem:[%s9036_s3 + $0x128] sm:$0xff] }
 0x11f   : > { %814 = vst.msk [vmem:[#allocation2 + $0x61] sm:$0xff] %vm761_vm0, %v735_v16  ;;  %vm674_vm11 = vcmp.gt.f32.partialorder %v552_v13, 0.0  ;;  %v706_v22 = vmul.f32 0.01, %v552_v13  ;;  %5598 = vmatprep.mubr.msk.f32.mxu0 %vm761_vm0, %v7361_v19 }
 0x120   : > { %vm673_vm12 = vcmp.gt.f32.partialorder %v547_v17, 0.0  ;;  %v705_v23 = vmul.f32 0.01, %v547_v17  ;;  %v5545_v24 = vpop.f32.mrb[10].mxu0  ;;  %5599 = vmatmul.mubr.msk.f32.gmra.mrb[36].mxu0 %vm761_vm0, %v7363_v20 }
 0x121   : > { %v738_v25 = vsel %vm674_vm11, %v552_v13, %v706_v22  ;;  %v562_v26 = vadd.f32 %v5545_v24, %v7333_v37  ;;  %v556_v27 = vpop.f32.mrb[11].mxu0 }
 0x122   : > { %817 = vst.msk [vmem:[#allocation2 + $0x81] sm:$0xff] %vm761_vm0, %v738_v25  ;;  %v737_v28 = vsel %vm673_vm12, %v547_v17, %v705_v23  ;;  %v557_v29 = vadd.f32 %v7333_v37, %v556_v27  ;;  %v7373_v30 = vld [vmem:[#allocation2 + $0x48] sm:$0xff]  ;;  %v7375_v31 = vld [vmem:[#allocation2 + $0x50] sm:$0xff]  ;;  %v6360_v27 = vpack.c.bf16 %v4793_v11, %v4792_v10 }
 0x123   : > { %816 = vst.msk [vmem:[#allocation2 + $0x79] sm:$0xff] %vm761_vm0, %v737_v28  ;;  %vm676_vm13 = vcmp.gt.f32.partialorder %v562_v26, 0.0  ;;  %v708_v32 = vmul.f32 0.01, %v562_v26  ;;  %5601 = vmatprep.mubr.msk.f32.mxu0 %vm761_vm0, %v7373_v30 }
 0x124   : > { %vm675_vm14 = vcmp.gt.f32.partialorder %v557_v29, 0.0  ;;  %v707_v33 = vmul.f32 0.01, %v557_v29  ;;  %v5548_v34 = vpop.f32.mrb[12].mxu0  ;;  %5602 = vmatmul.mubr.msk.f32.gmra.mrb[38].mxu0 %vm761_vm0, %v7375_v31 }
 0x125   : > { %v740_v35 = vsel %vm676_vm13, %v562_v26, %v708_v32  ;;  %v572_v38 = vadd.f32 %v5548_v34, %v7333_v37  ;;  %v566_v39 = vpop.f32.mrb[13].mxu0 }
 0x126   : > { %819 = vst.msk [vmem:[#allocation2 + $0x99] sm:$0xff] %vm761_vm0, %v740_v35  ;;  %v739_v40 = vsel %vm675_vm14, %v557_v29, %v707_v33  ;;  %v567_v41 = vadd.f32 %v7333_v37, %v566_v39  ;;  %v7385_v42 = vld [vmem:[#allocation2 + $0x60] sm:$0xff]  ;;  %v7387_v43 = vld [vmem:[#allocation2 + $0x68] sm:$0xff]  ;;  %v4795_v29 = vld [vmem:[%s9036_s3 + $0x138] sm:$0xff] }
 0x127   : > { %818 = vst.msk [vmem:[#allocation2 + $0x91] sm:$0xff] %vm761_vm0, %v739_v40  ;;  %vm678_vm15 = vcmp.gt.f32.partialorder %v572_v38, 0.0  ;;  %v710_v44 = vmul.f32 0.01, %v572_v38  ;;  %5604 = vmatprep.mubr.msk.f32.mxu0 %vm761_vm0, %v7385_v42 }
 0x128   : > { %vm677_vm1 = vcmp.gt.f32.partialorder %v567_v41, 0.0  ;;  %v709_v45 = vmul.f32 0.01, %v567_v41  ;;  %v5551_v46 = vpop.f32.mrb[14].mxu0  ;;  %5605 = vmatmul.mubr.msk.f32.gmra.mrb[40].mxu0 %vm761_vm0, %v7387_v43 }
 0x129   : > { %v742_v47 = vsel %vm678_vm15, %v572_v38, %v710_v44  ;;  %v582_v48 = vadd.f32 %v5551_v46, %v7333_v37  ;;  %v576_v49 = vpop.f32.mrb[15].mxu0 }
 0x12a   : > { %821 = vst.msk [vmem:[#allocation2 + $0xb1] sm:$0xff] %vm761_vm0, %v742_v47  ;;  %v741_v50 = vsel %vm677_vm1, %v567_v41, %v709_v45  ;;  %v577_v51 = vadd.f32 %v7333_v37, %v576_v49  ;;  %v7397_v52 = vld [vmem:[#allocation2 + $0x78] sm:$0xff]  ;;  %v7399_v53 = vld [vmem:[#allocation2 + $0x80] sm:$0xff] }
 0x12b   : > { %820 = vst.msk [vmem:[#allocation2 + $0xa9] sm:$0xff] %vm761_vm0, %v741_v50  ;;  %vm680_vm2 = vcmp.gt.f32.partialorder %v582_v48, 0.0  ;;  %v712_v54 = vmul.f32 0.01, %v582_v48  ;;  %5607 = vmatprep.mubr.msk.f32.mxu0 %vm761_vm0, %v7397_v52  ;;  %v4828_v47 = vld [vmem:[%s9036_s3 + $0x140] sm:$0xff] }
 0x12c   : > { %vm679_vm3 = vcmp.gt.f32.partialorder %v577_v51, 0.0  ;;  %v711_v57 = vmul.f32 0.01, %v577_v51  ;;  %v5554_v58 = vpop.f32.mrb[16].mxu0  ;;  %5608 = vmatmul.mubr.msk.f32.gmra.mrb[42].mxu0 %vm761_vm0, %v7399_v53 }
 0x12d   : > { %v744_v59 = vsel %vm680_vm2, %v582_v48, %v712_v54  ;;  %v592_v60 = vadd.f32 %v5554_v58, %v7333_v37  ;;  %v586_v61 = vpop.f32.mrb[17].mxu0  ;;  %v4829_v48 = vld [vmem:[%s9036_s3 + $0x148] sm:$0xff] }
 0x12e   : > { %823 = vst.msk [vmem:[#allocation2 + $0xc9] sm:$0xff] %vm761_vm0, %v744_v59  ;;  %v743_v62 = vsel %vm679_vm3, %v577_v51, %v711_v57  ;;  %v587_v63 = vadd.f32 %v7333_v37, %v586_v61  ;;  %v7415_v0 = vld [vmem:[#allocation2 + $0x90] sm:$0xff]  ;;  %v7417_v2 = vld [vmem:[#allocation2 + $0x98] sm:$0xff] }
 0x12f   : > { %822 = vst.msk [vmem:[#allocation2 + $0xc1] sm:$0xff] %vm761_vm0, %v743_v62  ;;  %vm682_vm4 = vcmp.gt.f32.partialorder %v592_v60, 0.0  ;;  %v714_v8 = vmul.f32 0.01, %v592_v60  ;;  %5610 = vmatprep.mubr.msk.f32.mxu0 %vm761_vm0, %v7415_v0  ;;  %5799 = vmatprep.mubr.msk.f32.mxu1 %vm761_vm0, %v7415_v0 }
 0x130   : > { %vm681_vm5 = vcmp.gt.f32.partialorder %v587_v63, 0.0  ;;  %v713_v13 = vmul.f32 0.01, %v587_v63  ;;  %v5557_v14 = vpop.f32.mrb[18].mxu0  ;;  %5611 = vmatmul.mubr.msk.f32.gmra.mrb[44].mxu0 %vm761_vm0, %v7417_v2  ;;  %5800 = vmatmul.mubr.msk.f32.vlgmr.msra.gmra.mrb[0].mxu1 %vm761_vm0, %v7417_v2 }
 0x131   : > { %v746_v16 = vsel %vm682_vm4, %v592_v60, %v714_v8  ;;  %v602_v17 = vadd.f32 %v5557_v14, %v7333_v37  ;;  %6355 = vmatpush3.bf16.msra.mxu1 %v7289_v21  ;;  %v596_v22 = vpop.f32.mrb[19].mxu0  ;;  %v4794_v21 = vld [vmem:[%s9036_s3 + $0x130] sm:$0xff]  ;;  %v7486_v60 = vpack.c.bf16 %v4829_v48, %v4828_v47 }
 0x132   : > { %825 = vst.msk [vmem:[#allocation2 + $0xe1] sm:$0xff] %vm761_vm0, %v746_v16  ;;  %v745_v23 = vsel %vm681_vm5, %v587_v63, %v713_v13  ;;  %v597_v24 = vadd.f32 %v7333_v37, %v596_v22  ;;  %v7438_v25 = vld [vmem:[#allocation2 + $0xa8] sm:$0xff]  ;;  %v7440_v26 = vld [vmem:[#allocation2 + $0xb0] sm:$0xff]  ;;  %6357 = vmatprep.subr.bf16.mxu1 %v6356_v7  ;;  %v6364_v45 = vpack.c.bf16 %v4795_v29, %v4794_v21  ;;  %vm1246_vm5 = vcmask 1046528  }
 0x133   : > { %824 = vst.msk [vmem:[#allocation2 + $0xd9] sm:$0xff] %vm761_vm0, %v745_v23  ;;  %vm684_vm6 = vcmp.gt.f32.partialorder %v602_v17, 0.0  ;;  %v716_v28 = vmul.f32 0.01, %v602_v17  ;;  %5613 = vmatprep.mubr.msk.f32.mxu0 %vm761_vm0, %v7438_v25  ;;  %5802 = vmatprep.mubr.msk.f32.mxu1 %vm761_vm0, %v7438_v25 }
 0x134   : > { %vm683_vm7 = vcmp.gt.f32.partialorder %v597_v24, 0.0  ;;  %v715_v32 = vmul.f32 0.01, %v597_v24  ;;  %v5560_v33 = vpop.f32.mrb[20].mxu0  ;;  %5614 = vmatmul.mubr.msk.f32.gmra.mrb[46].mxu0 %vm761_vm0, %v7440_v26  ;;  %5803 = vmatmul.mubr.msk.f32.gmra.mrb[2].mxu1 %vm761_vm0, %v7440_v26 }
 0x135   : > { %v748_v34 = vsel %vm684_vm6, %v602_v17, %v716_v28  ;;  %v612_v35 = vadd.f32 %v5560_v33, %v7333_v37  ;;  %v606_v38 = vpop.f32.mrb[21].mxu0  ;;  %6359 = vmatpush3.bf16.msra.mxu1 %v6356_v7  ;;  %v7769_v1 = vld [vmem:[#allocation2 + $0xd0] sm:$0x3]  ;;  %vm1657_vm6 = vcmask 1045504  }
 0x136   : > { %827 = vst.msk [vmem:[#allocation2 + $0xf9] sm:$0xff] %vm761_vm0, %v748_v34  ;;  %v747_v39 = vsel %vm683_vm7, %v597_v24, %v715_v32  ;;  %v607_v40 = vadd.f32 %v7333_v37, %v606_v38  ;;  %v7460_v41 = vld [vmem:[#allocation2 + $0xc0] sm:$0xff]  ;;  %v7462_v44 = vld [vmem:[#allocation2 + $0xc8] sm:$0xff]  ;;  %6361 = vmatprep.subr.bf16.mxu1 %v6360_v27 }
 0x137   : > { %826 = vst.msk [vmem:[#allocation2 + $0xf1] sm:$0xff] %vm761_vm0, %v747_v39  ;;  %vm686_vm8 = vcmp.gt.f32.partialorder %v612_v35, 0.0  ;;  %v718_v46 = vmul.f32 0.01, %v612_v35  ;;  %5616 = vmatprep.mubr.msk.f32.mxu0 %vm761_vm0, %v7460_v41  ;;  %5805 = vmatprep.mubr.msk.f32.mxu1 %vm761_vm0, %v7460_v41 }
 0x138   : > { %vm685_vm9 = vcmp.gt.f32.partialorder %v607_v40, 0.0  ;;  %v717_v49 = vmul.f32 0.01, %v607_v40  ;;  %v5563_v50 = vpop.f32.mrb[22].mxu0  ;;  %5617 = vmatmul.mubr.msk.f32.gmra.mrb[48].mxu0 %vm761_vm0, %v7462_v44  ;;  %5806 = vmatmul.mubr.msk.f32.gmra.mrb[4].mxu1 %vm761_vm0, %v7462_v44 }
 0x139   : > { %v750_v51 = vsel %vm686_vm8, %v612_v35, %v718_v46  ;;  %v622_v54 = vadd.f32 %v5563_v50, %v7333_v37  ;;  %v616_v55 = vpop.f32.mrb[23].mxu0  ;;  %6363 = vmatpush3.bf16.msra.mxu1 %v6360_v27 }
 0x13a   : > { %829 = vst.msk [vmem:[#allocation2 + $0x111] sm:$0xff] %vm761_vm0, %v750_v51  ;;  %v749_v56 = vsel %vm685_vm9, %v607_v40, %v717_v49  ;;  %v617_v57 = vadd.f32 %v7333_v37, %v616_v55  ;;  %v7482_v58 = vld [vmem:[#allocation2 + $0xd8] sm:$0xff]  ;;  %v7484_v59 = vld [vmem:[#allocation2 + $0xe0] sm:$0xff]  ;;  %6365 = vmatprep.subr.bf16.mxu1 %v6364_v45 }
 0x13b   : > { %828 = vst.msk [vmem:[#allocation2 + $0x109] sm:$0xff] %vm761_vm0, %v749_v56  ;;  %vm688_vm10 = vcmp.gt.f32.partialorder %v622_v54, 0.0  ;;  %v720_v61 = vmul.f32 0.01, %v622_v54  ;;  %5619 = vmatprep.mubr.msk.f32.mxu0 %vm761_vm0, %v7482_v58  ;;  %5808 = vmatprep.mubr.msk.f32.mxu1 %vm761_vm0, %v7482_v58 }
 0x13c   : > { %vm687_vm11 = vcmp.gt.f32.partialorder %v617_v57, 0.0  ;;  %v719_v62 = vmul.f32 0.01, %v617_v57  ;;  %v5566_v63 = vpop.f32.mrb[24].mxu0  ;;  %5620 = vmatmul.mubr.msk.f32.gmra.mrb[50].mxu0 %vm761_vm0, %v7484_v59  ;;  %5809 = vmatmul.mubr.msk.f32.gmra.mrb[6].mxu1 %vm761_vm0, %v7484_v59 }
 0x13d   : > { %v752_v7 = vsel %vm688_vm10, %v622_v54, %v720_v61  ;;  %v632_v8 = vadd.f32 %v5566_v63, %v7333_v37  ;;  %v626_v10 = vpop.f32.mrb[25].mxu0  ;;  %6367 = vmatpush3.bf16.msra.mxu1 %v6364_v45 }
 0x13e   : > { %831 = vst.msk [vmem:[#allocation2 + $0x129] sm:$0xff] %vm761_vm0, %v752_v7  ;;  %v751_v11 = vsel %vm687_vm11, %v617_v57, %v719_v62  ;;  %v627_v13 = vadd.f32 %v7333_v37, %v626_v10  ;;  %v7500_v14 = vld [vmem:[#allocation2 + $0xf0] sm:$0xff]  ;;  %v7502_v16 = vld [vmem:[#allocation2 + $0xf8] sm:$0xff]  ;;  %6369 = vmatprep.subr.bf16.mxu1 %v7486_v60 }
 0x13f   : > { %830 = vst.msk [vmem:[#allocation2 + $0x121] sm:$0xff] %vm761_vm0, %v751_v11  ;;  %vm690_vm12 = vcmp.gt.f32.partialorder %v632_v8, 0.0  ;;  %v722_v17 = vmul.f32 0.01, %v632_v8  ;;  %5622 = vmatprep.mubr.msk.f32.mxu0 %vm761_vm0, %v7500_v14  ;;  %5811 = vmatprep.mubr.msk.f32.mxu1 %vm761_vm0, %v7500_v14  ;;  %v1247_v11 = vrot.slane %v7235_v5, 1 }
 0x140   : > { %vm689_vm13 = vcmp.gt.f32.partialorder %v627_v13, 0.0  ;;  %v721_v22 = vmul.f32 0.01, %v627_v13  ;;  %v5569_v23 = vpop.f32.mrb[26].mxu0  ;;  %5623 = vmatmul.mubr.msk.f32.gmra.mrb[52].mxu0 %vm761_vm0, %v7502_v16  ;;  %5812 = vmatmul.mubr.msk.f32.gmra.mrb[8].mxu1 %vm761_vm0, %v7502_v16 }
 0x141   : > { %v754_v24 = vsel %vm690_vm12, %v632_v8, %v722_v17  ;;  %v642_v27 = vadd.f32 %v5569_v23, %v7333_v37  ;;  %v636_v28 = vpop.f32.mrb[27].mxu0  ;;  %v1248_v23 = vrot.slane %v7239_v6, 1 }
 0x142   : > { %833 = vst.msk [vmem:[#allocation2 + $0x141] sm:$0xff] %vm761_vm0, %v754_v24  ;;  %v753_v21 = vsel %vm689_vm13, %v627_v13, %v721_v22  ;;  %v637_v29 = vadd.f32 %v7333_v37, %v636_v28  ;;  %v7517_v32 = vld [vmem:[#allocation2 + $0x108] sm:$0xff]  ;;  %v7519_v33 = vld [vmem:[#allocation2 + $0x110] sm:$0xff] }
 0x143   : > { %832 = vst.msk [vmem:[#allocation2 + $0x139] sm:$0xff] %vm761_vm0, %v753_v21  ;;  %vm692_vm14 = vcmp.gt.f32.partialorder %v642_v27, 0.0  ;;  %v724_v34 = vmul.f32 0.01, %v642_v27  ;;  %5625 = vmatprep.mubr.msk.f32.mxu0 %vm761_vm0, %v7517_v32  ;;  %5814 = vmatprep.mubr.msk.f32.mxu1 %vm761_vm0, %v7517_v32  ;;  %v7569_v24 = vld [vmem:[#allocation2 + $0x10] sm:$0x3]  ;;  %v1249_v28 = vsel %vm1246_vm5, %v1247_v11, %v1248_v23 }
 0x144   : > { %vm691_vm15 = vcmp.gt.f32.partialorder %v637_v29, 0.0  ;;  %v723_v35 = vmul.f32 0.01, %v637_v29  ;;  %v5572_v38 = vpop.f32.mrb[28].mxu0  ;;  %5626 = vmatmul.mubr.msk.f32.gmra.mrb[54].mxu0 %vm761_vm0, %v7519_v33  ;;  %5815 = vmatmul.mubr.msk.f32.gmra.mrb[10].mxu1 %vm761_vm0, %v7519_v33  ;;  %v1250_v5 = vrot.slane %v7569_v24, 1  ;;  %v1252_v21 = vrot.slane %v7349_v3, 1 }
 0x145   : > { %v756_v39 = vsel %vm692_vm14, %v642_v27, %v724_v34  ;;  %v652_v40 = vadd.f32 %v5572_v38, %v7333_v37  ;;  %v646_v45 = vpop.f32.mrb[29].mxu0  ;;  %v7596_v34 = vld [vmem:[#allocation2 + $0x28] sm:$0x3]  ;;  %v4711_v38 = vld [vmem:[%s9036_s3 + $0x98] sm:$0xff] }
 0x146   : > { %835 = vst.msk [vmem:[#allocation2 + $0x159] sm:$0xff] %vm761_vm0, %v756_v39  ;;  %v755_v46 = vsel %vm691_vm15, %v637_v29, %v723_v35  ;;  %v647_v47 = vadd.f32 %v7333_v37, %v646_v45  ;;  %v7533_v48 = vld [vmem:[#allocation2 + $0x120] sm:$0xff]  ;;  %v7535_v49 = vld [vmem:[#allocation2 + $0x128] sm:$0xff]  ;;  %v1253_v29 = vrot.slane %v7351_v4, 1  ;;  %v4710_v35 = vld [vmem:[%s9036_s3 + $0x90] sm:$0xff]  ;;  %v1251_v39 = vsel %vm1246_vm5, %v1248_v23, %v1250_v5 }
 0x147   : > { %834 = vst.msk [vmem:[#allocation2 + $0x151] sm:$0xff] %vm761_vm0, %v755_v46  ;;  %vm694_vm1 = vcmp.gt.f32.partialorder %v652_v40, 0.0  ;;  %v726_v50 = vmul.f32 0.01, %v652_v40  ;;  %5628 = vmatprep.mubr.msk.f32.mxu0 %vm761_vm0, %v7533_v48  ;;  %5817 = vmatprep.mubr.msk.f32.mxu1 %vm761_vm0, %v7533_v48  ;;  %v1255_v46 = vrot.slane %v7596_v34, 1  ;;  %v4832_v5 = vld [vmem:[%s9036_s3 + $0x160] sm:$0xff] }
 0x148   : > { %vm693_vm2 = vcmp.gt.f32.partialorder %v647_v47, 0.0  ;;  %v725_v51 = vmul.f32 0.01, %v647_v47  ;;  %v5575_v54 = vpop.f32.mrb[30].mxu0  ;;  %5629 = vmatmul.mubr.msk.f32.gmra.mrb[56].mxu0 %vm761_vm0, %v7535_v49  ;;  %5818 = vmatmul.mubr.msk.f32.gmra.mrb[12].mxu1 %vm761_vm0, %v7535_v49  ;;  %v7645_v23 = vld [vmem:[#allocation2 + $0x58] sm:$0x3] }
 0x149   : > { %v758_v55 = vsel %vm694_vm1, %v652_v40, %v726_v50  ;;  %v662_v56 = vadd.f32 %v5575_v54, %v7333_v37  ;;  %v656_v57 = vpop.f32.mrb[31].mxu0  ;;  %v4831_v50 = vld [vmem:[%s9036_s3 + $0x158] sm:$0xff]  ;;  %v1254_v54 = vsel %vm1246_vm5, %v1252_v21, %v1253_v29 }
 0x14a   : > { %837 = vst.msk [vmem:[#allocation2 + $0x171] sm:$0xff] %vm761_vm0, %v758_v55  ;;  %v757_v61 = vsel %vm693_vm2, %v647_v47, %v725_v51  ;;  %v657_v62 = vadd.f32 %v7333_v37, %v656_v57  ;;  %v7549_v63 = vld [vmem:[#allocation2 + $0x138] sm:$0xff]  ;;  %v7551_v7 = vld [vmem:[#allocation2 + $0x140] sm:$0xff]  ;;  %v4830_v47 = vld [vmem:[%s9036_s3 + $0x150] sm:$0xff]  ;;  %v6324_v51 = vpack.c.bf16 %v4711_v38, %v4710_v35  ;;  %v1257_v55 = vrot.slane %v7361_v19, 1 }
 0x14b   : > { %836 = vst.msk [vmem:[#allocation2 + $0x169] sm:$0xff] %vm761_vm0, %v757_v61  ;;  %vm696_vm3 = vcmp.gt.f32.partialorder %v662_v56, 0.0  ;;  %v728_v8 = vmul.f32 0.01, %v662_v56  ;;  %5631 = vmatprep.mubr.msk.f32.mxu0 %vm761_vm0, %v7549_v63  ;;  %5820 = vmatprep.mubr.msk.f32.mxu1 %vm761_vm0, %v7549_v63  ;;  %v7625_v57 = vld [vmem:[#allocation2 + $0x40] sm:$0x3]  ;;  %v6372_v61 = vpack.c.bf16 %v4831_v50, %v4830_v47 }
 0x14c   : > { %vm695_vm4 = vcmp.gt.f32.partialorder %v657_v62, 0.0  ;;  %v727_v10 = vmul.f32 0.01, %v657_v62  ;;  %5632 = vmatmul.mubr.msk.f32.gmra.mrb[58].mxu0 %vm761_vm0, %v7551_v7  ;;  %5821 = vmatmul.mubr.msk.f32.gmra.mrb[14].mxu1 %vm761_vm0, %v7551_v7  ;;  %v1265_v35 = vrot.slane %v7645_v23, 1  ;;  %v1267_v47 = vrot.slane %v7385_v42, 1 }
 0x14d   : > { %v760_v37 = vsel %vm696_vm3, %v662_v56, %v728_v8  ;;  %v1258_v56 = vrot.slane %v7363_v20, 1  ;;  %v1260_v8 = vrot.slane %v7625_v57, 1  ;;  %v1268_v50 = vrot.slane %v7387_v43, 1 }
 0x14e   : > { %839 = vst.msk [vmem:[#allocation2 + $0x189] sm:$0xff] %vm761_vm0, %v760_v37  ;;  %v759_v13 = vsel %vm695_vm4, %v657_v62, %v727_v10  ;;  %v7564_v17 = vld [vmem:[#allocation2 + $0x150] sm:$0xff]  ;;  %v7566_v22 = vld [vmem:[#allocation2 + $0x158] sm:$0xff]  ;;  %v1256_v62 = vsel %vm1246_vm5, %v1253_v29, %v1255_v46  ;;  %v4712_v10 = vld [vmem:[%s9036_s3 + $0xa0] sm:$0xff] }
 0x14f   : > { %838 = vst.msk [vmem:[#allocation2 + $0x181] sm:$0xff] %vm761_vm0, %v759_v13  ;;  %5634 = vmatprep.mubr.msk.f32.mxu0 %vm761_vm0, %v7564_v17  ;;  %5823 = vmatprep.mubr.msk.f32.mxu1 %vm761_vm0, %v7564_v17  ;;  %v4713_v37 = vld [vmem:[%s9036_s3 + $0xa8] sm:$0xff]  ;;  %v7641_v11 = vsel %vm1246_vm5, %v1257_v55, %v1258_v56  ;;  %v1263_v13 = vrot.slane %v7375_v31, 1  ;;  %v7659_v29 = vsel %vm1246_vm5, %v1258_v56, %v1260_v8  ;;  %v4835_v55 = vld [vmem:[%s9036_s3 + $0x178] sm:$0xff] }
 0x150   : > { %5635 = vmatmul.mubr.msk.f32.gmra.mrb[60].mxu0 %vm761_vm0, %v7566_v22  ;;  %5824 = vmatmul.mubr.msk.f32.gmra.mrb[16].mxu1 %vm761_vm0, %v7566_v22  ;;  %9086 = vst [vmem:[#allocation10_spill] sm:$0xff] %v7641_v11  ;;  %v6328_v21 = vpack.c.bf16 %v4713_v37, %v4712_v10  ;;  %9087 = vst [vmem:[#allocation11_spill] sm:$0xff] %v7659_v29  ;;  %v7698_v37 = vsel %vm1246_vm5, %v1267_v47, %v1268_v50  ;;  %v1278_v47 = vrot.slane %v7417_v2, 1 }
 0x151   : > { %9090 = vst [vmem:[#allocation14_spill] sm:$0xff] %v7698_v37 }
 0x152   : > { %v7581_v6 = vld [vmem:[#allocation2 + $0x168] sm:$0xff]  ;;  %v7583_v27 = vld [vmem:[#allocation2 + $0x170] sm:$0xff] }
 0x153   : > { %9083 = vst [vmem:[#allocation7_spill] sm:$0xff] %v7581_v6  ;;  %9084 = vst [vmem:[#allocation8_spill] sm:$0xff] %v7583_v27  ;;  %5637 = vmatprep.mubr.msk.f32.mxu0 %vm761_vm0, %v7581_v6  ;;  %5826 = vmatprep.mubr.msk.f32.mxu1 %vm761_vm0, %v7581_v6 }
 0x154   : > { %5638 = vmatmul.mubr.msk.f32.gmra.mrb[62].mxu0 %vm761_vm0, %v7583_v27  ;;  %5827 = vmatmul.mubr.msk.f32.gmra.mrb[18].mxu1 %vm761_vm0, %v7583_v27 }
 0x155   : > { %5656 = vmatprep.mubr.msk.f32.mxu0 %vm761_vm0, %v1249_v28  ;;  %v4833_v28 = vld [vmem:[%s9036_s3 + $0x168] sm:$0xff] }
 0x156   : > { %v7606_v40 = vld [vmem:[#allocation2 + $0x180] sm:$0xff]  ;;  %v7608_v45 = vld [vmem:[#allocation2 + $0x188] sm:$0xff]  ;;  %v6376_v38 = vpack.c.bf16 %v4833_v28, %v4832_v5 }
 0x157   : > { %9085 = vst [vmem:[#allocation9_spill] sm:$0xff] %v7608_v45  ;;  %5829 = vmatprep.mubr.msk.f32.mxu1 %vm761_vm0, %v7606_v40  ;;  %v4868_v5 = vld [vmem:[%s9036_s3 + $0x180] sm:$0xff]  ;;  %v4869_v28 = vld [vmem:[%s9036_s3 + $0x188] sm:$0xff] }
 0x158   : > { %5657 = vmatmul.mubr.msk.f32.vlgmr.msra.gmra.mrb[32].mxu0 %vm761_vm0, %v1251_v39  ;;  %5830 = vmatmul.mubr.msk.f32.gmra.mrb[20].mxu1 %vm761_vm0, %v7608_v45  ;;  %v4714_v39 = vld [vmem:[%s9036_s3 + $0xb0] sm:$0xff] }
 0x159   : > { %5659 = vmatprep.mubr.msk.f32.mxu0 %vm761_vm0, %v1254_v54  ;;  %5848 = vmatprep.mubr.msk.f32.mxu1 %vm761_vm0, %v1254_v54  ;;  %v4834_v54 = vld [vmem:[%s9036_s3 + $0x170] sm:$0xff] }
 0x15a   : > { %6323 = vmatpush3.bf16.msra.mxu0 %v7328_v36  ;;  %v1262_v36 = vrot.slane %v7373_v30, 1  ;;  %v6380_v10 = vpack.c.bf16 %v4835_v55, %v4834_v54 }
 0x15b   : > { %6325 = vmatprep.subr.bf16.mxu0 %v6324_v51 }
 0x15c   : > { %5660 = vmatmul.mubr.msk.f32.gmra.mrb[34].mxu0 %vm761_vm0, %v1256_v62  ;;  %5849 = vmatmul.mubr.msk.f32.vlgmr.msra.gmra.mrb[22].mxu1 %vm761_vm0, %v1256_v62  ;;  %v7673_v46 = vsel %vm1246_vm5, %v1262_v36, %v1263_v13  ;;  %v7690_v62 = vsel %vm1246_vm5, %v1263_v13, %v1265_v35  ;;  %v1273_v36 = vrot.slane %v7399_v53, 1  ;;  %v7702_v13 = vld [vmem:[#allocation2 + $0x88] sm:$0x3] }
 0x15d   : > { %6371 = vmatpush3.bf16.msra.mxu1 %v7486_v60  ;;  %5662 = vmatprep.mubr.msk.f32.mxu0 %vm761_vm0, %v7641_v11  ;;  %v4715_v60 = vld [vmem:[%s9036_s3 + $0xb8] sm:$0xff]  ;;  %9088 = vst [vmem:[#allocation12_spill] sm:$0xff] %v7673_v46  ;;  %9089 = vst [vmem:[#allocation13_spill] sm:$0xff] %v7690_v62  ;;  %v1275_v35 = vrot.slane %v7702_v13, 1 }
 0x15e   : > { %5851 = vmatprep.mubr.msk.f32.mxu1 %vm761_vm0, %v7641_v11  ;;  %6373 = vmatprep.subr.bf16.mxu1 %v6372_v61  ;;  %v6332_v56 = vpack.c.bf16 %v4715_v60, %v4714_v39  ;;  %v7718_v39 = vpack.c.bf16 %v4869_v28, %v4868_v5 }
 0x15f   : > { %6327 = vmatpush3.bf16.msra.mxu0 %v6324_v51  ;;  %v7677_v51 = vld [vmem:[#allocation2 + $0x70] sm:$0x3]  ;;  %v7737_v54 = vsel %vm1246_vm5, %v1273_v36, %v1275_v35  ;;  %v1287_v35 = vrot.slane %v7460_v41, 1 }
 0x160   : > { %5663 = vmatmul.mubr.msk.f32.gmra.mrb[36].mxu0 %vm761_vm0, %v7659_v29  ;;  %5852 = vmatmul.mubr.msk.f32.gmra.mrb[24].mxu1 %vm761_vm0, %v7659_v29  ;;  %v1270_v8 = vrot.slane %v7677_v51, 1  ;;  %9093 = vst [vmem:[#allocation17_spill] sm:$0xff] %v7737_v54  ;;  %v7902_v29 = vld [vmem:[#allocation2 + $0x178] sm:$0x3] }
 0x161   : > { %5665 = vmatprep.mubr.msk.f32.mxu0 %vm761_vm0, %v7673_v46  ;;  %5854 = vmatprep.mubr.msk.f32.mxu1 %vm761_vm0, %v7673_v46  ;;  %v7883_v46 = vld [vmem:[#allocation2 + $0x160] sm:$0x3] }
 0x162   : > { %6375 = vmatpush3.bf16.msra.mxu1 %v6372_v61  ;;  %6329 = vmatprep.subr.bf16.mxu0 %v6328_v21  ;;  %v1272_v61 = vrot.slane %v7397_v52, 1 }
 0x163   : > { %6377 = vmatprep.subr.bf16.mxu1 %v6376_v38  ;;  %6331 = vmatpush3.bf16.msra.mxu0 %v6328_v21  ;;  %v7715_v21 = vsel %vm1246_vm5, %v1268_v50, %v1270_v8  ;;  %v7729_v50 = vld [vmem:[#allocation2 + $0xa0] sm:$0x3]  ;;  %v1282_v8 = vrot.slane %v7438_v25, 1 }
 0x164   : > { %5666 = vmatmul.mubr.msk.f32.gmra.mrb[38].mxu0 %vm761_vm0, %v7690_v62  ;;  %5855 = vmatmul.mubr.msk.f32.gmra.mrb[26].mxu1 %vm761_vm0, %v7690_v62  ;;  %9091 = vst [vmem:[#allocation15_spill] sm:$0xff] %v7715_v21  ;;  %v7725_v60 = vsel %vm1246_vm5, %v1272_v61, %v1273_v36  ;;  %v1280_v55 = vrot.slane %v7729_v50, 1  ;;  %v7750_v61 = vld [vmem:[#allocation2 + $0xb8] sm:$0x3]  ;;  %v7864_v62 = vld [vmem:[#allocation2 + $0x148] sm:$0x3] }
 0x165   : > { %5668 = vmatprep.mubr.msk.f32.mxu0 %vm761_vm0, %v7698_v37  ;;  %5857 = vmatprep.mubr.msk.f32.mxu1 %vm761_vm0, %v7698_v37  ;;  %9092 = vst [vmem:[#allocation16_spill] sm:$0xff] %v7725_v60  ;;  %v1285_v5 = vrot.slane %v7750_v61, 1  ;;  %v7845_v37 = vld [vmem:[#allocation2 + $0x130] sm:$0x3] }
 0x166   : > { %6379 = vmatpush3.bf16.msra.mxu1 %v6376_v38  ;;  %6333 = vmatprep.subr.bf16.mxu0 %v6332_v56  ;;  %v1277_v38 = vrot.slane %v7415_v0, 1  ;;  %v7757_v36 = vsel %vm1246_vm5, %v1278_v47, %v1280_v55  ;;  %v1290_v55 = vrot.slane %v7769_v1, 1 }
 0x167   : > { %6381 = vmatprep.subr.bf16.mxu1 %v6380_v10  ;;  %6335 = vmatpush3.bf16.msra.mxu0 %v6332_v56  ;;  %9095 = vst [vmem:[#allocation19_spill] sm:$0xff] %v7757_v36 }
 0x168   : > { %5669 = vmatmul.mubr.msk.f32.gmra.mrb[40].mxu0 %vm761_vm0, %v7715_v21  ;;  %5858 = vmatmul.mubr.msk.f32.gmra.mrb[28].mxu1 %vm761_vm0, %v7715_v21  ;;  %v7746_v56 = vsel %vm1246_vm5, %v1277_v38, %v1278_v47  ;;  %v1288_v38 = vrot.slane %v7462_v44, 1  ;;  %v7826_v21 = vld [vmem:[#allocation2 + $0x118] sm:$0x3] }
 0x169   : > { %5671 = vmatprep.mubr.msk.f32.mxu0 %vm761_vm0, %v7725_v60  ;;  %5860 = vmatprep.mubr.msk.f32.mxu1 %vm761_vm0, %v7725_v60  ;;  %9094 = vst [vmem:[#allocation18_spill] sm:$0xff] %v7746_v56  ;;  %v7807_v60 = vld [vmem:[#allocation2 + $0x100] sm:$0x3] }
 0x16a   : > { %6383 = vmatpush3.bf16.msra.mxu1 %v6380_v10  ;;  %6337 = vmatprep.subr.bf16.mxu0 %v7249_v9  ;;  %v1283_v10 = vrot.slane %v7440_v26, 1 }
 0x16b   : > { %6385 = vmatprep.subr.bf16.mxu1 %v7718_v39 }
 0x16c   : > { %5672 = vmatmul.mubr.msk.f32.gmra.mrb[42].mxu0 %vm761_vm0, %v7737_v54  ;;  %5861 = vmatmul.mubr.msk.f32.gmra.mrb[30].mxu1 %vm761_vm0, %v7737_v54  ;;  %v7765_v28 = vsel %vm1246_vm5, %v1282_v8, %v1283_v10  ;;  %v7776_v47 = vsel %vm1246_vm5, %v1283_v10, %v1285_v5  ;;  %v7784_v8 = vsel %vm1246_vm5, %v1287_v35, %v1288_v38  ;;  %v7788_v54 = vld [vmem:[#allocation2 + $0xe8] sm:$0x3] }
 0x16d   : > { %5674 = vmatprep.mubr.msk.f32.mxu0 %vm761_vm0, %v7746_v56  ;;  %5863 = vmatprep.mubr.msk.f32.mxu1 %vm761_vm0, %v7746_v56  ;;  %9096 = vst [vmem:[#allocation20_spill] sm:$0xff] %v7765_v28  ;;  %9097 = vst [vmem:[#allocation21_spill] sm:$0xff] %v7776_v47  ;;  %v1293_v56 = vrot.slane %v7484_v59, 1  ;;  %v7795_v10 = vsel %vm1246_vm5, %v1288_v38, %v1290_v55  ;;  %v1295_v5 = vrot.slane %v7788_v54, 1  ;;  %v1300_v55 = vrot.slane %v7807_v60, 1 }
 0x16e   : > { %9098 = vst [vmem:[#allocation22_spill] sm:$0xff] %v7784_v8  ;;  %9099 = vst [vmem:[#allocation23_spill] sm:$0xff] %v7795_v10 }
 0x16f   : > { %v7814_v38 = vsel %vm1246_vm5, %v1293_v56, %v1295_v5  ;;  %v1305_v5 = vrot.slane %v7826_v21, 1 }
 0x170   : > { %5675 = vmatmul.mubr.msk.f32.gmra.mrb[44].mxu0 %vm761_vm0, %v7757_v36  ;;  %5864 = vmatmul.mubr.msk.f32.gmra.mrb[0].mxu1 %vm761_vm0, %v7757_v36  ;;  %v1292_v36 = vrot.slane %v7482_v58, 1  ;;  %9101 = vst [vmem:[#allocation25_spill] sm:$0xff] %v7814_v38 }
 0x171   : > { %5677 = vmatprep.mubr.msk.f32.mxu0 %vm761_vm0, %v7765_v28  ;;  %5866 = vmatprep.mubr.msk.f32.mxu1 %vm761_vm0, %v7765_v28  ;;  %v1298_v28 = vrot.slane %v7502_v16, 1 }
 0x172   : > { %v7803_v35 = vsel %vm1246_vm5, %v1292_v36, %v1293_v56 }
 0x173   : > { %9100 = vst [vmem:[#allocation24_spill] sm:$0xff] %v7803_v35  ;;  %v7833_v56 = vsel %vm1246_vm5, %v1298_v28, %v1300_v55  ;;  %v1310_v55 = vrot.slane %v7845_v37, 1 }
 0x174   : > { %5678 = vmatmul.mubr.msk.f32.gmra.mrb[46].mxu0 %vm761_vm0, %v7776_v47  ;;  %5867 = vmatmul.mubr.msk.f32.gmra.mrb[2].mxu1 %vm761_vm0, %v7776_v47  ;;  %v1297_v47 = vrot.slane %v7500_v14, 1  ;;  %9103 = vst [vmem:[#allocation27_spill] sm:$0xff] %v7833_v56 }
 0x175   : > { %5680 = vmatprep.mubr.msk.f32.mxu0 %vm761_vm0, %v7784_v8  ;;  %5869 = vmatprep.mubr.msk.f32.mxu1 %vm761_vm0, %v7784_v8  ;;  %v1303_v8 = vrot.slane %v7519_v33, 1 }
 0x176   : > { %v7822_v36 = vsel %vm1246_vm5, %v1297_v47, %v1298_v28 }
 0x177   : > { %9102 = vst [vmem:[#allocation26_spill] sm:$0xff] %v7822_v36  ;;  %v7852_v28 = vsel %vm1246_vm5, %v1303_v8, %v1305_v5  ;;  %v1315_v5 = vrot.slane %v7864_v62, 1 }
 0x178   : > { %5681 = vmatmul.mubr.msk.f32.gmra.mrb[48].mxu0 %vm761_vm0, %v7795_v10  ;;  %5870 = vmatmul.mubr.msk.f32.gmra.mrb[4].mxu1 %vm761_vm0, %v7795_v10  ;;  %v1302_v10 = vrot.slane %v7517_v32, 1  ;;  %9105 = vst [vmem:[#allocation29_spill] sm:$0xff] %v7852_v28 }
 0x179   : > { %5683 = vmatprep.mubr.msk.f32.mxu0 %vm761_vm0, %v7803_v35  ;;  %5872 = vmatprep.mubr.msk.f32.mxu1 %vm761_vm0, %v7803_v35  ;;  %v1308_v35 = vrot.slane %v7535_v49, 1 }
 0x17a   : > { %v7841_v47 = vsel %vm1246_vm5, %v1302_v10, %v1303_v8 }
 0x17b   : > { %9104 = vst [vmem:[#allocation28_spill] sm:$0xff] %v7841_v47  ;;  %v7871_v8 = vsel %vm1246_vm5, %v1308_v35, %v1310_v55  ;;  %v1320_v55 = vrot.slane %v7883_v46, 1 }
 0x17c   : > { %5684 = vmatmul.mubr.msk.f32.gmra.mrb[50].mxu0 %vm761_vm0, %v7814_v38  ;;  %5873 = vmatmul.mubr.msk.f32.gmra.mrb[6].mxu1 %vm761_vm0, %v7814_v38  ;;  %v1307_v38 = vrot.slane %v7533_v48, 1  ;;  %9107 = vst [vmem:[#allocation31_spill] sm:$0xff] %v7871_v8 }
 0x17d   : > { %5686 = vmatprep.mubr.msk.f32.mxu0 %vm761_vm0, %v7822_v36  ;;  %5875 = vmatprep.mubr.msk.f32.mxu1 %vm761_vm0, %v7822_v36  ;;  %v1313_v36 = vrot.slane %v7551_v7, 1 }
 0x17e   : > { %v7860_v10 = vsel %vm1246_vm5, %v1307_v38, %v1308_v35 }
 0x17f   : > { %9106 = vst [vmem:[#allocation30_spill] sm:$0xff] %v7860_v10  ;;  %v7890_v35 = vsel %vm1246_vm5, %v1313_v36, %v1315_v5 }
 0x180   : > { %5687 = vmatmul.mubr.msk.f32.gmra.mrb[52].mxu0 %vm761_vm0, %v7833_v56  ;;  %5876 = vmatmul.mubr.msk.f32.gmra.mrb[8].mxu1 %vm761_vm0, %v7833_v56  ;;  %v1312_v56 = vrot.slane %v7549_v63, 1  ;;  %9109 = vst [vmem:[#allocation33_spill] sm:$0xff] %v7890_v35 }
 0x181   : > { %5689 = vmatprep.mubr.msk.f32.mxu0 %vm761_vm0, %v7841_v47  ;;  %5878 = vmatprep.mubr.msk.f32.mxu1 %vm761_vm0, %v7841_v47  ;;  %v1318_v47 = vrot.slane %v7566_v22, 1 }
 0x182   : > { %v7879_v38 = vsel %vm1246_vm5, %v1312_v56, %v1313_v36  ;;  %v6816_v36 = vld [vmem:[#allocation2] sm:$0xff] }
 0x183   : > { %9108 = vst [vmem:[#allocation32_spill] sm:$0xff] %v7879_v38  ;;  %v1658_v5 = vrot.slane %v6816_v36, 2  ;;  %v7921_v36 = vld [vmem:[#allocation2 + $0x190] sm:$0x3] }
 0x184   : > { %5690 = vmatmul.mubr.msk.f32.gmra.mrb[54].mxu0 %vm761_vm0, %v7852_v28  ;;  %5879 = vmatmul.mubr.msk.f32.gmra.mrb[10].mxu1 %vm761_vm0, %v7852_v28  ;;  %v1317_v28 = vrot.slane %v7564_v17, 1 }
 0x185   : > { %5692 = vmatprep.mubr.msk.f32.mxu0 %vm761_vm0, %v7860_v10  ;;  %5881 = vmatprep.mubr.msk.f32.mxu1 %vm761_vm0, %v7860_v10  ;;  %v1323_v10 = vrot.slane %v7583_v27, 1  ;;  %v2342_v27 = vrot.slane %v7608_v45, 1  ;;  %v1664_v45 = vrot.slane %v7351_v4, 2  ;;  %v1666_v4 = vrot.slane %v7596_v34, 2 }
 0x186   : > { %v7898_v56 = vsel %vm1246_vm5, %v1317_v28, %v1318_v47  ;;  %v1325_v28 = vrot.slane %v7902_v29, 1 }
 0x187   : > { %9110 = vst [vmem:[#allocation34_spill] sm:$0xff] %v7898_v56 }
 0x188   : > { %5693 = vmatmul.mubr.msk.f32.gmra.mrb[56].mxu0 %vm761_vm0, %v7871_v8  ;;  %5882 = vmatmul.mubr.msk.f32.gmra.mrb[12].mxu1 %vm761_vm0, %v7871_v8  ;;  %v1322_v8 = vrot.slane %v7581_v6, 1  ;;  %v2341_v6 = vrot.slane %v7606_v40, 1 }
 0x189   : > { %5695 = vmatprep.mubr.msk.f32.mxu0 %vm761_vm0, %v7879_v38  ;;  %5884 = vmatprep.mubr.msk.f32.mxu1 %vm761_vm0, %v7879_v38  ;;  %v6817_v38 = vld [vmem:[#allocation2 + $0x8] sm:$0xff] }
 0x18a   : > { %v1659_v11 = vrot.slane %v6817_v38, 2 }
 0x18c   : > { %5696 = vmatmul.mubr.msk.f32.gmra.mrb[58].mxu0 %vm761_vm0, %v7890_v35  ;;  %5885 = vmatmul.mubr.msk.f32.gmra.mrb[14].mxu1 %vm761_vm0, %v7890_v35  ;;  %v7909_v35 = vsel %vm1246_vm5, %v1318_v47, %v1320_v55  ;;  %v1661_v47 = vrot.slane %v7569_v24, 2  ;;  %v1660_v38 = vsel %vm1657_vm6, %v1658_v5, %v1659_v11  ;;  %v7930_v55 = vsel %vm1246_vm5, %v1323_v10, %v1325_v28 }
 0x18d   : > { %5698 = vmatprep.mubr.msk.f32.mxu0 %vm761_vm0, %v7898_v56  ;;  %5887 = vmatprep.mubr.msk.f32.mxu1 %vm761_vm0, %v7898_v56  ;;  %9111 = vst [vmem:[#allocation35_spill] sm:$0xff] %v7909_v35  ;;  %v7919_v56 = vsel %vm1246_vm5, %v1322_v8, %v1323_v10  ;;  %v1663_v8 = vrot.slane %v7349_v3, 2  ;;  %v4870_v10 = vld [vmem:[%s9036_s3 + $0x190] sm:$0xff]  ;;  %v1667_v5 = vsel %vm1657_vm6, %v1664_v45, %v1666_v4  ;;  %v1671_v28 = vrot.slane %v7625_v57, 2 }
 0x18e   : > { %9112 = vst [vmem:[#allocation36_spill] sm:$0xff] %v7919_v56  ;;  %v1662_v24 = vsel %vm1657_vm6, %v1659_v11, %v1661_v47  ;;  %v1674_v47 = vrot.slane %v7375_v31, 2  ;;  %v1676_v31 = vrot.slane %v7645_v23, 2  ;;  %v4874_v23 = vld [vmem:[%s9036_s3 + $0x1b0] sm:$0xff] }
 0x18f   : > { %v1665_v11 = vsel %vm1657_vm6, %v1663_v8, %v1664_v45  ;;  %v4873_v45 = vld [vmem:[%s9036_s3 + $0x1a8] sm:$0xff]  ;;  %v1679_v8 = vrot.slane %v7387_v43, 2  ;;  %v1681_v43 = vrot.slane %v7677_v51, 2  ;;  %v4908_v51 = vld [vmem:[%s9036_s3 + $0x1c0] sm:$0xff] }
 0x190   : > { %5699 = vmatmul.mubr.msk.f32.gmra.mrb[60].mxu0 %vm761_vm0, %v7909_v35  ;;  %5888 = vmatmul.mubr.msk.f32.gmra.mrb[16].mxu1 %vm761_vm0, %v7909_v35  ;;  %v2344_v35 = vrot.slane %v7921_v36, 1 }
 0x191   : > { %5701 = vmatprep.mubr.msk.f32.mxu0 %vm761_vm0, %v7919_v56  ;;  %5890 = vmatprep.mubr.msk.f32.mxu1 %vm761_vm0, %v7919_v56  ;;  %v7940_v56 = vsel %vm1246_vm5, %v2341_v6, %v2342_v27  ;;  %v4871_v6 = vld [vmem:[%s9036_s3 + $0x198] sm:$0xff] }
 0x192   : > { %v7947_v3 = vsel %vm1246_vm5, %v2342_v27, %v2344_v35  ;;  %v1668_v27 = vrot.slane %v7361_v19, 2  ;;  %v1669_v35 = vrot.slane %v7363_v20, 2  ;;  %v6388_v34 = vpack.c.bf16 %v4871_v6, %v4870_v10 }
 0x193   : > { %v1673_v20 = vrot.slane %v7373_v30, 2  ;;  %v1683_v10 = vrot.slane %v7397_v52, 2  ;;  %v1684_v6 = vrot.slane %v7399_v53, 2  ;;  %v8037_v52 = vsel %vm1657_vm6, %v1679_v8, %v1681_v43 }
 0x194   : > { %5702 = vmatmul.mubr.msk.f32.gmra.mrb[62].mxu0 %vm761_vm0, %v7930_v55  ;;  %5891 = vmatmul.mubr.msk.f32.gmra.mrb[18].mxu1 %vm761_vm0, %v7930_v55  ;;  %v7971_v19 = vsel %vm1657_vm6, %v1668_v27, %v1669_v35  ;;  %v7987_v30 = vsel %vm1657_vm6, %v1669_v35, %v1671_v28  ;;  %v1686_v53 = vrot.slane %v7702_v13, 2  ;;  %v1688_v35 = vrot.slane %v7415_v0, 2 }
 0x195   : > { %5893 = vmatprep.mubr.msk.f32.mxu1 %vm761_vm0, %v7940_v56  ;;  %5720 = vmatprep.mubr.msk.f32.mxu0 %vm761_vm0, %v1660_v38  ;;  %v1678_v38 = vrot.slane %v7385_v42, 2  ;;  %v8012_v42 = vsel %vm1657_vm6, %v1674_v47, %v1676_v31  ;;  %v8048_v27 = vsel %vm1657_vm6, %v1683_v10, %v1684_v6  ;;  %v1691_v13 = vrot.slane %v7729_v50, 2 }
 0x196   : > { %v1696_v28 = vrot.slane %v7750_v61, 2  ;;  %v1709_v31 = vrot.slane %v7502_v16, 2  ;;  %v1713_v16 = vrot.slane %v7517_v32, 2  ;;  %v1719_v43 = vrot.slane %v7535_v49, 2 }
 0x197   : > { %v8021_v4 = vsel %vm1657_vm6, %v1678_v38, %v1679_v8  ;;  %v1714_v38 = vrot.slane %v7519_v33, 2  ;;  %v1716_v8 = vrot.slane %v7826_v21, 2 }
 0x198   : > { %5721 = vmatmul.mubr.msk.f32.vlgmr.msra.gmra.mrb[32].mxu0 %vm761_vm0, %v1662_v24  ;;  %5894 = vmatmul.mubr.msk.f32.gmra.mrb[20].mxu1 %vm761_vm0, %v7947_v3 }
 0x199   : > { %5723 = vmatprep.mubr.msk.f32.mxu0 %vm761_vm0, %v1665_v11  ;;  %5912 = vmatprep.mubr.msk.f32.mxu1 %vm761_vm0, %v1665_v11  ;;  %v8160_v21 = vsel %vm1657_vm6, %v1714_v38, %v1716_v8  ;;  %v4911_v8 = vld [vmem:[%s9036_s3 + $0x1d8] sm:$0xff] }
 0x19a   : > { %6339 = vmatpush3.bf16.msra.mxu0 %v7249_v9  ;;  %v4872_v9 = vld [vmem:[%s9036_s3 + $0x1a0] sm:$0xff] }
 0x19b   : > { %6341 = vmatprep.subr.bf16.mxu0 %v7259_v12  ;;  %v6392_v57 = vpack.c.bf16 %v4873_v45, %v4872_v9  ;;  %v1704_v9 = vrot.slane %v7484_v59, 2  ;;  %v1706_v45 = vrot.slane %v7788_v54, 2  ;;  %v1708_v59 = vrot.slane %v7500_v14, 2 }
 0x19c   : > { %5724 = vmatmul.mubr.msk.f32.gmra.mrb[34].mxu0 %vm761_vm0, %v1667_v5  ;;  %5913 = vmatmul.mubr.msk.f32.vlgmr.msra.gmra.mrb[22].mxu1 %vm761_vm0, %v1667_v5  ;;  %v1694_v5 = vrot.slane %v7440_v26, 2  ;;  %v1698_v26 = vrot.slane %v7460_v41, 2 }
 0x19d   : > { %6387 = vmatpush3.bf16.msra.mxu1 %v7718_v39  ;;  %5726 = vmatprep.mubr.msk.f32.mxu0 %vm761_vm0, %v7971_v19  ;;  %v7996_v39 = vsel %vm1657_vm6, %v1673_v20, %v1674_v47  ;;  %v1699_v20 = vrot.slane %v7462_v44, 2  ;;  %v1701_v47 = vrot.slane %v7769_v1, 2  ;;  %v1703_v44 = vrot.slane %v7482_v58, 2 }
 0x19e   : > { %5915 = vmatprep.mubr.msk.f32.mxu1 %vm761_vm0, %v7971_v19  ;;  %6389 = vmatprep.subr.bf16.mxu1 %v6388_v34  ;;  %v8092_v61 = vsel %vm1657_vm6, %v1694_v5, %v1696_v28  ;;  %v8126_v54 = vsel %vm1657_vm6, %v1704_v9, %v1706_v45  ;;  %v8134_v14 = vsel %vm1657_vm6, %v1708_v59, %v1709_v31 }
 0x19f   : > { %6343 = vmatpush3.bf16.msra.mxu0 %v7259_v12  ;;  %v4875_v12 = vld [vmem:[%s9036_s3 + $0x1b8] sm:$0xff]  ;;  %v8100_v41 = vsel %vm1657_vm6, %v1698_v26, %v1699_v20  ;;  %v8109_v1 = vsel %vm1657_vm6, %v1699_v20, %v1701_v47  ;;  %v8117_v58 = vsel %vm1657_vm6, %v1703_v44, %v1704_v9  ;;  %v1736_v47 = vrot.slane %v7902_v29, 2  ;;  %v9115_v9 = vld [vmem:[#allocation9_spill] sm:$0xff] }
 0x1a0   : > { %5727 = vmatmul.mubr.msk.f32.gmra.mrb[36].mxu0 %vm761_vm0, %v7987_v30  ;;  %5916 = vmatmul.mubr.msk.f32.gmra.mrb[24].mxu1 %vm761_vm0, %v7987_v30  ;;  %v6396_v24 = vpack.c.bf16 %v4875_v12, %v4874_v23  ;;  %v8151_v23 = vsel %vm1657_vm6, %v1713_v16, %v1714_v38  ;;  %v1718_v12 = vrot.slane %v7533_v48, 2  ;;  %v9114_v26 = vld [vmem:[#allocation8_spill] sm:$0xff]  ;;  %v2616_v44 = vrot.slane %v7606_v40, 2 }
 0x1a1   : > { %5729 = vmatprep.mubr.msk.f32.mxu0 %vm761_vm0, %v7996_v39  ;;  %5918 = vmatprep.mubr.msk.f32.mxu1 %vm761_vm0, %v7996_v39  ;;  %v1734_v20 = vrot.slane %v9114_v26, 2  ;;  %v2617_v45 = vrot.slane %v9115_v9, 2  ;;  %v6818_v16 = vld [vmem:[#allocation2 + $0x18] sm:$0xff] }
 0x1a2   : > { %6391 = vmatpush3.bf16.msra.mxu1 %v6388_v34  ;;  %6345 = vmatprep.subr.bf16.mxu0 %v7269_v15  ;;  %v1689_v34 = vrot.slane %v7417_v2, 2  ;;  %v1693_v2 = vrot.slane %v7438_v25, 2  ;;  %v8168_v10 = vsel %vm1657_vm6, %v1718_v12, %v1719_v43  ;;  %v6819_v12 = vld [vmem:[#allocation2 + $0x20] sm:$0xff] }
 0x1a3   : > { %6393 = vmatprep.subr.bf16.mxu1 %v6392_v57  ;;  %6347 = vmatpush3.bf16.msra.mxu0 %v7269_v15  ;;  %v4909_v15 = vld [vmem:[%s9036_s3 + $0x1c8] sm:$0xff]  ;;  %v8228_v29 = vsel %vm1657_vm6, %v1734_v20, %v1736_v47 }
 0x1a4   : > { %5730 = vmatmul.mubr.msk.f32.gmra.mrb[38].mxu0 %vm761_vm0, %v8012_v42  ;;  %5919 = vmatmul.mubr.msk.f32.gmra.mrb[26].mxu1 %vm761_vm0, %v8012_v42  ;;  %v8041_v11 = vpack.c.bf16 %v4909_v15, %v4908_v51  ;;  %v8066_v0 = vsel %vm1657_vm6, %v1688_v35, %v1689_v34  ;;  %v8075_v50 = vsel %vm1657_vm6, %v1689_v34, %v1691_v13  ;;  %v1724_v51 = vrot.slane %v7551_v7, 2 }
 0x1a5   : > { %5732 = vmatprep.mubr.msk.f32.mxu0 %vm761_vm0, %v8021_v4  ;;  %5921 = vmatprep.mubr.msk.f32.mxu1 %vm761_vm0, %v8021_v4  ;;  %v8083_v25 = vsel %vm1657_vm6, %v1693_v2, %v1694_v5  ;;  %v1726_v15 = vrot.slane %v7864_v62, 2  ;;  %v1728_v35 = vrot.slane %v7564_v17, 2  ;;  %v1729_v34 = vrot.slane %v7566_v22, 2  ;;  %v9113_v5 = vld [vmem:[#allocation7_spill] sm:$0xff] }
 0x1a6   : > { %6395 = vmatpush3.bf16.msra.mxu1 %v6392_v57  ;;  %6349 = vmatprep.subr.bf16.mxu0 %v7279_v18  ;;  %v1711_v57 = vrot.slane %v7807_v60, 2  ;;  %v1731_v13 = vrot.slane %v7883_v46, 2  ;;  %v1733_v28 = vrot.slane %v9113_v5, 2 }
 0x1a7   : > { %6397 = vmatprep.subr.bf16.mxu1 %v6396_v24  ;;  %6351 = vmatpush3.bf16.msra.mxu0 %v7279_v18  ;;  %v8057_v18 = vsel %vm1657_vm6, %v1684_v6, %v1686_v53  ;;  %v1723_v6 = vrot.slane %v7549_v63, 2  ;;  %v8194_v62 = vsel %vm1657_vm6, %v1724_v51, %v1726_v15  ;;  %v8202_v2 = vsel %vm1657_vm6, %v1728_v35, %v1729_v34  ;;  %v4913_v15 = vld [vmem:[%s9036_s3 + $0x1e8] sm:$0xff] }
 0x1a8   : > { %5733 = vmatmul.mubr.msk.f32.gmra.mrb[40].mxu0 %vm761_vm0, %v8037_v52  ;;  %5922 = vmatmul.mubr.msk.f32.gmra.mrb[28].mxu1 %vm761_vm0, %v8037_v52  ;;  %v8143_v60 = vsel %vm1657_vm6, %v1709_v31, %v1711_v57  ;;  %v8211_v46 = vsel %vm1657_vm6, %v1729_v34, %v1731_v13  ;;  %v8221_v59 = vsel %vm1657_vm6, %v1733_v28, %v1734_v20  ;;  %v2619_v31 = vrot.slane %v7921_v36, 2  ;;  %v4910_v36 = vld [vmem:[%s9036_s3 + $0x1d0] sm:$0xff]  ;;  %v6822_v35 = vld [vmem:[#allocation2 + $0x48] sm:$0xff]  ;;  %v6824_v20 = vld [vmem:[#allocation2 + $0x60] sm:$0xff] }
 0x1a9   : > { %5735 = vmatprep.mubr.msk.f32.mxu0 %vm761_vm0, %v8048_v27  ;;  %5924 = vmatprep.mubr.msk.f32.mxu1 %vm761_vm0, %v8048_v27  ;;  %v8185_v53 = vsel %vm1657_vm6, %v1723_v6, %v1724_v51  ;;  %v8236_v57 = vsel %vm1657_vm6, %v2616_v44, %v2617_v45  ;;  %v6821_v6 = vld [vmem:[#allocation2 + $0x38] sm:$0xff]  ;;  %v4912_v51 = vld [vmem:[%s9036_s3 + $0x1e0] sm:$0xff]  ;;  %v6823_v13 = vld [vmem:[#allocation2 + $0x50] sm:$0xff] }
 0x1aa   : > { %6399 = vmatpush3.bf16.msra.mxu1 %v6396_v24  ;;  %v1721_v24 = vrot.slane %v7845_v37, 2  ;;  %v8242_v38 = vsel %vm1657_vm6, %v2617_v45, %v2619_v31  ;;  %v6408_v34 = vpack.c.bf16 %v4913_v15, %v4912_v51  ;;  %v4914_v28 = vld [vmem:[%s9036_s3 + $0x1f0] sm:$0xff]  ;;  %v6825_v44 = vld [vmem:[#allocation2 + $0x68] sm:$0xff]  ;;  %v4948_v45 = vld [vmem:[%s9036_s3 + $0x200] sm:$0xff] }
 0x1ab   : > { %6401 = vmatprep.subr.bf16.mxu1 %v8041_v11  ;;  %v4949_v31 = vld [vmem:[%s9036_s3 + $0x208] sm:$0xff]  ;;  %v6832_v51 = vld [vmem:[#allocation2 + $0xc0] sm:$0xff] }
 0x1ac   : > { %5736 = vmatmul.mubr.msk.f32.gmra.mrb[42].mxu0 %vm761_vm0, %v8057_v18  ;;  %5925 = vmatmul.mubr.msk.f32.gmra.mrb[30].mxu1 %vm761_vm0, %v8057_v18  ;;  %v8177_v37 = vsel %vm1657_vm6, %v1719_v43, %v1721_v24  ;;  %v6820_v43 = vld [vmem:[#allocation2 + $0x30] sm:$0xff]  ;;  %v6404_v24 = vpack.c.bf16 %v4911_v8, %v4910_v36  ;;  %v6416_v36 = vpack.c.bf16 %v4949_v31, %v4948_v45  ;;  %v6827_v8 = vld [vmem:[#allocation2 + $0x80] sm:$0xff]  ;;  %v6833_v15 = vld [vmem:[#allocation2 + $0xc8] sm:$0xff] }
 0x1ad   : > { %5738 = vmatprep.mubr.msk.f32.mxu0 %vm761_vm0, %v8066_v0  ;;  %5927 = vmatprep.mubr.msk.f32.mxu1 %vm761_vm0, %v8066_v0  ;;  %v9121_v45 = vld [vmem:[#allocation15_spill] sm:$0xff]  ;;  %v9122_v31 = vld [vmem:[#allocation16_spill] sm:$0xff] }
 0x1b0   : > { %5739 = vmatmul.mubr.msk.f32.gmra.mrb[44].mxu0 %vm761_vm0, %v8075_v50  ;;  %5928 = vmatmul.mubr.msk.f32.gmra.mrb[0].mxu1 %vm761_vm0, %v8075_v50 }
 0x1b1   : > { %5741 = vmatprep.mubr.msk.f32.mxu0 %vm761_vm0, %v8083_v25  ;;  %5930 = vmatprep.mubr.msk.f32.mxu1 %vm761_vm0, %v8083_v25 }
 0x1b4   : > { %5742 = vmatmul.mubr.msk.f32.gmra.mrb[46].mxu0 %vm761_vm0, %v8092_v61  ;;  %5931 = vmatmul.mubr.msk.f32.gmra.mrb[2].mxu1 %vm761_vm0, %v8092_v61 }
 0x1b5   : > { %5744 = vmatprep.mubr.msk.f32.mxu0 %vm761_vm0, %v8100_v41  ;;  %5933 = vmatprep.mubr.msk.f32.mxu1 %vm761_vm0, %v8100_v41 }
 0x1b8   : > { %5745 = vmatmul.mubr.msk.f32.gmra.mrb[48].mxu0 %vm761_vm0, %v8109_v1  ;;  %5934 = vmatmul.mubr.msk.f32.gmra.mrb[4].mxu1 %vm761_vm0, %v8109_v1 }
 0x1b9   : > { %5747 = vmatprep.mubr.msk.f32.mxu0 %vm761_vm0, %v8117_v58  ;;  %5936 = vmatprep.mubr.msk.f32.mxu1 %vm761_vm0, %v8117_v58 }
 0x1bc   : > { %5748 = vmatmul.mubr.msk.f32.gmra.mrb[50].mxu0 %vm761_vm0, %v8126_v54  ;;  %5937 = vmatmul.mubr.msk.f32.gmra.mrb[6].mxu1 %vm761_vm0, %v8126_v54 }
 0x1bd   : > { %5750 = vmatprep.mubr.msk.f32.mxu0 %vm761_vm0, %v8134_v14  ;;  %5939 = vmatprep.mubr.msk.f32.mxu1 %vm761_vm0, %v8134_v14 }
 0x1c0   : > { %5751 = vmatmul.mubr.msk.f32.gmra.mrb[52].mxu0 %vm761_vm0, %v8143_v60  ;;  %5940 = vmatmul.mubr.msk.f32.gmra.mrb[8].mxu1 %vm761_vm0, %v8143_v60 }
 0x1c1   : > { %5753 = vmatprep.mubr.msk.f32.mxu0 %vm761_vm0, %v8151_v23  ;;  %5942 = vmatprep.mubr.msk.f32.mxu1 %vm761_vm0, %v8151_v23 }
 0x1c4   : > { %5754 = vmatmul.mubr.msk.f32.gmra.mrb[54].mxu0 %vm761_vm0, %v8160_v21  ;;  %5943 = vmatmul.mubr.msk.f32.gmra.mrb[10].mxu1 %vm761_vm0, %v8160_v21 }
 0x1c5   : > { %5756 = vmatprep.mubr.msk.f32.mxu0 %vm761_vm0, %v8168_v10  ;;  %5945 = vmatprep.mubr.msk.f32.mxu1 %vm761_vm0, %v8168_v10 }
 0x1c8   : > { %5757 = vmatmul.mubr.msk.f32.gmra.mrb[56].mxu0 %vm761_vm0, %v8177_v37  ;;  %5946 = vmatmul.mubr.msk.f32.gmra.mrb[12].mxu1 %vm761_vm0, %v8177_v37 }
 0x1c9   : > { %5759 = vmatprep.mubr.msk.f32.mxu0 %vm761_vm0, %v8185_v53  ;;  %5948 = vmatprep.mubr.msk.f32.mxu1 %vm761_vm0, %v8185_v53 }
 0x1cc   : > { %5760 = vmatmul.mubr.msk.f32.gmra.mrb[58].mxu0 %vm761_vm0, %v8194_v62  ;;  %5949 = vmatmul.mubr.msk.f32.gmra.mrb[14].mxu1 %vm761_vm0, %v8194_v62 }
 0x1cd   : > { %5762 = vmatprep.mubr.msk.f32.mxu0 %vm761_vm0, %v8202_v2  ;;  %5951 = vmatprep.mubr.msk.f32.mxu1 %vm761_vm0, %v8202_v2 }
 0x1d0   : > { %5763 = vmatmul.mubr.msk.f32.gmra.mrb[60].mxu0 %vm761_vm0, %v8211_v46  ;;  %5952 = vmatmul.mubr.msk.f32.gmra.mrb[16].mxu1 %vm761_vm0, %v8211_v46 }
 0x1d1   : > { %5765 = vmatprep.mubr.msk.f32.mxu0 %vm761_vm0, %v8221_v59  ;;  %5954 = vmatprep.mubr.msk.f32.mxu1 %vm761_vm0, %v8221_v59 }
 0x1d4   : > { %5766 = vmatmul.mubr.msk.f32.gmra.mrb[62].mxu0 %vm761_vm0, %v8228_v29  ;;  %5955 = vmatmul.mubr.msk.f32.gmra.mrb[18].mxu1 %vm761_vm0, %v8228_v29 }
 0x1d5   : > { %5784 = vmatprep.mubr.msk.f32.mxu0 %vm761_vm0, %v6818_v16  ;;  %5957 = vmatprep.mubr.msk.f32.mxu1 %vm761_vm0, %v8236_v57  ;;  %v6826_v16 = vld [vmem:[#allocation2 + $0x78] sm:$0xff] }
 0x1d8   : > { %5785 = vmatmul.mubr.msk.f32.vlgmr.msra.gmra.mrb[32].mxu0 %vm761_vm0, %v6819_v12  ;;  %5958 = vmatmul.mubr.msk.f32.gmra.mrb[20].mxu1 %vm761_vm0, %v8242_v38  ;;  %v6828_v12 = vld [vmem:[#allocation2 + $0x90] sm:$0xff] }
 0x1d9   : > { %5787 = vmatprep.mubr.msk.f32.mxu0 %vm761_vm0, %v6820_v43  ;;  %5976 = vmatprep.mubr.msk.f32.mxu1 %vm761_vm0, %v6820_v43  ;;  %v6829_v43 = vld [vmem:[#allocation2 + $0x98] sm:$0xff] }
 0x1dc   : > { %5788 = vmatmul.mubr.msk.f32.gmra.mrb[34].mxu0 %vm761_vm0, %v6821_v6  ;;  %5977 = vmatmul.mubr.msk.f32.vlgmr.msra.gmra.mrb[22].mxu1 %vm761_vm0, %v6821_v6  ;;  %v6831_v6 = vld [vmem:[#allocation2 + $0xb0] sm:$0xff] }
 0x1dd   : > { %6403 = vmatpush3.bf16.msra.mxu1 %v8041_v11  ;;  %5790 = vmatprep.mubr.msk.f32.mxu0 %vm761_vm0, %v6822_v35  ;;  %v4915_v11 = vld [vmem:[%s9036_s3 + $0x1f8] sm:$0xff] }
 0x1de   : > { %5979 = vmatprep.mubr.msk.f32.mxu1 %vm761_vm0, %v6822_v35  ;;  %6405 = vmatprep.subr.bf16.mxu1 %v6404_v24  ;;  %v6412_v47 = vpack.c.bf16 %v4915_v11, %v4914_v28  ;;  %v6834_v35 = vld [vmem:[#allocation2 + $0xd8] sm:$0xff] }
 0x1df   : > { %v6837_v28 = vld [vmem:[#allocation2 + $0xf8] sm:$0xff] }
 0x1e0   : > { %5791 = vmatmul.mubr.msk.f32.gmra.mrb[36].mxu0 %vm761_vm0, %v6823_v13  ;;  %5980 = vmatmul.mubr.msk.f32.gmra.mrb[24].mxu1 %vm761_vm0, %v6823_v13  ;;  %v6836_v13 = vld [vmem:[#allocation2 + $0xf0] sm:$0xff]  ;;  %v4955_v11 = vld [vmem:[%s9036_s3 + $0x238] sm:$0xff] }
 0x1e1   : > { %5793 = vmatprep.mubr.msk.f32.mxu0 %vm761_vm0, %v6824_v20  ;;  %5982 = vmatprep.mubr.msk.f32.mxu1 %vm761_vm0, %v6824_v20  ;;  %v9119_v20 = vld [vmem:[#allocation13_spill] sm:$0xff] }
 0x1e2   : > { %6407 = vmatpush3.bf16.msra.mxu1 %v6404_v24  ;;  %v6830_v24 = vld [vmem:[#allocation2 + $0xa8] sm:$0xff] }
 0x1e3   : > { %6409 = vmatprep.subr.bf16.mxu1 %v6408_v34 }
 0x1e4   : > { %5794 = vmatmul.mubr.msk.f32.gmra.mrb[38].mxu0 %vm761_vm0, %v6825_v44  ;;  %5983 = vmatmul.mubr.msk.f32.gmra.mrb[26].mxu1 %vm761_vm0, %v6825_v44 }
 0x1e5   : > { %5796 = vmatprep.mubr.msk.f32.mxu0 %vm761_vm0, %v6826_v16  ;;  %5985 = vmatprep.mubr.msk.f32.mxu1 %vm761_vm0, %v6826_v16  ;;  %v9123_v16 = vld [vmem:[#allocation17_spill] sm:$0xff] }
 0x1e6   : > { %6411 = vmatpush3.bf16.msra.mxu1 %v6408_v34  ;;  %v6835_v34 = vld [vmem:[#allocation2 + $0xe0] sm:$0xff] }
 0x1e7   : > { %6413 = vmatprep.subr.bf16.mxu1 %v6412_v47 }
 0x1e8   : > { %5797 = vmatmul.mubr.msk.f32.gmra.mrb[40].mxu0 %vm761_vm0, %v6827_v8  ;;  %5986 = vmatmul.mubr.msk.f32.gmra.mrb[28].mxu1 %vm761_vm0, %v6827_v8  ;;  %v9125_v8 = vld [vmem:[#allocation19_spill] sm:$0xff] }
 0x1e9   : > { %5988 = vmatprep.mubr.msk.f32.mxu1 %vm761_vm0, %v6828_v12  ;;  %v9126_v12 = vld [vmem:[#allocation20_spill] sm:$0xff] }
 0x1ea   : > { %6415 = vmatpush3.bf16.msra.mxu1 %v6412_v47  ;;  %v9120_v47 = vld [vmem:[#allocation14_spill] sm:$0xff] }
 0x1eb   : > { %6417 = vmatprep.subr.bf16.mxu1 %v6416_v36 }
 0x1ec   : > { %5989 = vmatmul.mubr.msk.f32.gmra.mrb[30].mxu1 %vm761_vm0, %v6829_v43  ;;  %v9127_v43 = vld [vmem:[#allocation21_spill] sm:$0xff] }
 0x1ed   : > { %5991 = vmatprep.mubr.msk.f32.mxu1 %vm761_vm0, %v6830_v24  ;;  %v9128_v24 = vld [vmem:[#allocation22_spill] sm:$0xff] }
 0x1f0   : > { %5992 = vmatmul.mubr.msk.f32.gmra.mrb[0].mxu1 %vm761_vm0, %v6831_v6  ;;  %v9129_v6 = vld [vmem:[#allocation23_spill] sm:$0xff] }
 0x1f1   : > { %5994 = vmatprep.mubr.msk.f32.mxu1 %vm761_vm0, %v6832_v51  ;;  %v9130_v51 = vld [vmem:[#allocation24_spill] sm:$0xff] }
 0x1f4   : > { %5995 = vmatmul.mubr.msk.f32.gmra.mrb[2].mxu1 %vm761_vm0, %v6833_v15  ;;  %v9131_v15 = vld [vmem:[#allocation25_spill] sm:$0xff] }
 0x1f5   : > { %5997 = vmatprep.mubr.msk.f32.mxu1 %vm761_vm0, %v6834_v35  ;;  %v9132_v35 = vld [vmem:[#allocation26_spill] sm:$0xff] }
 0x1f8   : > { %5998 = vmatmul.mubr.msk.f32.gmra.mrb[4].mxu1 %vm761_vm0, %v6835_v34  ;;  %v9133_v34 = vld [vmem:[#allocation27_spill] sm:$0xff] }
 0x1f9   : > { %6000 = vmatprep.mubr.msk.f32.mxu1 %vm761_vm0, %v6836_v13  ;;  %v9134_v13 = vld [vmem:[#allocation28_spill] sm:$0xff] }
 0x1fc   : > { %6001 = vmatmul.mubr.msk.f32.gmra.mrb[6].mxu1 %vm761_vm0, %v6837_v28  ;;  %v3810_v28 = vld [vmem:[%s9038_s5] sm:$0xff] }
 0x1fd   : > { %6003 = vmatprep.mubr.msk.f32.mxu1 %vm761_vm0, %v7517_v32  ;;  %v8320_v32 = vld [vmem:[#allocation2 + $0x198] sm:$0xff] }
 0x200   : > { %6004 = vmatmul.mubr.msk.f32.gmra.mrb[8].mxu1 %vm761_vm0, %v7519_v33  ;;  %v8326_v33 = vld [vmem:[#allocation2 + $0x1a0] sm:$0xff] }
 0x201   : > { %6006 = vmatprep.mubr.msk.f32.mxu1 %vm761_vm0, %v7533_v48  ;;  %v4950_v48 = vld [vmem:[%s9036_s3 + $0x210] sm:$0xff] }
 0x204   : > { %6007 = vmatmul.mubr.msk.f32.gmra.mrb[10].mxu1 %vm761_vm0, %v7535_v49  ;;  %v4951_v49 = vld [vmem:[%s9036_s3 + $0x218] sm:$0xff] }
 0x205   : > { %6009 = vmatprep.mubr.msk.f32.mxu1 %vm761_vm0, %v7549_v63  ;;  %v9116_v63 = vld [vmem:[#allocation10_spill] sm:$0xff] }
 0x208   : > { %6010 = vmatmul.mubr.msk.f32.gmra.mrb[12].mxu1 %vm761_vm0, %v7551_v7  ;;  %v6420_v7 = vpack.c.bf16 %v4951_v49, %v4950_v48  ;;  %v3811_v48 = vld [vmem:[%s9038_s5 + $0x8] sm:$0xff]  ;;  %v3812_v49 = vld [vmem:[%s9038_s5 + $0x10] sm:$0xff] }
 0x209   : > { %6012 = vmatprep.mubr.msk.f32.mxu1 %vm761_vm0, %v7564_v17  ;;  %v4952_v17 = vld [vmem:[%s9036_s3 + $0x220] sm:$0xff] }
 0x20c   : > { %6013 = vmatmul.mubr.msk.f32.gmra.mrb[14].mxu1 %vm761_vm0, %v7566_v22  ;;  %v4953_v22 = vld [vmem:[%s9036_s3 + $0x228] sm:$0xff] }
 0x20d   : > { %6015 = vmatprep.mubr.msk.f32.mxu1 %vm761_vm0, %v9113_v5  ;;  %v9118_v5 = vld [vmem:[#allocation12_spill] sm:$0xff] }
 0x210   : > { %6016 = vmatmul.mubr.msk.f32.gmra.mrb[16].mxu1 %vm761_vm0, %v9114_v26  ;;  %v6424_v26 = vpack.c.bf16 %v4953_v22, %v4952_v17  ;;  %v3814_v22 = vld [vmem:[%s9038_s5 + $0x20] sm:$0xff] }
 0x211   : > { %6018 = vmatprep.mubr.msk.f32.mxu1 %vm761_vm0, %v7606_v40  ;;  %v9117_v40 = vld [vmem:[#allocation11_spill] sm:$0xff] }
 0x214   : > { %6019 = vmatmul.mubr.msk.f32.gmra.mrb[18].mxu1 %vm761_vm0, %v9115_v9  ;;  %v4954_v9 = vld [vmem:[%s9036_s3 + $0x230] sm:$0xff] }
 0x215   : > { %6021 = vmatprep.mubr.msk.f32.mxu1 %vm761_vm0, %v8320_v32  ;;  %v6428_v44 = vpack.c.bf16 %v4955_v11, %v4954_v9  ;;  %v9137_v11 = vld [vmem:[#allocation31_spill] sm:$0xff] }
 0x218   : > { %6022 = vmatmul.mubr.msk.f32.gmra.mrb[20].mxu1 %vm761_vm0, %v8326_v33 }
 0x219   : > { %6040 = vmatprep.mubr.msk.f32.mxu1 %vm761_vm0, %v9116_v63  ;;  %v6432_v63 = vpack.c.bf16 %v3811_v48, %v3810_v28 }
 0x21b   : > { %6433 = vmatprep.subr.bf16.mxu0 %v6432_v63 }
 0x21c   : > { %6041 = vmatmul.mubr.msk.f32.vlgmr.msra.gmra.mrb[22].mxu1 %vm761_vm0, %v9117_v40  ;;  %v3815_v40 = vld [vmem:[%s9038_s5 + $0x28] sm:$0xff]  ;;  %6435 = vmatpush3.bf16.msra.mxu0 %v6432_v63 }
 0x21d   : > { %6419 = vmatpush3.bf16.msra.mxu1 %v6416_v36  ;;  %6043 = vmatprep.mubr.msk.f32.mxu1 %vm761_vm0, %v9118_v5  ;;  %v9124_v36 = vld [vmem:[#allocation18_spill] sm:$0xff]  ;;  %v9135_v5 = vld [vmem:[#allocation29_spill] sm:$0xff]  ;;  %v6440_v9 = vpack.c.bf16 %v3815_v40, %v3814_v22 }
 0x21e   : > { %6421 = vmatprep.subr.bf16.mxu1 %v6420_v7 }
 0x220   : > { %6044 = vmatmul.mubr.msk.f32.gmra.mrb[24].mxu1 %vm761_vm0, %v9119_v20  ;;  %v9138_v20 = vld [vmem:[#allocation32_spill] sm:$0xff] }
 0x221   : > { %6046 = vmatprep.mubr.msk.f32.mxu1 %vm761_vm0, %v9120_v47  ;;  %6423 = vmatpush3.bf16.msra.mxu1 %v6420_v7  ;;  %v3813_v7 = vld [vmem:[%s9038_s5 + $0x18] sm:$0xff]  ;;  %v9139_v47 = vld [vmem:[#allocation33_spill] sm:$0xff] }
 0x222   : > { %6425 = vmatprep.subr.bf16.mxu1 %v6424_v26  ;;  %v6436_v17 = vpack.c.bf16 %v3813_v7, %v3812_v49 }
 0x224   : > { %6047 = vmatmul.mubr.msk.f32.gmra.mrb[26].mxu1 %vm761_vm0, %v9121_v45  ;;  %6437 = vmatprep.subr.bf16.mxu0 %v6436_v17  ;;  %v9141_v45 = vld [vmem:[#allocation35_spill] sm:$0xff] }
 0x225   : > { %6049 = vmatprep.mubr.msk.f32.mxu1 %vm761_vm0, %v9122_v31  ;;  %6427 = vmatpush3.bf16.msra.mxu1 %v6424_v26  ;;  %v9136_v26 = vld [vmem:[#allocation30_spill] sm:$0xff]  ;;  %v9142_v31 = vld [vmem:[#allocation36_spill] sm:$0xff] }
 0x226   : > { %6429 = vmatprep.subr.bf16.mxu1 %v6428_v44  ;;  %6439 = vmatpush3.bf16.msra.mxu0 %v6436_v17 }
 0x227   : > { %6441 = vmatprep.subr.bf16.mxu0 %v6440_v9 }
 0x228   : > { %6050 = vmatmul.mubr.msk.f32.gmra.mrb[28].mxu1 %vm761_vm0, %v9123_v16  ;;  %v3164_v16 = vrot.slane %v8320_v32, 1 }
 0x229   : > { %6052 = vmatprep.mubr.msk.f32.mxu1 %vm761_vm0, %v9124_v36  ;;  %6431 = vmatpush3.bf16.msra.mxu1 %v6428_v44  ;;  %v9140_v44 = vld [vmem:[#allocation34_spill] sm:$0xff]  ;;  %v3165_v36 = vrot.slane %v8326_v33, 1 }
 0x22a   : > { %6443 = vmatpush3.bf16.msra.mxu0 %v6440_v9 }
 0x22c   : > { %6053 = vmatmul.mubr.msk.f32.gmra.mrb[30].mxu1 %vm761_vm0, %v9125_v8  ;;  %v893_v8 = vld [vmem:[#allocation2 + $0x1a8] sm:$0x3] }
 0x22d   : > { %6055 = vmatprep.mubr.msk.f32.mxu1 %vm761_vm0, %v9126_v12  ;;  %v3167_v12 = vrot.slane %v893_v8, 1 }
 0x230   : > { %6056 = vmatmul.mubr.msk.f32.gmra.mrb[0].mxu1 %vm761_vm0, %v9127_v43  ;;  %v3166_v43 = vsel %vm1246_vm5, %v3164_v16, %v3165_v36 }
 0x231   : > { %6058 = vmatprep.mubr.msk.f32.mxu1 %vm761_vm0, %v9128_v24  ;;  %v3168_v24 = vsel %vm1246_vm5, %v3165_v36, %v3167_v12 }
 0x234   : > { %6059 = vmatmul.mubr.msk.f32.gmra.mrb[2].mxu1 %vm761_vm0, %v9129_v6 }
 0x235   : > { %6061 = vmatprep.mubr.msk.f32.mxu1 %vm761_vm0, %v9130_v51 }
 0x238   : > { %6062 = vmatmul.mubr.msk.f32.gmra.mrb[4].mxu1 %vm761_vm0, %v9131_v15 }
 0x239   : > { %6064 = vmatprep.mubr.msk.f32.mxu1 %vm761_vm0, %v9132_v35 }
 0x23c   : > { %6065 = vmatmul.mubr.msk.f32.gmra.mrb[6].mxu1 %vm761_vm0, %v9133_v34 }
 0x23d   : > { %6067 = vmatprep.mubr.msk.f32.mxu1 %vm761_vm0, %v9134_v13  ;;  %v8551_v13 = vld [vmem:[%s9037_s4] ss:$0 sm:$0xff] }
 0x240   : > { %6068 = vmatmul.mubr.msk.f32.gmra.mrb[8].mxu1 %vm761_vm0, %v9135_v5 }
 0x241   : > { %6070 = vmatprep.mubr.msk.f32.mxu1 %vm761_vm0, %v9136_v26 }
 0x244   : > { %6071 = vmatmul.mubr.msk.f32.gmra.mrb[10].mxu1 %vm761_vm0, %v9137_v11 }
 0x245   : > { %6073 = vmatprep.mubr.msk.f32.mxu1 %vm761_vm0, %v9138_v20 }
 0x248   : > { %6074 = vmatmul.mubr.msk.f32.gmra.mrb[12].mxu1 %vm761_vm0, %v9139_v47 }
 0x249   : > { %6076 = vmatprep.mubr.msk.f32.mxu1 %vm761_vm0, %v9140_v44 }
 0x24c   : > { %6077 = vmatmul.mubr.msk.f32.gmra.mrb[14].mxu1 %vm761_vm0, %v9141_v45 }
 0x24d   : > { %6079 = vmatprep.mubr.msk.f32.mxu1 %vm761_vm0, %v9142_v31 }
 0x250   : > { %6080 = vmatmul.mubr.msk.f32.gmra.mrb[16].mxu1 %vm761_vm0, %v7930_v55 }
 0x251   : > { %6082 = vmatprep.mubr.msk.f32.mxu1 %vm761_vm0, %v7940_v56 }
 0x254   : > { %6083 = vmatmul.mubr.msk.f32.gmra.mrb[18].mxu1 %vm761_vm0, %v7947_v3 }
 0x255   : > { %6085 = vmatprep.mubr.msk.f32.mxu1 %vm761_vm0, %v3166_v43 }
 0x258   : > { %6086 = vmatmul.mubr.msk.f32.gmra.mrb[20].mxu1 %vm761_vm0, %v3168_v24 }
 0x259   : > { %6104 = vmatprep.mubr.msk.f32.mxu1 %vm761_vm0, %v7971_v19 }
 0x25c   : > { %6105 = vmatmul.mubr.msk.f32.vlgmr.msra.gmra.mrb[22].mxu1 %vm761_vm0, %v7987_v30 }
 0x25d   : > { %6107 = vmatprep.mubr.msk.f32.mxu1 %vm761_vm0, %v7996_v39 }
 0x260   : > { %6108 = vmatmul.mubr.msk.f32.gmra.mrb[24].mxu1 %vm761_vm0, %v8012_v42 }
 0x261   : > { %6110 = vmatprep.mubr.msk.f32.mxu1 %vm761_vm0, %v8021_v4 }
 0x264   : > { %6111 = vmatmul.mubr.msk.f32.gmra.mrb[26].mxu1 %vm761_vm0, %v8037_v52  ;;  %v3439_v52 = vrot.slane %v8320_v32, 2  ;;  %v3816_v32 = vld [vmem:[%s9038_s5 + $0x30] sm:$0xff] }
 0x265   : > { %6113 = vmatprep.mubr.msk.f32.mxu1 %vm761_vm0, %v8048_v27  ;;  %v3440_v27 = vrot.slane %v8326_v33, 2  ;;  %v3817_v33 = vld [vmem:[%s9038_s5 + $0x38] sm:$0xff] }
 0x266   : > { %v6444_v6 = vpack.c.bf16 %v3817_v33, %v3816_v32 }
 0x268   : > { %6114 = vmatmul.mubr.msk.f32.gmra.mrb[28].mxu1 %vm761_vm0, %v8057_v18  ;;  %6445 = vmatprep.subr.bf16.mxu0 %v6444_v6 }
 0x269   : > { %6116 = vmatprep.mubr.msk.f32.mxu1 %vm761_vm0, %v8066_v0  ;;  %6447 = vmatpush3.bf16.msra.mxu0 %v6444_v6 }
 0x26c   : > { %6117 = vmatmul.mubr.msk.f32.gmra.mrb[30].mxu1 %vm761_vm0, %v8075_v50  ;;  %v3442_v50 = vrot.slane %v893_v8, 2 }
 0x26d   : > { %6119 = vmatprep.mubr.msk.f32.mxu1 %vm761_vm0, %v8083_v25  ;;  %v3441_v25 = vsel %vm1657_vm6, %v3439_v52, %v3440_v27 }
 0x270   : > { %6120 = vmatmul.mubr.msk.f32.gmra.mrb[0].mxu1 %vm761_vm0, %v8092_v61 }
 0x271   : > { %6122 = vmatprep.mubr.msk.f32.mxu1 %vm761_vm0, %v8100_v41 }
 0x274   : > { %6123 = vmatmul.mubr.msk.f32.gmra.mrb[2].mxu1 %vm761_vm0, %v8109_v1  ;;  %v3443_v1 = vsel %vm1657_vm6, %v3440_v27, %v3442_v50 }
 0x275   : > { %6125 = vmatprep.mubr.msk.f32.mxu1 %vm761_vm0, %v8117_v58 }
 0x278   : > { %6126 = vmatmul.mubr.msk.f32.gmra.mrb[4].mxu1 %vm761_vm0, %v8126_v54 }
 0x279   : > { %6128 = vmatprep.mubr.msk.f32.mxu1 %vm761_vm0, %v8134_v14 }
 0x27c   : > { %6129 = vmatmul.mubr.msk.f32.gmra.mrb[6].mxu1 %vm761_vm0, %v8143_v60 }
 0x27d   : > { %6131 = vmatprep.mubr.msk.f32.mxu1 %vm761_vm0, %v8151_v23 }
 0x27f   : > { %v8470_v56 = vpop.f32.mrb[42].mxu0 }
 0x280   : > { %v8472_v55 = vpop.f32.mrb[43].mxu0  ;;  %6132 = vmatmul.mubr.msk.f32.gmra.mrb[8].mxu1 %vm761_vm0, %v8160_v21 }
 0x281   : > { %6134 = vmatprep.mubr.msk.f32.mxu1 %vm761_vm0, %v8168_v10 }
 0x283   : > { %v8478_v3 = vpop.f32.mrb[44].mxu0 }
 0x284   : > { %v8480_v19 = vpop.f32.mrb[45].mxu0  ;;  %6135 = vmatmul.mubr.msk.f32.gmra.mrb[10].mxu1 %vm761_vm0, %v8177_v37 }
 0x285   : > { %6137 = vmatprep.mubr.msk.f32.mxu1 %vm761_vm0, %v8185_v53 }
 0x287   : > { %v8486_v30 = vpop.f32.mrb[46].mxu0 }
 0x288   : > { %v8488_v39 = vpop.f32.mrb[47].mxu0  ;;  %6138 = vmatmul.mubr.msk.f32.gmra.mrb[12].mxu1 %vm761_vm0, %v8194_v62 }
 0x289   : > { %6140 = vmatprep.mubr.msk.f32.mxu1 %vm761_vm0, %v8202_v2 }
 0x28b   : > { %v8494_v42 = vpop.f32.mrb[48].mxu0 }
 0x28c   : > { %v8496_v4 = vpop.f32.mrb[49].mxu0  ;;  %6141 = vmatmul.mubr.msk.f32.gmra.mrb[14].mxu1 %vm761_vm0, %v8211_v46 }
 0x28d   : > { %6143 = vmatprep.mubr.msk.f32.mxu1 %vm761_vm0, %v8221_v59 }
 0x28f   : > { %v8504_v18 = vpop.f32.mrb[50].mxu0 }
 0x290   : > { %v8506_v0 = vpop.f32.mrb[51].mxu0  ;;  %6144 = vmatmul.mubr.msk.f32.gmra.mrb[16].mxu1 %vm761_vm0, %v8228_v29 }
 0x291   : > { %6146 = vmatprep.mubr.msk.f32.mxu1 %vm761_vm0, %v8236_v57 }
 0x293   : > { %v8513_v61 = vpop.f32.mrb[52].mxu0 }
 0x294   : > { %v8515_v41 = vpop.f32.mrb[53].mxu0  ;;  %6147 = vmatmul.mubr.msk.f32.gmra.mrb[18].mxu1 %vm761_vm0, %v8242_v38 }
 0x295   : > { %6149 = vmatprep.mubr.msk.f32.mxu1 %vm761_vm0, %v3441_v25 }
 0x297   : > { %v8521_v58 = vpop.f32.mrb[54].mxu0 }
 0x298   : > { %v8523_v54 = vpop.f32.mrb[55].mxu0  ;;  %6150 = vmatmul.mubr.msk.f32.gmra.mrb[20].mxu1 %vm761_vm0, %v3443_v1 }
 0x29b   : > { %v8526_v14 = vpop.f32.mrb[56].mxu0 }
 0x29c   : > { %v8528_v60 = vpop.f32.mrb[57].mxu0 }
 0x29f   : > { %v8530_v23 = vpop.f32.mrb[58].mxu0 }
 0x2a0   : > { %v8532_v21 = vpop.f32.mrb[59].mxu0 }
 0x2a3   : > { %v8534_v10 = vpop.f32.mrb[60].mxu0 }
 0x2a4   : > { %v8536_v37 = vpop.f32.mrb[61].mxu0 }
 0x2a7   : > { %v8538_v53 = vpop.f32.mrb[62].mxu0 }
 0x2a8   : > { %v8540_v62 = vpop.f32.mrb[63].mxu0 }
 0x2ab   : > { %v5786_v2 = vpop.f32.mrb[32].mxu0 }
 0x2ac   : > { %v2149_v46 = vpop.f32.mrb[33].mxu0  ;;  %v6480_v28 = vadd.f32 %v5786_v2, %v8551_v13 }
 0x2ad   : > { %v6482_v48 = vadd.f32 %v8551_v13, %v2149_v46 }
 0x2af   : > { %v5789_v59 = vpop.f32.mrb[34].mxu0 }
 0x2b0   : > { %v2159_v29 = vpop.f32.mrb[35].mxu0  ;;  %v6484_v22 = vadd.f32 %v5789_v59, %v8551_v13 }
 0x2b1   : > { %v6486_v5 = vadd.f32 %v8551_v13, %v2159_v29 }
 0x2b3   : > { %v5792_v57 = vpop.f32.mrb[36].mxu0 }
 0x2b4   : > { %v2169_v38 = vpop.f32.mrb[37].mxu0  ;;  %v6488_v45 = vadd.f32 %v5792_v57, %v8551_v13 }
 0x2b5   : > { %v6490_v36 = vadd.f32 %v8551_v13, %v2169_v38 }
 0x2b7   : > { %v5795_v51 = vpop.f32.mrb[38].mxu0 }
 0x2b8   : > { %v2179_v15 = vpop.f32.mrb[39].mxu0  ;;  %v6492_v50 = vadd.f32 %v5795_v51, %v8551_v13 }
 0x2b9   : > { %v6494_v2 = vadd.f32 %v8551_v13, %v2179_v15 }
 0x2bb   : > { %v5798_v35 = vpop.f32.mrb[40].mxu0 }
 0x2bc   : > { %v2189_v34 = vpop.f32.mrb[41].mxu0  ;;  %v6496_v33 = vadd.f32 %v5798_v35, %v8551_v13 }
 0x32f   : > { %v6106_v49 = vpop.f32.mrb[22].mxu1 }
 0x330   : > { %v6481_v63 = vadd.f32 %v6480_v28, %v6106_v49  ;;  %v3523_v7 = vpop.f32.mrb[23].mxu1  ;;  %v6498_v28 = vadd.f32 %v8551_v13, %v2189_v34  ;;  %v6502_v34 = vadd.f32 %v8551_v13, %v8472_v55  ;;  %v6506_v55 = vadd.f32 %v8551_v13, %v8480_v19 }
 0x331   : > { %v6483_v17 = vadd.f32 %v6482_v48, %v3523_v7  ;;  %v6510_v19 = vadd.f32 %v8551_v13, %v8488_v39  ;;  %v6514_v39 = vadd.f32 %v8551_v13, %v8496_v4  ;;  %v6518_v4 = vadd.f32 %v8551_v13, %v8506_v0 }
 0x332   : > { %v3747_v40 = vmul.f32 0.01, %v6481_v63  ;;  %vm3715_vm7 = vcmp.gt.f32.partialorder %v6481_v63, 0.0  ;;  %v6522_v0 = vadd.f32 %v8551_v13, %v8515_v41  ;;  %v6526_v41 = vadd.f32 %v8551_v13, %v8523_v54 }
 0x333   : > { %vm3714_vm8 = vcmp.gt.f32.partialorder %v6483_v17, 0.0  ;;  %v3746_v26 = vmul.f32 0.01, %v6483_v17  ;;  %v6109_v9 = vpop.f32.mrb[24].mxu1  ;;  %v6530_v54 = vadd.f32 %v8551_v13, %v8528_v60  ;;  %v6534_v60 = vadd.f32 %v8551_v13, %v8532_v21 }
 0x334   : > { %v6485_v11 = vadd.f32 %v6484_v22, %v6109_v9  ;;  %v3533_v20 = vpop.f32.mrb[25].mxu1  ;;  %v3779_v31 = vsel %vm3715_vm7, %v6481_v63, %v3747_v40  ;;  %v6500_v22 = vadd.f32 %v8470_v56, %v8551_v13  ;;  %v6504_v56 = vadd.f32 %v8478_v3, %v8551_v13 }
 0x335   : > { %v6487_v47 = vadd.f32 %v6486_v5, %v3533_v20  ;;  %v3778_v44 = vsel %vm3714_vm8, %v6483_v17, %v3746_v26  ;;  %v6508_v3 = vadd.f32 %v8486_v30, %v8551_v13  ;;  %v6512_v30 = vadd.f32 %v8494_v42, %v8551_v13 }
 0x336   : > { %v3749_v16 = vmul.f32 0.01, %v6485_v11  ;;  %6168 = vmatprep.mubr.msk.f32.mxu0 %vm761_vm0, %v3778_v44  ;;  %vm3717_vm9 = vcmp.gt.f32.partialorder %v6485_v11, 0.0  ;;  %v6516_v42 = vadd.f32 %v8504_v18, %v8551_v13  ;;  %v6520_v18 = vadd.f32 %v8513_v61, %v8551_v13 }
 0x337   : > { %vm3716_vm10 = vcmp.gt.f32.partialorder %v6487_v47, 0.0  ;;  %v3748_v8 = vmul.f32 0.01, %v6487_v47  ;;  %v6112_v12 = vpop.f32.mrb[26].mxu1  ;;  %6169 = vmatmul.mubr.msk.f32.vlgmr.msra.gmra.mrb[64].mxu0 %vm761_vm0, %v3779_v31  ;;  %v6524_v61 = vadd.f32 %v8521_v58, %v8551_v13  ;;  %v6528_v58 = vadd.f32 %v8526_v14, %v8551_v13 }
 0x338   : > { %v6489_v43 = vadd.f32 %v6488_v45, %v6112_v12  ;;  %v3543_v24 = vpop.f32.mrb[27].mxu1  ;;  %v3781_v1 = vsel %vm3717_vm9, %v6485_v11, %v3749_v16  ;;  %v6532_v14 = vadd.f32 %v8530_v23, %v8551_v13  ;;  %v6536_v23 = vadd.f32 %v8534_v10, %v8551_v13 }
 0x339   : > { %v6491_v52 = vadd.f32 %v6490_v36, %v3543_v24  ;;  %v3780_v27 = vsel %vm3716_vm10, %v6487_v47, %v3748_v8  ;;  %v6538_v21 = vadd.f32 %v8551_v13, %v8536_v37  ;;  %v6540_v10 = vadd.f32 %v8538_v53, %v8551_v13 }
 0x33a   : > { %v3751_v25 = vmul.f32 0.01, %v6489_v43  ;;  %6171 = vmatprep.mubr.msk.f32.mxu0 %vm761_vm0, %v3780_v27  ;;  %vm3719_vm11 = vcmp.gt.f32.partialorder %v6489_v43, 0.0  ;;  %v6542_v37 = vadd.f32 %v8551_v13, %v8540_v62 }
 0x33b   : > { %vm3718_vm12 = vcmp.gt.f32.partialorder %v6491_v52, 0.0  ;;  %v3750_v46 = vmul.f32 0.01, %v6491_v52  ;;  %v6115_v59 = vpop.f32.mrb[28].mxu1  ;;  %6172 = vmatmul.mubr.msk.f32.gmra.mrb[66].mxu0 %vm761_vm0, %v3781_v1 }
 0x33c   : > { %v6493_v29 = vadd.f32 %v6492_v50, %v6115_v59  ;;  %v3553_v57 = vpop.f32.mrb[29].mxu1  ;;  %v3783_v51 = vsel %vm3719_vm11, %v6489_v43, %v3751_v25 }
 0x33d   : > { %v6495_v38 = vadd.f32 %v6494_v2, %v3553_v57  ;;  %v3782_v32 = vsel %vm3718_vm12, %v6491_v52, %v3750_v46 }
 0x33e   : > { %v3753_v6 = vmul.f32 0.01, %v6493_v29  ;;  %6174 = vmatprep.mubr.msk.f32.mxu0 %vm761_vm0, %v3782_v32  ;;  %vm3721_vm13 = vcmp.gt.f32.partialorder %v6493_v29, 0.0 }
 0x33f   : > { %vm3720_vm14 = vcmp.gt.f32.partialorder %v6495_v38, 0.0  ;;  %v3752_v15 = vmul.f32 0.01, %v6495_v38  ;;  %v6118_v48 = vpop.f32.mrb[30].mxu1  ;;  %6175 = vmatmul.mubr.msk.f32.gmra.mrb[68].mxu0 %vm761_vm0, %v3783_v51 }
 0x340   : > { %v6497_v49 = vadd.f32 %v6496_v33, %v6118_v48  ;;  %v3563_v63 = vpop.f32.mrb[31].mxu1  ;;  %v3785_v40 = vsel %vm3721_vm13, %v6493_v29, %v3753_v6 }
 0x341   : > { %v6499_v7 = vadd.f32 %v6498_v28, %v3563_v63  ;;  %v3784_v17 = vsel %vm3720_vm14, %v6495_v38, %v3752_v15 }
 0x342   : > { %v3755_v35 = vmul.f32 0.01, %v6497_v49  ;;  %6177 = vmatprep.mubr.msk.f32.mxu0 %vm761_vm0, %v3784_v17  ;;  %vm3723_vm15 = vcmp.gt.f32.partialorder %v6497_v49, 0.0 }
 0x343   : > { %vm3722_vm1 = vcmp.gt.f32.partialorder %v6499_v7, 0.0  ;;  %v3754_v5 = vmul.f32 0.01, %v6499_v7  ;;  %v6121_v26 = vpop.f32.mrb[0].mxu1  ;;  %6178 = vmatmul.mubr.msk.f32.gmra.mrb[70].mxu0 %vm761_vm0, %v3785_v40 }
 0x344   : > { %v6501_v9 = vadd.f32 %v6500_v22, %v6121_v26  ;;  %v3573_v11 = vpop.f32.mrb[1].mxu1  ;;  %v3787_v45 = vsel %vm3723_vm15, %v6497_v49, %v3755_v35 }
 0x345   : > { %v6503_v20 = vadd.f32 %v6502_v34, %v3573_v11  ;;  %v3786_v47 = vsel %vm3722_vm1, %v6499_v7, %v3754_v5 }
 0x346   : > { %v3757_v44 = vmul.f32 0.01, %v6501_v9  ;;  %6180 = vmatprep.mubr.msk.f32.mxu0 %vm761_vm0, %v3786_v47  ;;  %vm3725_vm2 = vcmp.gt.f32.partialorder %v6501_v9, 0.0 }
 0x347   : > { %vm3724_vm3 = vcmp.gt.f32.partialorder %v6503_v20, 0.0  ;;  %v3756_v31 = vmul.f32 0.01, %v6503_v20  ;;  %v6124_v16 = vpop.f32.mrb[2].mxu1  ;;  %6181 = vmatmul.mubr.msk.f32.gmra.mrb[72].mxu0 %vm761_vm0, %v3787_v45 }
 0x348   : > { %v6505_v36 = vadd.f32 %v6504_v56, %v6124_v16  ;;  %v3583_v8 = vpop.f32.mrb[3].mxu1  ;;  %v3789_v52 = vsel %vm3725_vm2, %v6501_v9, %v3757_v44 }
 0x349   : > { %v6507_v12 = vadd.f32 %v6506_v55, %v3583_v8  ;;  %v3788_v43 = vsel %vm3724_vm3, %v6503_v20, %v3756_v31 }
 0x34a   : > { %v3759_v24 = vmul.f32 0.01, %v6505_v36  ;;  %6183 = vmatprep.mubr.msk.f32.mxu0 %vm761_vm0, %v3788_v43  ;;  %vm3727_vm4 = vcmp.gt.f32.partialorder %v6505_v36, 0.0 }
 0x34b   : > { %vm3726_vm5 = vcmp.gt.f32.partialorder %v6507_v12, 0.0  ;;  %v3758_v27 = vmul.f32 0.01, %v6507_v12  ;;  %v6127_v50 = vpop.f32.mrb[4].mxu1  ;;  %6184 = vmatmul.mubr.msk.f32.gmra.mrb[74].mxu0 %vm761_vm0, %v3789_v52 }
 0x34c   : > { %v6509_v25 = vadd.f32 %v6508_v3, %v6127_v50  ;;  %v3593_v1 = vpop.f32.mrb[5].mxu1  ;;  %v3791_v29 = vsel %vm3727_vm4, %v6505_v36, %v3759_v24 }
 0x34d   : > { %v6511_v2 = vadd.f32 %v6510_v19, %v3593_v1  ;;  %v3790_v46 = vsel %vm3726_vm5, %v6507_v12, %v3758_v27 }
 0x34e   : > { %v3761_v59 = vmul.f32 0.01, %v6509_v25  ;;  %6186 = vmatprep.mubr.msk.f32.mxu0 %vm761_vm0, %v3790_v46  ;;  %vm3729_vm6 = vcmp.gt.f32.partialorder %v6509_v25, 0.0 }
 0x34f   : > { %vm3728_vm7 = vcmp.gt.f32.partialorder %v6511_v2, 0.0  ;;  %v3760_v57 = vmul.f32 0.01, %v6511_v2  ;;  %v6130_v38 = vpop.f32.mrb[6].mxu1  ;;  %6187 = vmatmul.mubr.msk.f32.gmra.mrb[76].mxu0 %vm761_vm0, %v3791_v29 }
 0x350   : > { %v6513_v32 = vadd.f32 %v6512_v30, %v6130_v38  ;;  %v3603_v33 = vpop.f32.mrb[7].mxu1  ;;  %v3793_v15 = vsel %vm3729_vm6, %v6509_v25, %v3761_v59 }
 0x351   : > { %v6515_v6 = vadd.f32 %v6514_v39, %v3603_v33  ;;  %v3792_v51 = vsel %vm3728_vm7, %v6511_v2, %v3760_v57 }
 0x352   : > { %v3763_v28 = vmul.f32 0.01, %v6513_v32  ;;  %6189 = vmatprep.mubr.msk.f32.mxu0 %vm761_vm0, %v3792_v51  ;;  %vm3731_vm8 = vcmp.gt.f32.partialorder %v6513_v32, 0.0 }
 0x353   : > { %vm3730_vm9 = vcmp.gt.f32.partialorder %v6515_v6, 0.0  ;;  %v3762_v48 = vmul.f32 0.01, %v6515_v6  ;;  %v6133_v49 = vpop.f32.mrb[8].mxu1  ;;  %6190 = vmatmul.mubr.msk.f32.gmra.mrb[78].mxu0 %vm761_vm0, %v3793_v15 }
 0x354   : > { %v6517_v63 = vadd.f32 %v6516_v42, %v6133_v49  ;;  %v3613_v7 = vpop.f32.mrb[9].mxu1  ;;  %v3795_v40 = vsel %vm3731_vm8, %v6513_v32, %v3763_v28 }
 0x355   : > { %v6519_v17 = vadd.f32 %v6518_v4, %v3613_v7  ;;  %v3794_v22 = vsel %vm3730_vm9, %v6515_v6, %v3762_v48 }
 0x356   : > { %v3765_v35 = vmul.f32 0.01, %v6517_v63  ;;  %6192 = vmatprep.mubr.msk.f32.mxu0 %vm761_vm0, %v3794_v22  ;;  %vm3733_vm10 = vcmp.gt.f32.partialorder %v6517_v63, 0.0 }
 0x357   : > { %vm3732_vm11 = vcmp.gt.f32.partialorder %v6519_v17, 0.0  ;;  %v3764_v34 = vmul.f32 0.01, %v6519_v17  ;;  %v6136_v5 = vpop.f32.mrb[10].mxu1  ;;  %6193 = vmatmul.mubr.msk.f32.gmra.mrb[80].mxu0 %vm761_vm0, %v3795_v40  ;;  %v4281_v40 = vld [vmem:[%s9040_s7] sm:$0xff] }
 0x358   : > { %v6521_v26 = vadd.f32 %v6520_v18, %v6136_v5  ;;  %v3623_v9 = vpop.f32.mrb[11].mxu1  ;;  %v3797_v56 = vsel %vm3733_vm10, %v6517_v63, %v3765_v35  ;;  %v6935_v35 = vmov 0.0|0.0   ;;  %v4283_v5 = vld [vmem:[%s9040_s7 + $0x10] sm:$0xff] }
 0x359   : > { %v6523_v11 = vadd.f32 %v6522_v0, %v3623_v9  ;;  %v3796_v20 = vsel %vm3732_vm11, %v6519_v17, %v3764_v34  ;;  %6448 = vmatprep.subr.bf16.mxu0 %v6935_v35  ;;  %v4282_v0 = vld [vmem:[%s9040_s7 + $0x8] sm:$0xff] }
 0x35a   : > { %v3767_v47 = vmul.f32 0.01, %v6521_v26  ;;  %6195 = vmatprep.mubr.msk.f32.mxu0 %vm761_vm0, %v3796_v20  ;;  %vm3735_vm12 = vcmp.gt.f32.partialorder %v6521_v26, 0.0  ;;  %v6449_v34 = vpack.c.bf16 %v4282_v0, %v4281_v40  ;;  %v4286_v20 = vld [vmem:[%s9040_s7 + $0x28] sm:$0xff] }
 0x35b   : > { %vm3734_vm13 = vcmp.gt.f32.partialorder %v6523_v11, 0.0  ;;  %v3766_v44 = vmul.f32 0.01, %v6523_v11  ;;  %v6139_v45 = vpop.f32.mrb[12].mxu1  ;;  %6196 = vmatmul.mubr.msk.f32.gmra.mrb[82].mxu0 %vm761_vm0, %v3797_v56  ;;  %v4288_v56 = vld [vmem:[%s9040_s7 + $0x38] sm:$0xff] }
 0x35c   : > { %v6525_v55 = vadd.f32 %v6524_v61, %v6139_v45  ;;  %v3633_v31 = vpop.f32.mrb[13].mxu1  ;;  %v3799_v12 = vsel %vm3735_vm12, %v6521_v26, %v3767_v47  ;;  %6450 = vmatpush3.bf16.msra.mxu0 %v6449_v34  ;;  %v4284_v26 = vld [vmem:[%s9040_s7 + $0x18] sm:$0xff]  ;;  %v4287_v47 = vld [vmem:[%s9040_s7 + $0x30] sm:$0xff]  ;;  %v4290_v45 = vld [vmem:[%s9040_s7 + $0x48] sm:$0xff] }
 0x35d   : > { %v6527_v16 = vadd.f32 %v6526_v41, %v3633_v31  ;;  %v3798_v36 = vsel %vm3734_vm13, %v6523_v11, %v3766_v44  ;;  %6451 = vmatprep.subr.bf16.mxu0 %v6935_v35  ;;  %v6452_v9 = vpack.c.bf16 %v4284_v26, %v4283_v5  ;;  %v4285_v11 = vld [vmem:[%s9040_s7 + $0x20] sm:$0xff]  ;;  %v6458_v41 = vpack.c.bf16 %v4288_v56, %v4287_v47  ;;  %v4291_v31 = vld [vmem:[%s9040_s7 + $0x50] sm:$0xff] }
 0x35e   : > { %v3769_v8 = vmul.f32 0.01, %v6525_v55  ;;  %6198 = vmatprep.mubr.msk.f32.mxu0 %vm761_vm0, %v3798_v36  ;;  %vm3737_vm14 = vcmp.gt.f32.partialorder %v6525_v55, 0.0  ;;  %v6455_v61 = vpack.c.bf16 %v4286_v20, %v4285_v11  ;;  %v4289_v44 = vld [vmem:[%s9040_s7 + $0x40] sm:$0xff] }
 0x35f   : > { %vm3736_vm15 = vcmp.gt.f32.partialorder %v6527_v16, 0.0  ;;  %v3768_v43 = vmul.f32 0.01, %v6527_v16  ;;  %v6142_v3 = vpop.f32.mrb[14].mxu1  ;;  %6199 = vmatmul.mubr.msk.f32.gmra.mrb[84].mxu0 %vm761_vm0, %v3799_v12  ;;  %v4293_v36 = vld [vmem:[%s9040_s7 + $0x60] sm:$0xff]  ;;  %v9143_v12 = vmov 0.0  }
 0x360   : > { %v6529_v24 = vadd.f32 %v6528_v58, %v6142_v3  ;;  %v3643_v52 = vpop.f32.mrb[15].mxu1  ;;  %v3801_v25 = vsel %vm3737_vm14, %v6525_v55, %v3769_v8  ;;  %6453 = vmatpush3.bf16.msra.mxu0 %v6452_v9  ;;  %v6461_v55 = vpack.c.bf16 %v4290_v45, %v4289_v44  ;;  %v4294_v8 = vld [vmem:[%s9040_s7 + $0x68] sm:$0xff]  ;;  %v4296_v3 = vld [vmem:[%s9040_s7 + $0x78] sm:$0xff] }
 0x361   : > { %v6531_v19 = vadd.f32 %v6530_v54, %v3643_v52  ;;  %v3800_v27 = vsel %vm3736_vm15, %v6527_v16, %v3768_v43  ;;  %6454 = vmatprep.subr.bf16.mxu0 %v6935_v35  ;;  %v4292_v16 = vld [vmem:[%s9040_s7 + $0x58] sm:$0xff]  ;;  %v6467_v54 = vpack.c.bf16 %v4294_v8, %v4293_v36  ;;  %v4295_v43 = vld [vmem:[%s9040_s7 + $0x70] sm:$0xff]  ;;  %v8693_v52 = vld [vmem:[%s9039_s6] ss:$0 sm:$0xff] }
 0x362   : > { %v3771_v50 = vmul.f32 0.01, %v6529_v24  ;;  %6201 = vmatprep.mubr.msk.f32.mxu0 %vm761_vm0, %v3800_v27  ;;  %vm3739_vm1 = vcmp.gt.f32.partialorder %v6529_v24, 0.0  ;;  %v6464_v58 = vpack.c.bf16 %v4292_v16, %v4291_v31 }
 0x363   : > { %vm3738_vm2 = vcmp.gt.f32.partialorder %v6531_v19, 0.0  ;;  %v3770_v1 = vmul.f32 0.01, %v6531_v19  ;;  %v6145_v2 = vpop.f32.mrb[16].mxu1  ;;  %6202 = vmatmul.mubr.msk.f32.gmra.mrb[86].mxu0 %vm761_vm0, %v3801_v25 }
 0x364   : > { %v6533_v46 = vadd.f32 %v6532_v14, %v6145_v2  ;;  %v3653_v30 = vpop.f32.mrb[17].mxu1  ;;  %v3803_v57 = vsel %vm3739_vm1, %v6529_v24, %v3771_v50  ;;  %6456 = vmatpush3.bf16.msra.mxu0 %v6455_v61  ;;  %v6470_v24 = vpack.c.bf16 %v4296_v3, %v4295_v43 }
 0x365   : > { %v6535_v59 = vadd.f32 %v6534_v60, %v3653_v30  ;;  %v3802_v29 = vsel %vm3738_vm2, %v6531_v19, %v3770_v1  ;;  %6457 = vmatprep.subr.bf16.mxu0 %v6935_v35 }
 0x366   : > { %v3773_v39 = vmul.f32 0.01, %v6533_v46  ;;  %6204 = vmatprep.mubr.msk.f32.mxu0 %vm761_vm0, %v3802_v29  ;;  %vm3741_vm3 = vcmp.gt.f32.partialorder %v6533_v46, 0.0 }
 0x367   : > { %vm3740_vm4 = vcmp.gt.f32.partialorder %v6535_v59, 0.0  ;;  %v3772_v38 = vmul.f32 0.01, %v6535_v59  ;;  %v6148_v32 = vpop.f32.mrb[18].mxu1  ;;  %6205 = vmatmul.mubr.msk.f32.gmra.mrb[88].mxu0 %vm761_vm0, %v3803_v57 }
 0x368   : > { %v6537_v33 = vadd.f32 %v6536_v23, %v6148_v32  ;;  %v3663_v6 = vpop.f32.mrb[19].mxu1  ;;  %v3805_v15 = vsel %vm3741_vm3, %v6533_v46, %v3773_v39  ;;  %6459 = vmatpush3.bf16.msra.mxu0 %v6458_v41 }
 0x369   : > { %v6539_v51 = vadd.f32 %v6538_v21, %v3663_v6  ;;  %v3804_v42 = vsel %vm3740_vm4, %v6535_v59, %v3772_v38  ;;  %6460 = vmatprep.subr.bf16.mxu0 %v6935_v35 }
 0x36a   : > { %v3775_v28 = vmul.f32 0.01, %v6537_v33  ;;  %6207 = vmatprep.mubr.msk.f32.mxu0 %vm761_vm0, %v3804_v42  ;;  %vm3743_vm5 = vcmp.gt.f32.partialorder %v6537_v33, 0.0 }
 0x36b   : > { %vm3742_vm6 = vcmp.gt.f32.partialorder %v6539_v51, 0.0  ;;  %v3774_v4 = vmul.f32 0.01, %v6539_v51  ;;  %v6151_v48 = vpop.f32.mrb[20].mxu1  ;;  %6208 = vmatmul.mubr.msk.f32.gmra.mrb[90].mxu0 %vm761_vm0, %v3805_v15 }
 0x36c   : > { %v6541_v49 = vadd.f32 %v6540_v10, %v6151_v48  ;;  %v3673_v63 = vpop.f32.mrb[21].mxu1  ;;  %v3807_v53 = vsel %vm3743_vm5, %v6537_v33, %v3775_v28  ;;  %6462 = vmatpush3.bf16.msra.mxu0 %v6461_v55 }
 0x36d   : > { %v6543_v7 = vadd.f32 %v6542_v37, %v3673_v63  ;;  %v3806_v17 = vsel %vm3742_vm6, %v6539_v51, %v3774_v4  ;;  %6463 = vmatprep.subr.bf16.mxu0 %v6935_v35 }
 0x36e   : > { %v3777_v22 = vmul.f32 0.01, %v6541_v49  ;;  %6210 = vmatprep.mubr.msk.f32.mxu0 %vm761_vm0, %v3806_v17  ;;  %vm3745_vm7 = vcmp.gt.f32.partialorder %v6541_v49, 0.0 }
 0x36f   : > { %vm3744_vm8 = vcmp.gt.f32.partialorder %v6543_v7, 0.0  ;;  %v3776_v18 = vmul.f32 0.01, %v6543_v7  ;;  %6211 = vmatmul.mubr.msk.f32.gmra.mrb[92].mxu0 %vm761_vm0, %v3807_v53 }
 0x370   : > { %v3809_v13 = vsel %vm3745_vm7, %v6541_v49, %v3777_v22  ;;  %6465 = vmatpush3.bf16.msra.mxu0 %v6464_v58 }
 0x371   : > { %v3808_v62 = vsel %vm3744_vm8, %v6543_v7, %v3776_v18  ;;  %6466 = vmatprep.subr.bf16.mxu0 %v6935_v35 }
 0x372   : > { %6213 = vmatprep.mubr.msk.f32.mxu0 %vm761_vm0, %v3808_v62 }
 0x373   : > { %6214 = vmatmul.mubr.msk.f32.gmra.mrb[94].mxu0 %vm761_vm0, %v3809_v13  ;;  %vm6936_vm0 = vmmov 0  }
 0x374   : > { %6248 = vmatprep.mubr.msk.f32.mxu0 %vm6936_vm0, %v9143_v12  ;;  %6468 = vmatpush3.bf16.msra.mxu0 %v6467_v54 }
 0x375   : > { %6469 = vmatprep.subr.bf16.mxu0 %v6935_v35 }
 0x378   : > { %6471 = vmatpush3.bf16.msra.mxu0 %v6470_v24 }
 0x379   : > { %6251 = vmatprep.subr.mxu0 %v9143_v12 }
 0x40a   : > { %v6170_v19 = vpop.f32.mrb[64].mxu0 }
 0x40b   : > { %v3993_v27 = vadd.f32 %v6170_v19, %v8693_v52  ;;  %v3987_v14 = vpop.f32.mrb[65].mxu0 }
 0x40c   : > { %v3988_v50 = vadd.f32 %v8693_v52, %v3987_v14 }
 0x40d   : > { %vm4147_vm9 = vcmp.gt.f32.partialorder %v3993_v27, 0.0  ;;  %v4179_v25 = vmul.f32 0.01, %v3993_v27 }
 0x40e   : > { %vm4146_vm10 = vcmp.gt.f32.partialorder %v3988_v50, 0.0  ;;  %v4178_v60 = vmul.f32 0.01, %v3988_v50  ;;  %v6173_v1 = vpop.f32.mrb[66].mxu0 }
 0x40f   : > { %v4003_v2 = vadd.f32 %v6173_v1, %v8693_v52  ;;  %v3997_v46 = vpop.f32.mrb[67].mxu0  ;;  %v8698_v30 = vsel %vm4147_vm9, %v3993_v27, %v4179_v25 }
 0x410   : > { %v8700_v59 = vsel %vm4146_vm10, %v3988_v50, %v4178_v60  ;;  %v3998_v29 = vadd.f32 %v8693_v52, %v3997_v46 }
 0x411   : > { %v4181_v23 = vmul.f32 0.01, %v4003_v2  ;;  %v4242_v21 = vadd.f32 %v8698_v30, %v8700_v59  ;;  %vm4149_vm12 = vcmp.gt.f32.partialorder %v4003_v2, 0.0 }
 0x412   : > { %vm4148_vm11 = vcmp.gt.f32.partialorder %v3998_v29, 0.0  ;;  %v4180_v39 = vmul.f32 0.01, %v3998_v29  ;;  %v6176_v57 = vpop.f32.mrb[68].mxu0 }
 0x413   : > { %v4013_v38 = vadd.f32 %v6176_v57, %v8693_v52  ;;  %v4007_v32 = vpop.f32.mrb[69].mxu0  ;;  %v8710_v42 = vsel %vm4149_vm12, %v4003_v2, %v4181_v23 }
 0x414   : > { %v8706_v33 = vsel %vm4148_vm11, %v3998_v29, %v4180_v39  ;;  %v4008_v6 = vadd.f32 %v8693_v52, %v4007_v32 }
 0x415   : > { %v4243_v51 = vadd.f32 %v4242_v21, %v8706_v33  ;;  %v4183_v10 = vmul.f32 0.01, %v4013_v38  ;;  %vm4151_vm14 = vcmp.gt.f32.partialorder %v4013_v38, 0.0 }
 0x416   : > { %vm4150_vm13 = vcmp.gt.f32.partialorder %v4008_v6, 0.0  ;;  %v4182_v28 = vmul.f32 0.01, %v4008_v6  ;;  %v6179_v15 = vpop.f32.mrb[70].mxu0 }
 0x417   : > { %v4244_v37 = vadd.f32 %v4243_v51, %v8710_v42  ;;  %v4023_v4 = vadd.f32 %v6179_v15, %v8693_v52  ;;  %v4017_v48 = vpop.f32.mrb[71].mxu0  ;;  %v8718_v17 = vsel %vm4151_vm14, %v4013_v38, %v4183_v10 }
 0x418   : > { %v8714_v49 = vsel %vm4150_vm13, %v4008_v6, %v4182_v28  ;;  %v4018_v63 = vadd.f32 %v8693_v52, %v4017_v48 }
 0x419   : > { %v4245_v7 = vadd.f32 %v4244_v37, %v8714_v49  ;;  %v4185_v22 = vmul.f32 0.01, %v4023_v4  ;;  %vm4153_vm1 = vcmp.gt.f32.partialorder %v4023_v4, 0.0 }
 0x41a   : > { %vm4152_vm15 = vcmp.gt.f32.partialorder %v4018_v63, 0.0  ;;  %v4184_v53 = vmul.f32 0.01, %v4018_v63  ;;  %v6182_v18 = vpop.f32.mrb[72].mxu0 }
 0x41b   : > { %v4246_v62 = vadd.f32 %v4245_v7, %v8718_v17  ;;  %v4033_v13 = vadd.f32 %v6182_v18, %v8693_v52  ;;  %v4027_v35 = vpop.f32.mrb[73].mxu0  ;;  %v8726_v5 = vsel %vm4153_vm1, %v4023_v4, %v4185_v22 }
 0x41c   : > { %v8722_v40 = vsel %vm4152_vm15, %v4018_v63, %v4184_v53  ;;  %v4028_v0 = vadd.f32 %v8693_v52, %v4027_v35 }
 0x41d   : > { %v4247_v34 = vadd.f32 %v4246_v62, %v8722_v40  ;;  %v4187_v26 = vmul.f32 0.01, %v4033_v13  ;;  %vm4155_vm3 = vcmp.gt.f32.partialorder %v4033_v13, 0.0 }
 0x41e   : > { %vm4154_vm2 = vcmp.gt.f32.partialorder %v4028_v0, 0.0  ;;  %v4186_v9 = vmul.f32 0.01, %v4028_v0  ;;  %v6185_v11 = vpop.f32.mrb[74].mxu0 }
 0x41f   : > { %v4248_v20 = vadd.f32 %v4247_v34, %v8726_v5  ;;  %v4043_v61 = vadd.f32 %v6185_v11, %v8693_v52  ;;  %v4037_v47 = vpop.f32.mrb[75].mxu0  ;;  %v8734_v45 = vsel %vm4155_vm3, %v4033_v13, %v4187_v26 }
 0x420   : > { %v8730_v56 = vsel %vm4154_vm2, %v4028_v0, %v4186_v9  ;;  %v4038_v41 = vadd.f32 %v8693_v52, %v4037_v47 }
 0x421   : > { %v4249_v44 = vadd.f32 %v4248_v20, %v8730_v56  ;;  %v4189_v55 = vmul.f32 0.01, %v4043_v61  ;;  %vm4157_vm5 = vcmp.gt.f32.partialorder %v4043_v61, 0.0 }
 0x422   : > { %vm4156_vm4 = vcmp.gt.f32.partialorder %v4038_v41, 0.0  ;;  %v4188_v31 = vmul.f32 0.01, %v4038_v41  ;;  %v6188_v16 = vpop.f32.mrb[76].mxu0 }
 0x423   : > { %v4250_v36 = vadd.f32 %v4249_v44, %v8734_v45  ;;  %v4053_v58 = vadd.f32 %v6188_v16, %v8693_v52  ;;  %v4047_v8 = vpop.f32.mrb[77].mxu0  ;;  %v8742_v24 = vsel %vm4157_vm5, %v4043_v61, %v4189_v55 }
 0x424   : > { %v8738_v54 = vsel %vm4156_vm4, %v4038_v41, %v4188_v31  ;;  %v4048_v43 = vadd.f32 %v8693_v52, %v4047_v8 }
 0x425   : > { %v4251_v3 = vadd.f32 %v4250_v36, %v8738_v54  ;;  %v4191_v19 = vmul.f32 0.01, %v4053_v58  ;;  %vm4159_vm7 = vcmp.gt.f32.partialorder %v4053_v58, 0.0 }
 0x426   : > { %vm4158_vm6 = vcmp.gt.f32.partialorder %v4048_v43, 0.0  ;;  %v4190_v27 = vmul.f32 0.01, %v4048_v43  ;;  %v6191_v14 = vpop.f32.mrb[78].mxu0 }
 0x427   : > { %v4252_v50 = vadd.f32 %v4251_v3, %v8742_v24  ;;  %v4063_v25 = vadd.f32 %v6191_v14, %v8693_v52  ;;  %v4057_v60 = vpop.f32.mrb[79].mxu0  ;;  %v8750_v29 = vsel %vm4159_vm7, %v4053_v58, %v4191_v19 }
 0x428   : > { %v8746_v1 = vsel %vm4158_vm6, %v4048_v43, %v4190_v27  ;;  %v4058_v2 = vadd.f32 %v8693_v52, %v4057_v60 }
 0x429   : > { %v4253_v46 = vadd.f32 %v4252_v50, %v8746_v1  ;;  %v4193_v23 = vmul.f32 0.01, %v4063_v25  ;;  %vm4161_vm9 = vcmp.gt.f32.partialorder %v4063_v25, 0.0 }
 0x42a   : > { %vm4160_vm8 = vcmp.gt.f32.partialorder %v4058_v2, 0.0  ;;  %v4192_v39 = vmul.f32 0.01, %v4058_v2  ;;  %v6194_v57 = vpop.f32.mrb[80].mxu0 }
 0x42b   : > { %v4254_v21 = vadd.f32 %v4253_v46, %v8750_v29  ;;  %v4073_v38 = vadd.f32 %v6194_v57, %v8693_v52  ;;  %v4067_v32 = vpop.f32.mrb[81].mxu0  ;;  %v8758_v28 = vsel %vm4161_vm9, %v4063_v25, %v4193_v23 }
 0x42c   : > { %v8754_v6 = vsel %vm4160_vm8, %v4058_v2, %v4192_v39  ;;  %v4068_v51 = vadd.f32 %v8693_v52, %v4067_v32 }
 0x42d   : > { %v4255_v10 = vadd.f32 %v4254_v21, %v8754_v6  ;;  %v4195_v15 = vmul.f32 0.01, %v4073_v38  ;;  %vm4163_vm11 = vcmp.gt.f32.partialorder %v4073_v38, 0.0 }
 0x42e   : > { %vm4162_vm10 = vcmp.gt.f32.partialorder %v4068_v51, 0.0  ;;  %v4194_v37 = vmul.f32 0.01, %v4068_v51  ;;  %v6197_v4 = vpop.f32.mrb[82].mxu0 }
 0x42f   : > { %v4256_v48 = vadd.f32 %v4255_v10, %v8758_v28  ;;  %v4083_v63 = vadd.f32 %v6197_v4, %v8693_v52  ;;  %v4077_v7 = vpop.f32.mrb[83].mxu0  ;;  %v8766_v62 = vsel %vm4163_vm11, %v4073_v38, %v4195_v15  ;;  %vm4371_vm11 = vcmask 64512  }
 0x430   : > { %v8762_v22 = vsel %vm4162_vm10, %v4068_v51, %v4194_v37  ;;  %v4078_v53 = vadd.f32 %v8693_v52, %v4077_v7 }
 0x431   : > { %v4257_v18 = vadd.f32 %v4256_v48, %v8762_v22  ;;  %v4197_v13 = vmul.f32 0.01, %v4083_v63  ;;  %vm4165_vm13 = vcmp.gt.f32.partialorder %v4083_v63, 0.0 }
 0x432   : > { %vm4164_vm12 = vcmp.gt.f32.partialorder %v4078_v53, 0.0  ;;  %v4196_v35 = vmul.f32 0.01, %v4078_v53  ;;  %v6200_v0 = vpop.f32.mrb[84].mxu0 }
 0x433   : > { %v4258_v34 = vadd.f32 %v4257_v18, %v8766_v62  ;;  %v4093_v26 = vadd.f32 %v6200_v0, %v8693_v52  ;;  %v4087_v9 = vpop.f32.mrb[85].mxu0  ;;  %v8774_v47 = vsel %vm4165_vm13, %v4083_v63, %v4197_v13 }
 0x434   : > { %v8770_v11 = vsel %vm4164_vm12, %v4078_v53, %v4196_v35  ;;  %v4088_v20 = vadd.f32 %v8693_v52, %v4087_v9 }
 0x435   : > { %v4259_v61 = vadd.f32 %v4258_v34, %v8770_v11  ;;  %v4199_v41 = vmul.f32 0.01, %v4093_v26  ;;  %vm4167_vm15 = vcmp.gt.f32.partialorder %v4093_v26, 0.0 }
 0x436   : > { %vm4166_vm14 = vcmp.gt.f32.partialorder %v4088_v20, 0.0  ;;  %v4198_v44 = vmul.f32 0.01, %v4088_v20  ;;  %v6203_v55 = vpop.f32.mrb[86].mxu0 }
 0x437   : > { %v4260_v31 = vadd.f32 %v4259_v61, %v8774_v47  ;;  %v4103_v16 = vadd.f32 %v6203_v55, %v8693_v52  ;;  %v4097_v36 = vpop.f32.mrb[87].mxu0  ;;  %v8782_v3 = vsel %vm4167_vm15, %v4093_v26, %v4199_v41 }
 0x438   : > { %v8778_v58 = vsel %vm4166_vm14, %v4088_v20, %v4198_v44  ;;  %v4098_v8 = vadd.f32 %v8693_v52, %v4097_v36 }
 0x439   : > { %v4261_v43 = vadd.f32 %v4260_v31, %v8778_v58  ;;  %v4201_v19 = vmul.f32 0.01, %v4103_v16  ;;  %vm4169_vm2 = vcmp.gt.f32.partialorder %v4103_v16, 0.0 }
 0x43a   : > { %vm4168_vm1 = vcmp.gt.f32.partialorder %v4098_v8, 0.0  ;;  %v4200_v27 = vmul.f32 0.01, %v4098_v8  ;;  %v6206_v14 = vpop.f32.mrb[88].mxu0 }
 0x43b   : > { %v4262_v50 = vadd.f32 %v4261_v43, %v8782_v3  ;;  %v4113_v25 = vadd.f32 %v6206_v14, %v8693_v52  ;;  %v4107_v60 = vpop.f32.mrb[89].mxu0  ;;  %v8790_v39 = vsel %vm4169_vm2, %v4103_v16, %v4201_v19 }
 0x43c   : > { %v8786_v2 = vsel %vm4168_vm1, %v4098_v8, %v4200_v27  ;;  %v4108_v46 = vadd.f32 %v8693_v52, %v4107_v60 }
 0x43d   : > { %v4263_v23 = vadd.f32 %v4262_v50, %v8786_v2  ;;  %v4203_v57 = vmul.f32 0.01, %v4113_v25  ;;  %vm4171_vm4 = vcmp.gt.f32.partialorder %v4113_v25, 0.0 }
 0x43e   : > { %vm4170_vm3 = vcmp.gt.f32.partialorder %v4108_v46, 0.0  ;;  %v4202_v21 = vmul.f32 0.01, %v4108_v46  ;;  %v6209_v38 = vpop.f32.mrb[90].mxu0 }
 0x43f   : > { %v4264_v32 = vadd.f32 %v4263_v23, %v8790_v39  ;;  %v4123_v51 = vadd.f32 %v6209_v38, %v8693_v52  ;;  %v4117_v10 = vpop.f32.mrb[91].mxu0  ;;  %v8798_v48 = vsel %vm4171_vm4, %v4113_v25, %v4203_v57 }
 0x440   : > { %v8794_v15 = vsel %vm4170_vm3, %v4108_v46, %v4202_v21  ;;  %v4118_v37 = vadd.f32 %v8693_v52, %v4117_v10  ;;  %v4369_v10 = vld [vmem:[%s9042_s9] sm:$0xff] }
 0x441   : > { %v4265_v4 = vadd.f32 %v4264_v32, %v8794_v15  ;;  %v4205_v63 = vmul.f32 0.01, %v4123_v51  ;;  %vm4173_vm6 = vcmp.gt.f32.partialorder %v4123_v51, 0.0 }
 0x442   : > { %vm4172_vm5 = vcmp.gt.f32.partialorder %v4118_v37, 0.0  ;;  %v4204_v7 = vmul.f32 0.01, %v4118_v37  ;;  %v6212_v53 = vpop.f32.mrb[92].mxu0 }
 0x443   : > { %v4266_v18 = vadd.f32 %v4265_v4, %v8798_v48  ;;  %v4133_v13 = vadd.f32 %v6212_v53, %v8693_v52  ;;  %v4127_v35 = vpop.f32.mrb[93].mxu0  ;;  %v8806_v9 = vsel %vm4173_vm6, %v4123_v51, %v4205_v63 }
 0x444   : > { %v8802_v0 = vsel %vm4172_vm5, %v4118_v37, %v4204_v7  ;;  %v4128_v34 = vadd.f32 %v8693_v52, %v4127_v35  ;;  %v4297_v37 = vld [vmem:[%s9041_s8] sm:$0x1] }
 0x445   : > { %v4267_v26 = vadd.f32 %v4266_v18, %v8802_v0  ;;  %v4207_v20 = vmul.f32 0.01, %v4133_v13  ;;  %vm4175_vm8 = vcmp.gt.f32.partialorder %v4133_v13, 0.0  ;;  %v4370_v18 = vld [vmem:[%s9043_s10] sm:$0x1] }
 0x446   : > { %vm4174_vm7 = vcmp.gt.f32.partialorder %v4128_v34, 0.0  ;;  %v4206_v61 = vmul.f32 0.01, %v4128_v34  ;;  %v6215_v41 = vpop.f32.mrb[94].mxu0 }
 0x447   : > { %v4268_v44 = vadd.f32 %v4267_v26, %v8806_v9  ;;  %v4143_v55 = vadd.f32 %v6215_v41, %v8693_v52  ;;  %v4137_v31 = vpop.f32.mrb[95].mxu0  ;;  %v8814_v43 = vsel %vm4175_vm8, %v4133_v13, %v4207_v20  ;;  %v4451_v41 = vlaneseq }
 0x448   : > { %v8810_v16 = vsel %vm4174_vm7, %v4128_v34, %v4206_v61  ;;  %v4138_v36 = vadd.f32 %v8693_v52, %v4137_v31 }
 0x449   : > { %v4269_v8 = vadd.f32 %v4268_v44, %v8810_v16  ;;  %v4209_v19 = vmul.f32 0.01, %v4143_v55  ;;  %vm4177_vm10 = vcmp.gt.f32.partialorder %v4143_v55, 0.0  ;;  %v4452_v44 = vshrl.u32 %v4451_v41, 7 }
 0x44a   : > { %vm4176_vm9 = vcmp.gt.f32.partialorder %v4138_v36, 0.0  ;;  %v4208_v27 = vmul.f32 0.01, %v4138_v36 }
 0x44b   : > { %v4270_v14 = vadd.f32 %v4269_v8, %v8814_v43  ;;  %v8820_v60 = vsel %vm4177_vm10, %v4143_v55, %v4209_v19  ;;  %v4453_v55 = vsub.s32 0, %v4452_v44  ;;  %v6852_v44 = vld [vmem:[%s7071_s16 + $0x70] sm:$0xff] }
 0x44c   : > { %v8817_v50 = vsel %vm4176_vm9, %v4138_v36, %v4208_v27 }
 0x44d   : > { %v4271_v25 = vadd.f32 %v4270_v14, %v8817_v50 }
 0x44f   : > { %v4272_v46 = vadd.f32 %v4271_v25, %v8820_v60 }
 0x451   : > { %v4273_v23 = vrot.slane %v4272_v46, 4 }
 0x453   : > { %v4274_v52 = vadd.f32 %v4273_v23, %v4272_v46 }
 0x455   : > { %v4275_v57 = vrot.slane %v4274_v52, 2 }
 0x457   : > { %v4276_v21 = vadd.f32 %v4275_v57, %v4274_v52 }
 0x459   : > { %v4277_v38 = vrot.slane %v4276_v21, 1 }
 0x45b   : > { %v4278_v32 = vadd.f32 %v4277_v38, %v4276_v21  ;;  %v6842_v38 = vld [vmem:[%s7071_s16 + $0x20] sm:$0xff] }
 0x45d   : > { %v4280_v51 = vmul.f32 0.00390625, %v4278_v32  ;;  %v6843_v32 = vld [vmem:[%s7071_s16 + $0x28] sm:$0xff] }
 0x45f   : > { %6249 = vmatmul.mubr.f32.vlgmr.msra.gmra.mrb[96].mxu0 %v4280_v51 }
 0x460   : > { %6253 = vmatprep.mubr.msk.f32.mxu0 %vm6936_vm0, %v9143_v12  ;;  %6252 = vmatpush3.msra.mxu0 %v4369_v10  ;;  %v6844_v10 = vld [vmem:[%s7071_s16 + $0x30] sm:$0xff] }
 0x532   : > { %v4364_v4 = vpop.f32.mrb[96].mxu0 }
 0x533   : > { %v4365_v63 = vadd.f32 %v4364_v4, %v4297_v37  ;;  %v6250_v7 = vpop.f32.mrb[97].mxu0  ;;  %v6845_v37 = vld [vmem:[%s7071_s16 + $0x38] sm:$0xff] }
 0x535   : > { %v4368_v53 = vmax.f32 %v4365_v63, 0.0  ;;  %v6846_v63 = vld [vmem:[%s7071_s16 + $0x40] sm:$0xff] }
 0x537   : > { %6254 = vmatmul.mubr.msk.f32.vlgmr.msra.gmra.mrb[98].mxu0 %vm4371_vm11, %v4368_v53  ;;  %v6847_v53 = vld [vmem:[%s7071_s16 + $0x48] sm:$0xff] }
 0x60a   : > { %v4441_v12 = vpop.f32.mrb[98].mxu0 }
 0x60b   : > { %v4442_v13 = vadd.f32 %v4441_v12, %v4370_v18  ;;  %v6255_v35 = vpop.f32.mrb[99].mxu0  ;;  %v6848_v12 = vld [vmem:[%s7071_s16 + $0x50] sm:$0xff] }
 0x60c   : > { %v6849_v35 = vld [vmem:[%s7071_s16 + $0x58] sm:$0xff] }
 0x60d   : > { %v4445_v34 = vsub.f32 0.0, %v4442_v13 }
 0x60f   : > { %v4446_v26 = vmul.f32 1.442695, %v4445_v34 }
 0x611   : > { %6812 = vpow2.f32 %v4446_v26  ;;  %v6850_v26 = vld [vmem:[%s7071_s16 + $0x60] sm:$0xff] }
 0x61b   : > { %v6813_v20 = vpop.eup %6812 }
 0x61c   : > { %v4448_v61 = vadd.f32 1.0, %v6813_v20 }
 0x61e   : > { %6814 = vrcp.f32 %v4448_v61  ;;  %v6851_v61 = vld [vmem:[%s7071_s16 + $0x68] sm:$0xff] }
 0x628   : > { %v6815_v31 = vpop.eup %6814 }
 0x629   : > { %v4454_v36 = vrot.slane %v6815_v31, %v4453_v55  ;;  %v6853_v31 = vld [vmem:[%s7071_s16 + $0x78] sm:$0xff] }
 0x62b   : > { %v4455_v8 = vmul.f32 %v4454_v36, %v8700_v59  ;;  %v4456_v19 = vmul.f32 %v4454_v36, %v8698_v30  ;;  %v4457_v27 = vmul.f32 %v4454_v36, %v8706_v33  ;;  %v4458_v14 = vmul.f32 %v4454_v36, %v8710_v42 }
 0x62c   : > { %v4459_v25 = vmul.f32 %v4454_v36, %v8714_v49  ;;  %v4460_v46 = vmul.f32 %v4454_v36, %v8718_v17  ;;  %v4461_v23 = vmul.f32 %v4454_v36, %v8722_v40  ;;  %v4462_v52 = vmul.f32 %v4454_v36, %v8726_v5 }
 0x62d   : > { %v4463_v57 = vmul.f32 %v4454_v36, %v8730_v56  ;;  %v4464_v59 = vmul.f32 %v4454_v36, %v8734_v45  ;;  %v4465_v30 = vmul.f32 %v4454_v36, %v8738_v54  ;;  %v4466_v21 = vmul.f32 %v4454_v36, %v8742_v24 }
 0x62e   : > { %v4467_v33 = vmul.f32 %v4454_v36, %v8746_v1  ;;  %v4468_v42 = vmul.f32 %v4454_v36, %v8750_v29  ;;  %v4469_v49 = vmul.f32 %v4454_v36, %v8754_v6  ;;  %v4470_v17 = vmul.f32 %v4454_v36, %v8758_v28 }
 0x62f   : > { %v4471_v40 = vmul.f32 %v4454_v36, %v8762_v22  ;;  %v4472_v5 = vmul.f32 %v4454_v36, %v8766_v62  ;;  %v4473_v56 = vmul.f32 %v4454_v36, %v8770_v11  ;;  %v8859_v45 = vmul.f32 %v4454_v36, %v8774_v47 }
 0x630   : > { %v8862_v54 = vmul.f32 %v4454_v36, %v8778_v58  ;;  %v8865_v24 = vmul.f32 %v4454_v36, %v8782_v3  ;;  %v8868_v1 = vmul.f32 %v4454_v36, %v8786_v2  ;;  %v8871_v29 = vmul.f32 %v4454_v36, %v8790_v39  ;;  %v6838_v2 = vld [vmem:[%s7071_s16] sm:$0xff] }
 0x631   : > { %v8874_v6 = vmul.f32 %v4454_v36, %v8794_v15  ;;  %v8877_v28 = vmul.f32 %v4454_v36, %v8798_v48  ;;  %v8880_v22 = vmul.f32 %v4454_v36, %v8802_v0  ;;  %v8883_v62 = vmul.f32 %v4454_v36, %v8806_v9  ;;  %v6839_v15 = vld [vmem:[%s7071_s16 + $0x8] sm:$0xff]  ;;  %v6840_v0 = vld [vmem:[%s7071_s16 + $0x10] sm:$0xff] }
 0x632   : > { %v8886_v11 = vmul.f32 %v4454_v36, %v8810_v16  ;;  %v8889_v47 = vmul.f32 %v4454_v36, %v8814_v43  ;;  %v8892_v58 = vmul.f32 %v4454_v36, %v8817_v50  ;;  %v8895_v3 = vmul.f32 %v4454_v36, %v8820_v60  ;;  %v6841_v16 = vld [vmem:[%s7071_s16 + $0x18] sm:$0xff] }
 0x633   : > { %v4487_v39 = vadd.f32 %v6838_v2, %v4455_v8  ;;  %v4488_v48 = vadd.f32 %v6839_v15, %v4456_v19  ;;  %v4489_v9 = vadd.f32 %v6840_v0, %v4457_v27  ;;  %v4490_v43 = vadd.f32 %v6841_v16, %v4458_v14  ;;  %v6854_v8 = vld [vmem:[%s7071_s16 + $0x80] sm:$0xff]  ;;  %v6855_v27 = vld [vmem:[%s7071_s16 + $0x88] sm:$0xff]  ;;  %v6868_v2 = vld [vmem:[%s7071_s16 + $0xf0] sm:$0xff] }
 0x634   : > { %v4491_v50 = vadd.f32 %v6842_v38, %v4459_v25  ;;  %v4492_v51 = vadd.f32 %v6843_v32, %v4460_v46  ;;  %v4493_v60 = vadd.f32 %v6844_v10, %v4461_v23  ;;  %v4494_v4 = vadd.f32 %v6845_v37, %v4462_v52  ;;  %v6856_v25 = vld [vmem:[%s7071_s16 + $0x90] sm:$0xff]  ;;  %v6857_v23 = vld [vmem:[%s7071_s16 + $0x98] sm:$0xff] }
 0x635   : > { %v4495_v7 = vadd.f32 %v6846_v63, %v4463_v57  ;;  %v4496_v18 = vadd.f32 %v6847_v53, %v4464_v59  ;;  %v4497_v13 = vadd.f32 %v6848_v12, %v4465_v30  ;;  %v4498_v34 = vadd.f32 %v6849_v35, %v4466_v21  ;;  %4519 = vst [vmem:[%s8910_s12] sm:$0xff] %v4487_v39  ;;  %v6858_v57 = vld [vmem:[%s7071_s16 + $0xa0] sm:$0xff]  ;;  %v6859_v30 = vld [vmem:[%s7071_s16 + $0xa8] sm:$0xff]  ;;  %v6869_v15 = vld [vmem:[%s7071_s16 + $0xf8] sm:$0xff] }
 0x636   : > { %4520 = vst [vmem:[%s8910_s12 + $0x8] sm:$0xff] %v4488_v48  ;;  %4521 = vst [vmem:[%s8910_s12 + $0x10] sm:$0xff] %v4489_v9  ;;  %v4499_v20 = vadd.f32 %v6850_v26, %v4467_v33  ;;  %v4500_v41 = vadd.f32 %v6851_v61, %v4468_v42  ;;  %v4501_v55 = vadd.f32 %v6852_v44, %v4469_v49  ;;  %v6860_v33 = vld [vmem:[%s7071_s16 + $0xb0] sm:$0xff]  ;;  %v6861_v49 = vld [vmem:[%s7071_s16 + $0xb8] sm:$0xff] }
 0x637   : > { %4522 = vst [vmem:[%s8910_s12 + $0x18] sm:$0xff] %v4490_v43  ;;  %v4502_v36 = vadd.f32 %v6853_v31, %v4470_v17  ;;  %4523 = vst [vmem:[%s8910_s12 + $0x20] sm:$0xff] %v4491_v50  ;;  %v4503_v19 = vadd.f32 %v6854_v8, %v4471_v40  ;;  %v4504_v14 = vadd.f32 %v6855_v27, %v4472_v5  ;;  %v6862_v40 = vld [vmem:[%s7071_s16 + $0xc0] sm:$0xff] }
 0x638   : > { %4524 = vst [vmem:[%s8910_s12 + $0x28] sm:$0xff] %v4492_v51  ;;  %4525 = vst [vmem:[%s8910_s12 + $0x30] sm:$0xff] %v4493_v60  ;;  %v4505_v46 = vadd.f32 %v6856_v25, %v4473_v56  ;;  %v4506_v52 = vadd.f32 %v6857_v23, %v8859_v45  ;;  %v4507_v59 = vadd.f32 %v6858_v57, %v8862_v54  ;;  %v6863_v56 = vld [vmem:[%s7071_s16 + $0xc8] sm:$0xff]  ;;  %v6864_v54 = vld [vmem:[%s7071_s16 + $0xd0] sm:$0xff] }
 0x639   : > { %4526 = vst [vmem:[%s8910_s12 + $0x38] sm:$0xff] %v4494_v4  ;;  %4527 = vst [vmem:[%s8910_s12 + $0x40] sm:$0xff] %v4495_v7  ;;  %v4508_v21 = vadd.f32 %v6859_v30, %v8865_v24  ;;  %v4509_v42 = vadd.f32 %v6860_v33, %v8868_v1  ;;  %v4510_v17 = vadd.f32 %v6861_v49, %v8871_v29  ;;  %v6865_v1 = vld [vmem:[%s7071_s16 + $0xd8] sm:$0xff] }
 0x63a   : > { %4528 = vst [vmem:[%s8910_s12 + $0x48] sm:$0xff] %v4496_v18  ;;  %4529 = vst [vmem:[%s8910_s12 + $0x50] sm:$0xff] %v4497_v13  ;;  %v4511_v5 = vadd.f32 %v6862_v40, %v8874_v6  ;;  %v4512_v45 = vadd.f32 %v6863_v56, %v8877_v28  ;;  %v4513_v24 = vadd.f32 %v6864_v54, %v8880_v22  ;;  %v6866_v6 = vld [vmem:[%s7071_s16 + $0xe0] sm:$0xff]  ;;  %v6867_v22 = vld [vmem:[%s7071_s16 + $0xe8] sm:$0xff]  ;;  %s6870_s16 = scalar_lea.vmem %s8968_s26, 4096 }
 0x63b   : > { %4530 = vst [vmem:[%s8910_s12 + $0x58] sm:$0xff] %v4498_v34  ;;  %4531 = vst [vmem:[%s8910_s12 + $0x60] sm:$0xff] %v4499_v20  ;;  %v4514_v29 = vadd.f32 %v6865_v1, %v8883_v62  ;;  %v4515_v28 = vadd.f32 %v6866_v6, %v8886_v11  ;;  %v4516_v62 = vadd.f32 %v6867_v22, %v8889_v47  ;;  %p6871_p11 = scmp.ne.s32.totalorder %s8968_s26, %s6870_s16  ;;  %p6878_p1 = scmp.lt.s32.totalorder %s6876_s30, %s6870_s16 }
 0x63c   : > { %4532 = vst [vmem:[%s8910_s12 + $0x68] sm:$0xff] %v4500_v41  ;;  %4533 = vst [vmem:[%s8910_s12 + $0x70] sm:$0xff] %v4501_v55  ;;  %v4517_v39 = vadd.f32 %v6868_v2, %v8892_v58  ;;  %v4518_v48 = vadd.f32 %v6869_v15, %v8895_v3 }
 0x63d   : > { %4534 = vst [vmem:[%s8910_s12 + $0x78] sm:$0xff] %v4502_v36  ;;  %4535 = vst [vmem:[%s8910_s12 + $0x80] sm:$0xff] %v4503_v19  ;;  %p6872_p12 = pnand %p6871_p11, %p7038_p5  ;;  %p6879_p2 = por %p6878_p1, %p6877_p0 }
 0x63e   : > { %4536 = vst [vmem:[%s8910_s12 + $0x88] sm:$0xff] %v4504_v14  ;;  %4537 = vst [vmem:[%s8910_s12 + $0x90] sm:$0xff] %v4505_v46 }
 0x63f   : > { %4538 = vst [vmem:[%s8910_s12 + $0x98] sm:$0xff] %v4506_v52  ;;  %4539 = vst [vmem:[%s8910_s12 + $0xa0] sm:$0xff] %v4507_v59  ;;  %p6873_p13 = pneg %p6872_p12 }
 0x640   : > { %4540 = vst [vmem:[%s8910_s12 + $0xa8] sm:$0xff] %v4508_v21  ;;  %4541 = vst [vmem:[%s8910_s12 + $0xb0] sm:$0xff] %v4509_v42 }
 0x641   : > { %4542 = vst [vmem:[%s8910_s12 + $0xb8] sm:$0xff] %v4510_v17  ;;  %4543 = vst [vmem:[%s8910_s12 + $0xc0] sm:$0xff] %v4511_v5  ;;  %p6880_p3 = pnand %p6879_p2, %p6873_p13 }
 0x642   : > { %4544 = vst [vmem:[%s8910_s12 + $0xc8] sm:$0xff] %v4512_v45  ;;  %4545 = vst [vmem:[%s8910_s12 + $0xd0] sm:$0xff] %v4513_v24 }
 0x643   : > { %4546 = vst [vmem:[%s8910_s12 + $0xd8] sm:$0xff] %v4514_v29  ;;  %4547 = vst [vmem:[%s8910_s12 + $0xe0] sm:$0xff] %v4515_v28 }
 0x644   : > { %4548 = vst [vmem:[%s8910_s12 + $0xe8] sm:$0xff] %v4516_v62  ;;  %4549 = vst [vmem:[%s8910_s12 + $0xf0] sm:$0xff] %v4517_v39 }
 0x645   : > { %4550 = vst [vmem:[%s8910_s12 + $0xf8] sm:$0xff] %v4518_v48 }
 0x646   : > { %6883 = shalt.err (!%p6880_p3)
}
 0x647   : > { %s6884_s29 = scalar_lea.hbm %s8964_s22, 4096  ;;  %s6888_s14 = scalar_lea.hbm %s9044_s11, 8192 }
 0x648   : > { %p6885_p4 = scmp.ne.s32.totalorder %s8964_s22, %s6884_s29  ;;  %p6889_p9 = scmp.lt.u32.totalorder %s8964_s22, %s9044_s11 }
 0x649   : > { %p6890_p10 = scmp.lt.u32.totalorder %s6888_s14, %s6884_s29  ;;  %p6892_p12 = scmp.lt.u32.totalorder %s6884_s29, %s8964_s22 }
 0x64a   : > { %p6886_p7 = pnand %p6885_p4, %p7038_p5 }
 0x64b   : > { %p6891_p11 = por %p6890_p10, %p6889_p9 }
 0x64c   : > { %p6887_p8 = pneg %p6886_p7 }
 0x64d   : > { %p6893_p13 = por %p6892_p12, %p6891_p11 }
 0x64f   : > { %p6894_p0 = pnand %p6893_p13, %p6887_p8 }
 0x651   : > { %6897 = shalt.err (!%p6894_p0)
}
 0x652   : > { %s6938_s16 = smov 128   ;;  %s6939_s25 = smov 8  }
 0x653   : > { %6768 = dma.vmem_to_hbm [thread:$0]  (%p7038_p5), %s8968_s26, 4096, %s8964_s22, %s8992_s21, %s6938_s16, %s6938_s16, %s6939_s25  }
 0x654 PF: > { %p6774_p1 = scmp.ge.s32.totalorder %s6932_s20, 2  ;;  %s4580_s30 = sand.u32 1, %s6920_s17  }
 0x655   : > { %s4581_s29 = scalar_lea.sflag [#allocation4], %s4580_s30 }
 0x656   : > { %p6771_p2 = pnand %p6774_p1, %p7042_p6 }
 0x658   : > { %6915 = dma.done.wait (!%p6771_p2), %s4581_s29, 4096  }
 0x659   : > { %6917 = vsyncadd (!%p6771_p2), %s4581_s29, 4294963200  ;;  %s9144_s12 = sld [smem:[#allocation6_spill]]  ;;  %p21_p3 = scmp.ge.s32.totalorder %s7025_s23, 4  }
 0x65a   : > { %s9145_s17 = smov %s6924_s18  ;;  %s9146_s18 = smov %s6928_s19 }
 0x65b   : > { %s9148_s20 = smov %s7025_s23  ;;  %23 = sbr.rel (!%p21_p3) target bundleno = 3 (0x3), region = 109 }
 0x65f   : > { %s9147_s19 = smov %s9144_s12 }
 0x662   :  { %4586 = vsyncpa [#allocation4], 1 }
 0x663   :  { %4588 = vsyncpa [#allocation4 + $0x1], 1 }

</bundles_post_ra>
